<compile_context>
chip_gen: v5e
topology: v5e:2x2
jax: 0.10.0
libtpu: 0.0.40
codegen_flags: <defaults>
</compile_context>

<pallas_src>
from functools import partial

import jax
import jax.numpy as jnp
import numpy as np
from jax.experimental import pallas as pl
from jax.experimental.pallas import tpu as pltpu


# -----------------------------------------------------------------------------
# Pallas kernel: BT samples per grid step, six chained 2-D MXU matmuls.
# -----------------------------------------------------------------------------
def oppnet_kernel(x_ref, w1_ref, b1_ref, w2_ref, b2_ref, w3_ref, b3_ref,
                  w4_ref, b4_ref, w5_ref, b5_ref, wfc_ref, bfc_ref, out_ref):
    f32 = jnp.float32

    def layer(x, w_ref, b_ref):
        z = jnp.dot(x, w_ref[...], preferred_element_type=f32) + b_ref[...]
        return jnp.maximum(z, 0.0)

    h = layer(x_ref[...], w1_ref, b1_ref)      # (BT, 960)  conv1 + ReLU
    h = layer(h, w2_ref, b2_ref)               # (BT, 320)  conv2 (stride 3) + ReLU
    h = layer(h, w3_ref, b3_ref)               # (BT, 288)  conv3 + ReLU
    h = layer(h, w4_ref, b4_ref)               # (BT, 256)  conv4 + ReLU
    h = layer(h, w5_ref, b5_ref)               # (BT, 24)   conv5 + ReLU (== flatten)
    # fc2: lane-dense (BT, 128) slab store; padding columns are exact zeros.
    out_ref[...] = jnp.dot(h, wfc_ref[...], preferred_element_type=f32) + bfc_ref[...]


# -----------------------------------------------------------------------------
# One-time host-side weight repacking (hoisted out of the hot forward).
# -----------------------------------------------------------------------------
def _banded_conv_weight(w, l_in, l_out, stride):
    """Torch Conv1d weight (O, C, K) -> dense (l_in*C, l_out*O) block-banded
    matrix acting on position-major / channel-minor lane vectors."""
    w = np.asarray(w, np.float32)
    o, c, k = w.shape
    taps = np.transpose(w, (2, 1, 0)).reshape(k * c, o)   # rows ordered [tap][channel]
    big = np.zeros((l_in * c, l_out * o), np.float32)
    for q in range(l_out):
        r0 = stride * q * c
        big[r0:r0 + k * c, q * o:(q + 1) * o] = taps
    return big


def pack_params(params, fc_pad=128):
    """Repack torch-layout params into the dense matmul operands the kernel eats."""
    np_params = [(np.asarray(w, np.float32), np.asarray(b, np.float32))
                 for w, b in params]
    (w1, b1), (w2, b2), (w3, b3), (w4, b4), (w5, b5), (wfc, bfc) = np_params

    # Sequence lengths (L = 60 contract):
    # padded 64 -> conv1 -> 60 -> conv2(s=3) -> 20 -> conv3 -> 18 -> conv4 -> 16 -> conv5 -> 1
    w1b = _banded_conv_weight(w1, 64, 60, 1)      # (64*Cin, 960)
    w2b = _banded_conv_weight(w2, 60, 20, 3)      # (960, 320)
    w3b = _banded_conv_weight(w3, 20, 18, 1)      # (320, 288)
    w4b = _banded_conv_weight(w4, 18, 16, 1)      # (288, 256)
    w5f = _banded_conv_weight(w5, 16, 1, 1)       # (256, 24)

    b1r = np.tile(b1, 60)[None, :]                # (1, 960)
    b2r = np.tile(b2, 20)[None, :]                # (1, 320)
    b3r = np.tile(b3, 18)[None, :]                # (1, 288)
    b4r = np.tile(b4, 16)[None, :]                # (1, 256)
    b5r = b5[None, :]                             # (1, 24)

    n_out = wfc.shape[0]                          # 5
    wfc_p = np.zeros((wfc.shape[1], fc_pad), np.float32)
    wfc_p[:, :n_out] = wfc.T
    bfc_p = np.zeros((1, fc_pad), np.float32)
    bfc_p[0, :n_out] = bfc

    return tuple(jnp.asarray(a, jnp.float32) for a in
                 (w1b, b1r, w2b, b2r, w3b, b3r, w4b, b4r, w5f, b5r, wfc_p, bfc_p))


# -----------------------------------------------------------------------------
# Wrapper: input layout plumbing + batch tiling + pallas_call.
# -----------------------------------------------------------------------------
def _round_up(n, m):
    return ((n + m - 1) // m) * m


@partial(jax.jit, static_argnames=("block_b", "num_outputs"))
def oppnet_forward(x_ncw, packed, block_b=256, num_outputs=5):
    """x_ncw: (B, Cin, 60) float32 (PyTorch NCW). Returns (B, num_outputs)."""
    b, cin, l = x_ncw.shape
    assert l == 60, "fc2 = Linear(24, 5) forces conv5 output length 1, i.e. L == 60"

    # Raw input -> channels-last, pad=2, flatten to position-major lanes, bf16.
    x_nlc = jnp.transpose(x_ncw, (0, 2, 1)).astype(jnp.float32)   # (B, 60, Cin)
    x_pad = jnp.pad(x_nlc, ((0, 0), (2, 2), (0, 0)))              # (B, 64, Cin)
    n_lanes = (l + 4) * cin
    x_lanes = x_pad.reshape(b, n_lanes).astype(jnp.bfloat16)      # (B, 64*Cin)

    # Batch tile: multiple of 8, capped at block_b; pad the batch to a multiple.
    bt = min(block_b, _round_up(b, 8))
    b_pad = _round_up(b, bt)
    if b_pad != b:
        x_lanes = jnp.pad(x_lanes, ((0, b_pad - b), (0, 0)))

    args = (x_lanes,) + tuple(packed)
    in_specs = [pl.BlockSpec((bt, n_lanes), lambda i: (i, 0))]
    in_specs += [pl.BlockSpec(p.shape, lambda i: (0, 0)) for p in packed]

    out = pl.pallas_call(
        oppnet_kernel,
        grid=(b_pad // bt,),
        in_specs=in_specs,
        out_specs=pl.BlockSpec((bt, 128), lambda i: (i, 0)),
        out_shape=jax.ShapeDtypeStruct((b_pad, 128), jnp.float32),
        compiler_params=pltpu.CompilerParams(
            dimension_semantics=("parallel",)),
    )(*args)

    return out[:b, :num_outputs]


# -----------------------------------------------------------------------------
# Pure-JAX reference (mirrors the PyTorch forward exactly) for validation.
# -----------------------------------------------------------------------------
def oppnet_reference(x_ncw, params):
    def conv1d(x, w, b, stride=1, padding=0):
        y = jax.lax.conv_general_dilated(
            x, w, window_strides=(stride,), padding=[(padding, padding)],
            dimension_numbers=('NCH', 'OIH', 'NCH'))
        return y + b[None, :, None]

    (w1, b1), (w2, b2), (w3, b3), (w4, b4), (w5, b5), (wfc, bfc) = params
    h = jax.nn.relu(conv1d(x_ncw, w1, b1, padding=2))
    h = jax.nn.relu(conv1d(h, w2, b2, stride=3))
    h = jax.nn.relu(conv1d(h, w3, b3))
    h = jax.nn.relu(conv1d(h, w4, b4))
    h = jax.nn.relu(conv1d(h, w5, b5))
    h = h.reshape(h.shape[0], -1)     # (B, 24) since the final length == 1
    return h @ wfc.T + bfc


# -----------------------------------------------------------------------------
# Deterministic parameter init (PyTorch-style uniform +-1/sqrt(fan_in)).
# -----------------------------------------------------------------------------
def init_params(key, in_channels):
    def u(k, shape, fan_in):
        lim = 1.0 / np.sqrt(fan_in)
        return jax.random.uniform(k, shape, jnp.float32, -lim, lim)

    ks = jax.random.split(key, 12)
    return (
        (u(ks[0], (16, in_channels, 5), in_channels * 5), u(ks[1], (16,), in_channels * 5)),
        (u(ks[2], (16, 16, 3), 16 * 3), u(ks[3], (16,), 16 * 3)),
        (u(ks[4], (16, 16, 3), 16 * 3), u(ks[5], (16,), 16 * 3)),
        (u(ks[6], (16, 16, 3), 16 * 3), u(ks[7], (16,), 16 * 3)),
        (u(ks[8], (24, 16, 16), 16 * 16), u(ks[9], (24,), 16 * 16)),
        (u(ks[10], (5, 24), 24), u(ks[11], (5,), 24)),
    )


if __name__ == "__main__":
    key = jax.random.PRNGKey(0)
    k_x, k_p, k_x2 = jax.random.split(key, 3)

    C_IN, L = 4, 60   # L=60 required so conv5's output length is 1 (24 fc features)
    params = init_params(k_p, C_IN)
    packed = pack_params(params)           # one-time host-side repacking

    # Small batch (primary example): single grid step, block == full batch pad.
    x_small = jax.random.normal(k_x, (2, C_IN, L), jnp.float32)
    out_small = jax.block_until_ready(oppnet_forward(x_small, packed))
    ref_small = oppnet_reference(x_small, params)
    np.testing.assert_allclose(np.asarray(out_small), np.asarray(ref_small),
                               rtol=2e-2, atol=2e-2)   # bf16 input rounding
    assert out_small.shape == (2, 5)

    # Larger, non-multiple batch: exercises multi-step grid + tail padding.
    x_big = jax.random.normal(k_x2, (617, C_IN, L), jnp.float32)
    out_big = jax.block_until_ready(oppnet_forward(x_big, packed))
    ref_big = oppnet_reference(x_big, params)
    np.testing.assert_allclose(np.asarray(out_big), np.asarray(ref_big),
                               rtol=2e-2, atol=2e-2)
    assert out_big.shape == (617, 5)

    print("KERNEL_OK")
</pallas_src>

<mosaic_0001>
module attributes {stable_mosaic.version = 11 : i64} {
  func.func @oppnet_kernel(%arg0: i32, %arg1: memref<8x256xbf16, #tpu.memory_space<vmem>>, %arg2: memref<256x960xf32, #tpu.memory_space<vmem>>, %arg3: memref<1x960xf32, #tpu.memory_space<vmem>>, %arg4: memref<960x320xf32, #tpu.memory_space<vmem>>, %arg5: memref<1x320xf32, #tpu.memory_space<vmem>>, %arg6: memref<320x288xf32, #tpu.memory_space<vmem>>, %arg7: memref<1x288xf32, #tpu.memory_space<vmem>>, %arg8: memref<288x256xf32, #tpu.memory_space<vmem>>, %arg9: memref<1x256xf32, #tpu.memory_space<vmem>>, %arg10: memref<256x24xf32, #tpu.memory_space<vmem>>, %arg11: memref<1x24xf32, #tpu.memory_space<vmem>>, %arg12: memref<24x128xf32, #tpu.memory_space<vmem>>, %arg13: memref<1x128xf32, #tpu.memory_space<vmem>>, %arg14: memref<8x128xf32, #tpu.memory_space<vmem>>) attributes {dimension_semantics = [#tpu.dimension_semantics<parallel>], iteration_bounds = array<i64: 1>, scalar_prefetch = 0 : i64, scratch_operands = 0 : i64, tpu.core_type = #tpu.core_type<tc>, window_params = [{transform_indices = @transform_0, window_bounds = array<i64: 8, 256>}, {pipeline_mode = #tpu.pipeline_mode<synchronous>, transform_indices = @transform_1, window_bounds = array<i64: 256, 960>}, {pipeline_mode = #tpu.pipeline_mode<synchronous>, transform_indices = @transform_2, window_bounds = array<i64: 1, 960>}, {pipeline_mode = #tpu.pipeline_mode<synchronous>, transform_indices = @transform_3, window_bounds = array<i64: 960, 320>}, {pipeline_mode = #tpu.pipeline_mode<synchronous>, transform_indices = @transform_4, window_bounds = array<i64: 1, 320>}, {pipeline_mode = #tpu.pipeline_mode<synchronous>, transform_indices = @transform_5, window_bounds = array<i64: 320, 288>}, {pipeline_mode = #tpu.pipeline_mode<synchronous>, transform_indices = @transform_6, window_bounds = array<i64: 1, 288>}, {pipeline_mode = #tpu.pipeline_mode<synchronous>, transform_indices = @transform_7, window_bounds = array<i64: 288, 256>}, {pipeline_mode = #tpu.pipeline_mode<synchronous>, transform_indices = @transform_8, window_bounds = array<i64: 1, 256>}, {pipeline_mode = #tpu.pipeline_mode<synchronous>, transform_indices = @transform_9, window_bounds = array<i64: 256, 24>}, {pipeline_mode = #tpu.pipeline_mode<synchronous>, transform_indices = @transform_10, window_bounds = array<i64: 1, 24>}, {pipeline_mode = #tpu.pipeline_mode<synchronous>, transform_indices = @transform_11, window_bounds = array<i64: 24, 128>}, {pipeline_mode = #tpu.pipeline_mode<synchronous>, transform_indices = @transform_12, window_bounds = array<i64: 1, 128>}, {transform_indices = @transform_13, window_bounds = array<i64: 8, 128>}]} {
    %c0 = arith.constant 0 : index
    %c0_0 = arith.constant 0 : index
    %0 = vector.load %arg1[%c0, %c0_0] : memref<8x256xbf16, #tpu.memory_space<vmem>>, vector<8x256xbf16>
    %c0_1 = arith.constant 0 : index
    %c0_2 = arith.constant 0 : index
    %1 = vector.load %arg2[%c0_1, %c0_2] : memref<256x960xf32, #tpu.memory_space<vmem>>, vector<256x960xf32>
    %cst = arith.constant dense<0.000000e+00> : vector<8x960xf32>
    %2 = tpu.matmul %0, %1, %cst {dimension_numbers = #tpu.dot_dimension_numbers<[1], [0], [0], [1], [0, 0, 1, 1], [], []>} : vector<8x256xbf16>, vector<256x960xf32>, vector<8x960xf32> -> vector<8x960xf32>
    %c0_3 = arith.constant 0 : index
    %c0_4 = arith.constant 0 : index
    %3 = vector.load %arg3[%c0_3, %c0_4] : memref<1x960xf32, #tpu.memory_space<vmem>>, vector<1x960xf32>
    %4 = vector.broadcast %3 : vector<1x960xf32> to vector<8x960xf32>
    %5 = arith.addf %2, %4 : vector<8x960xf32>
    %cst_5 = arith.constant 0.000000e+00 : f32
    %6 = vector.broadcast %cst_5 : f32 to vector<8x960xf32>
    %7 = arith.maximumf %5, %6 : vector<8x960xf32>
    %c0_6 = arith.constant 0 : index
    %c0_7 = arith.constant 0 : index
    %8 = vector.load %arg4[%c0_6, %c0_7] : memref<960x320xf32, #tpu.memory_space<vmem>>, vector<960x320xf32>
    %cst_8 = arith.constant dense<0.000000e+00> : vector<8x320xf32>
    %9 = tpu.matmul %7, %8, %cst_8 {dimension_numbers = #tpu.dot_dimension_numbers<[1], [0], [0], [1], [0, 0, 1, 1], [], []>} : vector<8x960xf32>, vector<960x320xf32>, vector<8x320xf32> -> vector<8x320xf32>
    %c0_9 = arith.constant 0 : index
    %c0_10 = arith.constant 0 : index
    %10 = vector.load %arg5[%c0_9, %c0_10] : memref<1x320xf32, #tpu.memory_space<vmem>>, vector<1x320xf32>
    %11 = vector.broadcast %10 : vector<1x320xf32> to vector<8x320xf32>
    %12 = arith.addf %9, %11 : vector<8x320xf32>
    %cst_11 = arith.constant 0.000000e+00 : f32
    %13 = vector.broadcast %cst_11 : f32 to vector<8x320xf32>
    %14 = arith.maximumf %12, %13 : vector<8x320xf32>
    %c0_12 = arith.constant 0 : index
    %c0_13 = arith.constant 0 : index
    %15 = vector.load %arg6[%c0_12, %c0_13] : memref<320x288xf32, #tpu.memory_space<vmem>>, vector<320x288xf32>
    %cst_14 = arith.constant dense<0.000000e+00> : vector<8x288xf32>
    %16 = tpu.matmul %14, %15, %cst_14 {dimension_numbers = #tpu.dot_dimension_numbers<[1], [0], [0], [1], [0, 0, 1, 1], [], []>} : vector<8x320xf32>, vector<320x288xf32>, vector<8x288xf32> -> vector<8x288xf32>
    %c0_15 = arith.constant 0 : index
    %c0_16 = arith.constant 0 : index
    %17 = vector.load %arg7[%c0_15, %c0_16] : memref<1x288xf32, #tpu.memory_space<vmem>>, vector<1x288xf32>
    %18 = vector.broadcast %17 : vector<1x288xf32> to vector<8x288xf32>
    %19 = arith.addf %16, %18 : vector<8x288xf32>
    %cst_17 = arith.constant 0.000000e+00 : f32
    %20 = vector.broadcast %cst_17 : f32 to vector<8x288xf32>
    %21 = arith.maximumf %19, %20 : vector<8x288xf32>
    %c0_18 = arith.constant 0 : index
    %c0_19 = arith.constant 0 : index
    %22 = vector.load %arg8[%c0_18, %c0_19] : memref<288x256xf32, #tpu.memory_space<vmem>>, vector<288x256xf32>
    %cst_20 = arith.constant dense<0.000000e+00> : vector<8x256xf32>
    %23 = tpu.matmul %21, %22, %cst_20 {dimension_numbers = #tpu.dot_dimension_numbers<[1], [0], [0], [1], [0, 0, 1, 1], [], []>} : vector<8x288xf32>, vector<288x256xf32>, vector<8x256xf32> -> vector<8x256xf32>
    %c0_21 = arith.constant 0 : index
    %c0_22 = arith.constant 0 : index
    %24 = vector.load %arg9[%c0_21, %c0_22] : memref<1x256xf32, #tpu.memory_space<vmem>>, vector<1x256xf32>
    %25 = vector.broadcast %24 : vector<1x256xf32> to vector<8x256xf32>
    %26 = arith.addf %23, %25 : vector<8x256xf32>
    %cst_23 = arith.constant 0.000000e+00 : f32
    %27 = vector.broadcast %cst_23 : f32 to vector<8x256xf32>
    %28 = arith.maximumf %26, %27 : vector<8x256xf32>
    %c0_24 = arith.constant 0 : index
    %c0_25 = arith.constant 0 : index
    %29 = vector.load %arg10[%c0_24, %c0_25] : memref<256x24xf32, #tpu.memory_space<vmem>>, vector<256x24xf32>
    %cst_26 = arith.constant dense<0.000000e+00> : vector<8x24xf32>
    %30 = tpu.matmul %28, %29, %cst_26 {dimension_numbers = #tpu.dot_dimension_numbers<[1], [0], [0], [1], [0, 0, 1, 1], [], []>} : vector<8x256xf32>, vector<256x24xf32>, vector<8x24xf32> -> vector<8x24xf32>
    %c0_27 = arith.constant 0 : index
    %c0_28 = arith.constant 0 : index
    %31 = vector.load %arg11[%c0_27, %c0_28] : memref<1x24xf32, #tpu.memory_space<vmem>>, vector<1x24xf32>
    %32 = vector.broadcast %31 : vector<1x24xf32> to vector<8x24xf32>
    %33 = arith.addf %30, %32 : vector<8x24xf32>
    %cst_29 = arith.constant 0.000000e+00 : f32
    %34 = vector.broadcast %cst_29 : f32 to vector<8x24xf32>
    %35 = arith.maximumf %33, %34 : vector<8x24xf32>
    %c0_30 = arith.constant 0 : index
    %c0_31 = arith.constant 0 : index
    %36 = vector.load %arg12[%c0_30, %c0_31] : memref<24x128xf32, #tpu.memory_space<vmem>>, vector<24x128xf32>
    %cst_32 = arith.constant dense<0.000000e+00> : vector<8x128xf32>
    %37 = tpu.matmul %35, %36, %cst_32 {dimension_numbers = #tpu.dot_dimension_numbers<[1], [0], [0], [1], [0, 0, 1, 1], [], []>} : vector<8x24xf32>, vector<24x128xf32>, vector<8x128xf32> -> vector<8x128xf32>
    %c0_33 = arith.constant 0 : index
    %c0_34 = arith.constant 0 : index
    %38 = vector.load %arg13[%c0_33, %c0_34] : memref<1x128xf32, #tpu.memory_space<vmem>>, vector<1x128xf32>
    %39 = vector.broadcast %38 : vector<1x128xf32> to vector<8x128xf32>
    %40 = arith.addf %37, %39 : vector<8x128xf32>
    %c0_35 = arith.constant 0 : index
    %c0_36 = arith.constant 0 : index
    %41 = vector.load %arg14[%c0_35, %c0_36] : memref<8x128xf32, #tpu.memory_space<vmem>>, vector<8x128xf32>
    tpu.vector_store %arg14[%c0_35, %c0_36], %40 {strides = array<i32>} : memref<8x128xf32, #tpu.memory_space<vmem>>, vector<8x128xf32>,
    return
  }
  func.func @transform_0(%arg0: i32) -> (i32, i32) {
    %c0_i32 = arith.constant 0 : i32
    %c0_i32_0 = arith.constant 0 : i32
    return %arg0, %c0_i32 : i32, i32
  }
  func.func @transform_1(%arg0: i32) -> (i32, i32) {
    %c0_i32 = arith.constant 0 : i32
    %c0_i32_0 = arith.constant 0 : i32
    %c0_i32_1 = arith.constant 0 : i32
    return %c0_i32, %c0_i32_0 : i32, i32
  }
  func.func @transform_2(%arg0: i32) -> (i32, i32) {
    %c0_i32 = arith.constant 0 : i32
    %c0_i32_0 = arith.constant 0 : i32
    %c0_i32_1 = arith.constant 0 : i32
    return %c0_i32, %c0_i32_0 : i32, i32
  }
  func.func @transform_3(%arg0: i32) -> (i32, i32) {
    %c0_i32 = arith.constant 0 : i32
    %c0_i32_0 = arith.constant 0 : i32
    %c0_i32_1 = arith.constant 0 : i32
    return %c0_i32, %c0_i32_0 : i32, i32
  }
  func.func @transform_4(%arg0: i32) -> (i32, i32) {
    %c0_i32 = arith.constant 0 : i32
    %c0_i32_0 = arith.constant 0 : i32
    %c0_i32_1 = arith.constant 0 : i32
    return %c0_i32, %c0_i32_0 : i32, i32
  }
  func.func @transform_5(%arg0: i32) -> (i32, i32) {
    %c0_i32 = arith.constant 0 : i32
    %c0_i32_0 = arith.constant 0 : i32
    %c0_i32_1 = arith.constant 0 : i32
    return %c0_i32, %c0_i32_0 : i32, i32
  }
  func.func @transform_6(%arg0: i32) -> (i32, i32) {
    %c0_i32 = arith.constant 0 : i32
    %c0_i32_0 = arith.constant 0 : i32
    %c0_i32_1 = arith.constant 0 : i32
    return %c0_i32, %c0_i32_0 : i32, i32
  }
  func.func @transform_7(%arg0: i32) -> (i32, i32) {
    %c0_i32 = arith.constant 0 : i32
    %c0_i32_0 = arith.constant 0 : i32
    %c0_i32_1 = arith.constant 0 : i32
    return %c0_i32, %c0_i32_0 : i32, i32
  }
  func.func @transform_8(%arg0: i32) -> (i32, i32) {
    %c0_i32 = arith.constant 0 : i32
    %c0_i32_0 = arith.constant 0 : i32
    %c0_i32_1 = arith.constant 0 : i32
    return %c0_i32, %c0_i32_0 : i32, i32
  }
  func.func @transform_9(%arg0: i32) -> (i32, i32) {
    %c0_i32 = arith.constant 0 : i32
    %c0_i32_0 = arith.constant 0 : i32
    %c0_i32_1 = arith.constant 0 : i32
    return %c0_i32, %c0_i32_0 : i32, i32
  }
  func.func @transform_10(%arg0: i32) -> (i32, i32) {
    %c0_i32 = arith.constant 0 : i32
    %c0_i32_0 = arith.constant 0 : i32
    %c0_i32_1 = arith.constant 0 : i32
    return %c0_i32, %c0_i32_0 : i32, i32
  }
  func.func @transform_11(%arg0: i32) -> (i32, i32) {
    %c0_i32 = arith.constant 0 : i32
    %c0_i32_0 = arith.constant 0 : i32
    %c0_i32_1 = arith.constant 0 : i32
    return %c0_i32, %c0_i32_0 : i32, i32
  }
  func.func @transform_12(%arg0: i32) -> (i32, i32) {
    %c0_i32 = arith.constant 0 : i32
    %c0_i32_0 = arith.constant 0 : i32
    %c0_i32_1 = arith.constant 0 : i32
    return %c0_i32, %c0_i32_0 : i32, i32
  }
  func.func @transform_13(%arg0: i32) -> (i32, i32) {
    %c0_i32 = arith.constant 0 : i32
    %c0_i32_0 = arith.constant 0 : i32
    return %arg0, %c0_i32 : i32, i32
  }
}

</mosaic_0001>

<bundles_post_ra>
// kernel: oppnet_forward.1
= control target key start
LH: loop header
LB: loop body
LE: loop exit
PB: predicated region body
PF: predicated region fallthrough
CT: control target
= control target key end

     0   :  { %vm1038_vm0 = vcmask 523264   ;;  %vm1917_vm1 = vcmask 261120   ;;  %vm2127_vm2 = vcmask 195584   ;;  %s4883_s1 = inlined_call_operand.vmem [shape: f32[256,960], index: 1, kind: input, shape index: {}]   ;;  %s4884_s0 = inlined_call_operand.vmem [shape: bf16[8,256], index: 0, kind: input, shape index: {}]   ;;  %s4885_s3 = inlined_call_operand.vmem [shape: f32[960,320], index: 3, kind: input, shape index: {}]   ;;  %s4886_s2 = inlined_call_operand.vmem [shape: f32[1,960], index: 2, kind: input, shape index: {}]   ;;  %s4887_s5 = inlined_call_operand.vmem [shape: f32[320,288], index: 5, kind: input, shape index: {}]   ;;  %s4888_s4 = inlined_call_operand.vmem [shape: f32[1,320], index: 4, kind: input, shape index: {}]   ;;  %s4889_s7 = inlined_call_operand.vmem [shape: f32[288,256], index: 7, kind: input, shape index: {}]   ;;  %s4890_s9 = inlined_call_operand.vmem [shape: f32[256,24], index: 9, kind: input, shape index: {}]   ;;  %s4891_s6 = inlined_call_operand.vmem [shape: f32[1,288], index: 6, kind: input, shape index: {}]   ;;  %s4892_s10 = inlined_call_operand.vmem [shape: f32[1,24], index: 10, kind: input, shape index: {}]   ;;  %s4893_s11 = inlined_call_operand.vmem [shape: f32[24,128], index: 11, kind: input, shape index: {}]   ;;  %s4894_s8 = inlined_call_operand.vmem [shape: f32[1,256], index: 8, kind: input, shape index: {}]   ;;  %s4895_s12 = inlined_call_operand.vmem [shape: f32[1,128], index: 12, kind: input, shape index: {}]   ;;  %s4896_s13 = inlined_call_operand.vmem [shape: f32[8,128], index: 13, kind: output, shape index: {}]  }
   0x1   :  { %v165_v0 = vld [vmem:[%s4883_s1 + $0x3c0] sm:$0xff]  ;;  %v166_v1 = vld [vmem:[%s4883_s1 + $0x3c8] sm:$0xff]  ;;  %v167_v63 = vld [vmem:[%s4883_s1 + $0x3d0] sm:$0xff] }
   0x2   :  { %v294_v2 = vld [vmem:[%s4883_s1 + $0x7c8] sm:$0xff]  ;;  %326 = vmatpush.msra.mxu0 %v165_v0  ;;  %368 = vmatpush.msra.mxu2 %v166_v1  ;;  %v157_v3 = vld [vmem:[%s4883_s1 + $0x380] sm:$0xff]  ;;  %v168_v0 = vld [vmem:[%s4883_s1 + $0x3d8] sm:$0xff] }
   0x3   :  { %v293_v4 = vld [vmem:[%s4883_s1 + $0x7c0] sm:$0xff]  ;;  %v158_v5 = vld [vmem:[%s4883_s1 + $0x388] sm:$0xff]  ;;  %389 = vmatpush.msra.mxu3 %v294_v2  ;;  %v296_v1 = vld [vmem:[%s4883_s1 + $0x7d8] sm:$0xff] }
   0x4   :  { %347 = vmatpush.msra.mxu1 %v293_v4  ;;  %v286_v6 = vld [vmem:[%s4883_s1 + $0x788] sm:$0xff]  ;;  %v149_v7 = vld [vmem:[%s4883_s1 + $0x340] sm:$0xff]  ;;  %327 = vmatpush.msra.mxu0 %v157_v3  ;;  %v159_v3 = vld [vmem:[%s4883_s1 + $0x390] sm:$0xff] }
   0x5   :  { %v285_v8 = vld [vmem:[%s4883_s1 + $0x780] sm:$0xff]  ;;  %369 = vmatpush.msra.mxu2 %v158_v5  ;;  %v150_v9 = vld [vmem:[%s4883_s1 + $0x348] sm:$0xff]  ;;  %390 = vmatpush.msra.mxu3 %v286_v6  ;;  %v295_v4 = vld [vmem:[%s4883_s1 + $0x7d0] sm:$0xff] }
   0x6   :  { %v278_v10 = vld [vmem:[%s4883_s1 + $0x748] sm:$0xff]  ;;  %348 = vmatpush.msra.mxu1 %v285_v8  ;;  %v141_v11 = vld [vmem:[%s4883_s1 + $0x300] sm:$0xff]  ;;  %328 = vmatpush.msra.mxu0 %v149_v7  ;;  %v160_v5 = vld [vmem:[%s4883_s1 + $0x398] sm:$0xff] }
   0x7   :  { %v277_v12 = vld [vmem:[%s4883_s1 + $0x740] sm:$0xff]  ;;  %v142_v13 = vld [vmem:[%s4883_s1 + $0x308] sm:$0xff]  ;;  %370 = vmatpush.msra.mxu2 %v150_v9  ;;  %391 = vmatpush.msra.mxu3 %v278_v10  ;;  %v288_v6 = vld [vmem:[%s4883_s1 + $0x798] sm:$0xff] }
   0x8   :  { %v270_v14 = vld [vmem:[%s4883_s1 + $0x708] sm:$0xff]  ;;  %v269_v15 = vld [vmem:[%s4883_s1 + $0x700] sm:$0xff]  ;;  %349 = vmatpush.msra.mxu1 %v277_v12  ;;  %329 = vmatpush.msra.mxu0 %v141_v11  ;;  %v151_v7 = vld [vmem:[%s4883_s1 + $0x350] sm:$0xff] }
   0x9   :  { %v133_v16 = vld [vmem:[%s4883_s1 + $0x2c0] sm:$0xff]  ;;  %v134_v17 = vld [vmem:[%s4883_s1 + $0x2c8] sm:$0xff]  ;;  %371 = vmatpush.msra.mxu2 %v142_v13  ;;  %392 = vmatpush.msra.mxu3 %v270_v14  ;;  %v287_v8 = vld [vmem:[%s4883_s1 + $0x790] sm:$0xff] }
   0xa   :  { %v262_v18 = vld [vmem:[%s4883_s1 + $0x6c8] sm:$0xff]  ;;  %v261_v19 = vld [vmem:[%s4883_s1 + $0x6c0] sm:$0xff]  ;;  %350 = vmatpush.msra.mxu1 %v269_v15  ;;  %330 = vmatpush.msra.mxu0 %v133_v16  ;;  %v152_v9 = vld [vmem:[%s4883_s1 + $0x358] sm:$0xff] }
   0xb   :  { %v125_v20 = vld [vmem:[%s4883_s1 + $0x280] sm:$0xff]  ;;  %v126_v21 = vld [vmem:[%s4883_s1 + $0x288] sm:$0xff]  ;;  %372 = vmatpush.msra.mxu2 %v134_v17  ;;  %393 = vmatpush.msra.mxu3 %v262_v18  ;;  %v280_v10 = vld [vmem:[%s4883_s1 + $0x758] sm:$0xff] }
   0xc   :  { %v254_v22 = vld [vmem:[%s4883_s1 + $0x688] sm:$0xff]  ;;  %v253_v23 = vld [vmem:[%s4883_s1 + $0x680] sm:$0xff]  ;;  %351 = vmatpush.msra.mxu1 %v261_v19  ;;  %331 = vmatpush.msra.mxu0 %v125_v20  ;;  %v143_v11 = vld [vmem:[%s4883_s1 + $0x310] sm:$0xff] }
   0xd   :  { %v117_v24 = vld [vmem:[%s4883_s1 + $0x240] sm:$0xff]  ;;  %v118_v25 = vld [vmem:[%s4883_s1 + $0x248] sm:$0xff]  ;;  %373 = vmatpush.msra.mxu2 %v126_v21  ;;  %394 = vmatpush.msra.mxu3 %v254_v22  ;;  %v279_v12 = vld [vmem:[%s4883_s1 + $0x750] sm:$0xff] }
   0xe   :  { %v246_v26 = vld [vmem:[%s4883_s1 + $0x648] sm:$0xff]  ;;  %v245_v27 = vld [vmem:[%s4883_s1 + $0x640] sm:$0xff]  ;;  %352 = vmatpush.msra.mxu1 %v253_v23  ;;  %332 = vmatpush.msra.mxu0 %v117_v24  ;;  %v144_v13 = vld [vmem:[%s4883_s1 + $0x318] sm:$0xff] }
   0xf   :  { %v109_v28 = vld [vmem:[%s4883_s1 + $0x200] sm:$0xff]  ;;  %v110_v29 = vld [vmem:[%s4883_s1 + $0x208] sm:$0xff]  ;;  %374 = vmatpush.msra.mxu2 %v118_v25  ;;  %395 = vmatpush.msra.mxu3 %v246_v26  ;;  %v272_v14 = vld [vmem:[%s4883_s1 + $0x718] sm:$0xff] }
  0x10   :  { %v238_v30 = vld [vmem:[%s4883_s1 + $0x608] sm:$0xff]  ;;  %v237_v31 = vld [vmem:[%s4883_s1 + $0x600] sm:$0xff]  ;;  %353 = vmatpush.msra.mxu1 %v245_v27  ;;  %333 = vmatpush.msra.mxu0 %v109_v28  ;;  %v135_v15 = vld [vmem:[%s4883_s1 + $0x2d0] sm:$0xff] }
  0x11   :  { %v101_v32 = vld [vmem:[%s4883_s1 + $0x1c0] sm:$0xff]  ;;  %v102_v33 = vld [vmem:[%s4883_s1 + $0x1c8] sm:$0xff]  ;;  %375 = vmatpush.msra.mxu2 %v110_v29  ;;  %396 = vmatpush.msra.mxu3 %v238_v30  ;;  %v271_v17 = vld [vmem:[%s4883_s1 + $0x710] sm:$0xff] }
  0x12   :  { %v230_v34 = vld [vmem:[%s4883_s1 + $0x5c8] sm:$0xff]  ;;  %v229_v35 = vld [vmem:[%s4883_s1 + $0x5c0] sm:$0xff]  ;;  %354 = vmatpush.msra.mxu1 %v237_v31  ;;  %334 = vmatpush.msra.mxu0 %v101_v32  ;;  %v136_v18 = vld [vmem:[%s4883_s1 + $0x2d8] sm:$0xff] }
  0x13   :  { %v93_v36 = vld [vmem:[%s4883_s1 + $0x180] sm:$0xff]  ;;  %v94_v37 = vld [vmem:[%s4883_s1 + $0x188] sm:$0xff]  ;;  %376 = vmatpush.msra.mxu2 %v102_v33  ;;  %397 = vmatpush.msra.mxu3 %v230_v34  ;;  %v264_v19 = vld [vmem:[%s4883_s1 + $0x6d8] sm:$0xff] }
  0x14   :  { %v222_v38 = vld [vmem:[%s4883_s1 + $0x588] sm:$0xff]  ;;  %v221_v39 = vld [vmem:[%s4883_s1 + $0x580] sm:$0xff]  ;;  %355 = vmatpush.msra.mxu1 %v229_v35  ;;  %335 = vmatpush.msra.mxu0 %v93_v36  ;;  %v127_v20 = vld [vmem:[%s4883_s1 + $0x290] sm:$0xff] }
  0x15   :  { %v85_v40 = vld [vmem:[%s4883_s1 + $0x140] sm:$0xff]  ;;  %v86_v41 = vld [vmem:[%s4883_s1 + $0x148] sm:$0xff]  ;;  %377 = vmatpush.msra.mxu2 %v94_v37  ;;  %398 = vmatpush.msra.mxu3 %v222_v38  ;;  %v263_v21 = vld [vmem:[%s4883_s1 + $0x6d0] sm:$0xff] }
  0x16   :  { %v214_v42 = vld [vmem:[%s4883_s1 + $0x548] sm:$0xff]  ;;  %v213_v43 = vld [vmem:[%s4883_s1 + $0x540] sm:$0xff]  ;;  %356 = vmatpush.msra.mxu1 %v221_v39  ;;  %336 = vmatpush.msra.mxu0 %v85_v40  ;;  %v128_v22 = vld [vmem:[%s4883_s1 + $0x298] sm:$0xff] }
  0x17   :  { %v77_v44 = vld [vmem:[%s4883_s1 + $0x100] sm:$0xff]  ;;  %v78_v45 = vld [vmem:[%s4883_s1 + $0x108] sm:$0xff]  ;;  %378 = vmatpush.msra.mxu2 %v86_v41  ;;  %399 = vmatpush.msra.mxu3 %v214_v42  ;;  %v256_v24 = vld [vmem:[%s4883_s1 + $0x698] sm:$0xff] }
  0x18   :  { %v206_v46 = vld [vmem:[%s4883_s1 + $0x508] sm:$0xff]  ;;  %v205_v47 = vld [vmem:[%s4883_s1 + $0x500] sm:$0xff]  ;;  %357 = vmatpush.msra.mxu1 %v213_v43  ;;  %337 = vmatpush.msra.mxu0 %v77_v44  ;;  %v119_v25 = vld [vmem:[%s4883_s1 + $0x250] sm:$0xff] }
  0x19   :  { %v69_v48 = vld [vmem:[%s4883_s1 + $0xc0] sm:$0xff]  ;;  %v70_v49 = vld [vmem:[%s4883_s1 + $0xc8] sm:$0xff]  ;;  %379 = vmatpush.msra.mxu2 %v78_v45  ;;  %400 = vmatpush.msra.mxu3 %v206_v46  ;;  %v255_v26 = vld [vmem:[%s4883_s1 + $0x690] sm:$0xff] }
  0x1a   :  { %v198_v50 = vld [vmem:[%s4883_s1 + $0x4c8] sm:$0xff]  ;;  %v197_v51 = vld [vmem:[%s4883_s1 + $0x4c0] sm:$0xff]  ;;  %358 = vmatpush.msra.mxu1 %v205_v47  ;;  %338 = vmatpush.msra.mxu0 %v69_v48  ;;  %v120_v27 = vld [vmem:[%s4883_s1 + $0x258] sm:$0xff] }
  0x1b   :  { %v61_v52 = vld [vmem:[%s4883_s1 + $0x80] sm:$0xff]  ;;  %v62_v53 = vld [vmem:[%s4883_s1 + $0x88] sm:$0xff]  ;;  %380 = vmatpush.msra.mxu2 %v70_v49  ;;  %401 = vmatpush.msra.mxu3 %v198_v50  ;;  %v248_v28 = vld [vmem:[%s4883_s1 + $0x658] sm:$0xff] }
  0x1c   :  { %v190_v54 = vld [vmem:[%s4883_s1 + $0x488] sm:$0xff]  ;;  %v189_v55 = vld [vmem:[%s4883_s1 + $0x480] sm:$0xff]  ;;  %359 = vmatpush.msra.mxu1 %v197_v51  ;;  %339 = vmatpush.msra.mxu0 %v61_v52  ;;  %v111_v29 = vld [vmem:[%s4883_s1 + $0x210] sm:$0xff] }
  0x1d   :  { %v53_v56 = vld [vmem:[%s4883_s1 + $0x40] sm:$0xff]  ;;  %v54_v57 = vld [vmem:[%s4883_s1 + $0x48] sm:$0xff]  ;;  %381 = vmatpush.msra.mxu2 %v62_v53  ;;  %402 = vmatpush.msra.mxu3 %v190_v54  ;;  %v247_v31 = vld [vmem:[%s4883_s1 + $0x650] sm:$0xff] }
  0x1e   :  { %v182_v58 = vld [vmem:[%s4883_s1 + $0x448] sm:$0xff]  ;;  %v181_v59 = vld [vmem:[%s4883_s1 + $0x440] sm:$0xff]  ;;  %360 = vmatpush.msra.mxu1 %v189_v55  ;;  %340 = vmatpush.msra.mxu0 %v53_v56  ;;  %v112_v32 = vld [vmem:[%s4883_s1 + $0x218] sm:$0xff] }
  0x1f   :  { %v45_v60 = vld [vmem:[%s4883_s1] sm:$0xff]  ;;  %v46_v61 = vld [vmem:[%s4883_s1 + $0x8] sm:$0xff]  ;;  %382 = vmatpush.msra.mxu2 %v54_v57  ;;  %403 = vmatpush.msra.mxu3 %v182_v58  ;;  %v240_v34 = vld [vmem:[%s4883_s1 + $0x618] sm:$0xff] }
  0x20   :  { %v174_v62 = vld [vmem:[%s4883_s1 + $0x408] sm:$0xff]  ;;  %361 = vmatpush.msra.mxu1 %v181_v59  ;;  %341 = vmatpush.msra.mxu0 %v45_v60  ;;  %v173_v2 = vld [vmem:[%s4883_s1 + $0x400] sm:$0xff]  ;;  %v103_v35 = vld [vmem:[%s4883_s1 + $0x1d0] sm:$0xff] }
  0x21   :  { %383 = vmatpush.msra.mxu2 %v46_v61  ;;  %404 = vmatpush.msra.mxu3 %v174_v62  ;;  %v44_v16 = vld [vmem:[%s4884_s0] sm:$0xff]  ;;  %v239_v36 = vld [vmem:[%s4883_s1 + $0x610] sm:$0xff]  ;;  %v104_v37 = vld [vmem:[%s4883_s1 + $0x1d8] sm:$0xff] }
  0x22   :  { %410 = vmatpush.msrb.mxu0 %v167_v63  ;;  %362 = vmatpush.msra.mxu1 %v173_v2  ;;  %v320_v23 = vunpack.c.l.b16 %v44_v16  ;;  %v321_v30 = vunpack.c.h.b16 %v44_v16  ;;  %v232_v38 = vld [vmem:[%s4883_s1 + $0x5d8] sm:$0xff]  ;;  %v95_v40 = vld [vmem:[%s4883_s1 + $0x190] sm:$0xff]  ;;  %v145_v16 = vld [vmem:[%s4883_s1 + $0x320] sm:$0xff] }
  0x23   :  { %452 = vmatpush.msrb.mxu2 %v168_v0  ;;  %473 = vmatpush.msrb.mxu3 %v296_v1  ;;  %v231_v41 = vld [vmem:[%s4883_s1 + $0x5d0] sm:$0xff]  ;;  %v96_v42 = vld [vmem:[%s4883_s1 + $0x198] sm:$0xff] }
  0x24   :  { %411 = vmatpush.msrb.mxu0 %v159_v3  ;;  %431 = vmatpush.msrb.mxu1 %v295_v4  ;;  %v2522_v33 = vpack.c.b16 %v320_v23, %v320_v23  ;;  %v2539_v39 = vpack.c.b16 %v321_v30, %v321_v30  ;;  %v224_v43 = vld [vmem:[%s4883_s1 + $0x598] sm:$0xff]  ;;  %v87_v44 = vld [vmem:[%s4883_s1 + $0x150] sm:$0xff]  ;;  %v169_v4 = vld [vmem:[%s4883_s1 + $0x3e0] sm:$0xff] }
  0x25   :  { %453 = vmatpush.msrb.mxu2 %v160_v5  ;;  %474 = vmatpush.msrb.mxu3 %v288_v6  ;;  %v223_v45 = vld [vmem:[%s4883_s1 + $0x590] sm:$0xff]  ;;  %v88_v46 = vld [vmem:[%s4883_s1 + $0x158] sm:$0xff]  ;;  %v170_v5 = vld [vmem:[%s4883_s1 + $0x3e8] sm:$0xff] }
  0x26   :  { %412 = vmatpush.msrb.mxu0 %v151_v7  ;;  %432 = vmatpush.msrb.mxu1 %v287_v8  ;;  %v216_v47 = vld [vmem:[%s4883_s1 + $0x558] sm:$0xff]  ;;  %v79_v48 = vld [vmem:[%s4883_s1 + $0x110] sm:$0xff]  ;;  %v298_v6 = vld [vmem:[%s4883_s1 + $0x7e8] sm:$0xff] }
  0x27   :  { %454 = vmatpush.msrb.mxu2 %v152_v9  ;;  %475 = vmatpush.msrb.mxu3 %v280_v10  ;;  %v215_v49 = vld [vmem:[%s4883_s1 + $0x550] sm:$0xff]  ;;  %v80_v50 = vld [vmem:[%s4883_s1 + $0x118] sm:$0xff]  ;;  %v161_v8 = vld [vmem:[%s4883_s1 + $0x3a0] sm:$0xff] }
  0x28   :  { %413 = vmatpush.msrb.mxu0 %v143_v11  ;;  %433 = vmatpush.msrb.mxu1 %v279_v12  ;;  %v208_v51 = vld [vmem:[%s4883_s1 + $0x518] sm:$0xff]  ;;  %v71_v52 = vld [vmem:[%s4883_s1 + $0xd0] sm:$0xff]  ;;  %v297_v9 = vld [vmem:[%s4883_s1 + $0x7e0] sm:$0xff] }
  0x29   :  { %455 = vmatpush.msrb.mxu2 %v144_v13  ;;  %476 = vmatpush.msrb.mxu3 %v272_v14  ;;  %v207_v53 = vld [vmem:[%s4883_s1 + $0x510] sm:$0xff]  ;;  %v72_v54 = vld [vmem:[%s4883_s1 + $0xd8] sm:$0xff]  ;;  %v162_v10 = vld [vmem:[%s4883_s1 + $0x3a8] sm:$0xff] }
  0x2a   :  { %414 = vmatpush.msrb.mxu0 %v135_v15  ;;  %434 = vmatpush.msrb.mxu1 %v271_v17  ;;  %v200_v55 = vld [vmem:[%s4883_s1 + $0x4d8] sm:$0xff]  ;;  %v63_v56 = vld [vmem:[%s4883_s1 + $0x90] sm:$0xff]  ;;  %v290_v11 = vld [vmem:[%s4883_s1 + $0x7a8] sm:$0xff] }
  0x2b   :  { %456 = vmatpush.msrb.mxu2 %v136_v18  ;;  %477 = vmatpush.msrb.mxu3 %v264_v19  ;;  %v199_v57 = vld [vmem:[%s4883_s1 + $0x4d0] sm:$0xff]  ;;  %v64_v58 = vld [vmem:[%s4883_s1 + $0x98] sm:$0xff]  ;;  %v153_v12 = vld [vmem:[%s4883_s1 + $0x360] sm:$0xff] }
  0x2c   :  { %415 = vmatpush.msrb.mxu0 %v127_v20  ;;  %435 = vmatpush.msrb.mxu1 %v263_v21  ;;  %v192_v59 = vld [vmem:[%s4883_s1 + $0x498] sm:$0xff]  ;;  %v55_v60 = vld [vmem:[%s4883_s1 + $0x50] sm:$0xff]  ;;  %v289_v13 = vld [vmem:[%s4883_s1 + $0x7a0] sm:$0xff] }
  0x2d   :  { %457 = vmatpush.msrb.mxu2 %v128_v22  ;;  %478 = vmatpush.msrb.mxu3 %v256_v24  ;;  %v191_v61 = vld [vmem:[%s4883_s1 + $0x490] sm:$0xff]  ;;  %v56_v62 = vld [vmem:[%s4883_s1 + $0x58] sm:$0xff]  ;;  %v154_v14 = vld [vmem:[%s4883_s1 + $0x368] sm:$0xff] }
  0x2e   :  { %416 = vmatpush.msrb.mxu0 %v119_v25  ;;  %436 = vmatpush.msrb.mxu1 %v255_v26  ;;  %v184_v63 = vld [vmem:[%s4883_s1 + $0x458] sm:$0xff]  ;;  %v47_v0 = vld [vmem:[%s4883_s1 + $0x10] sm:$0xff]  ;;  %v282_v15 = vld [vmem:[%s4883_s1 + $0x768] sm:$0xff] }
  0x2f   :  { %458 = vmatpush.msrb.mxu2 %v120_v27  ;;  %479 = vmatpush.msrb.mxu3 %v248_v28  ;;  %v183_v1 = vld [vmem:[%s4883_s1 + $0x450] sm:$0xff]  ;;  %v48_v2 = vld [vmem:[%s4883_s1 + $0x18] sm:$0xff]  ;;  %v281_v17 = vld [vmem:[%s4883_s1 + $0x760] sm:$0xff] }
  0x30   :  { %417 = vmatpush.msrb.mxu0 %v111_v29  ;;  %437 = vmatpush.msrb.mxu1 %v247_v31  ;;  %v176_v3 = vld [vmem:[%s4883_s1 + $0x418] sm:$0xff]  ;;  %v175_v7 = vld [vmem:[%s4883_s1 + $0x410] sm:$0xff]  ;;  %v146_v18 = vld [vmem:[%s4883_s1 + $0x328] sm:$0xff] }
  0x31   :  { %459 = vmatpush.msrb.mxu2 %v112_v32  ;;  %480 = vmatpush.msrb.mxu3 %v240_v34  ;;  %v274_v19 = vld [vmem:[%s4883_s1 + $0x728] sm:$0xff]  ;;  %v137_v20 = vld [vmem:[%s4883_s1 + $0x2e0] sm:$0xff] }
  0x32   :  { %384 = vmatmul.bf16.vlgmr.msra.gmra.mxu2 %v2522_v33  ;;  %418 = vmatpush.msrb.mxu0 %v103_v35  ;;  %v273_v21 = vld [vmem:[%s4883_s1 + $0x720] sm:$0xff]  ;;  %v138_v22 = vld [vmem:[%s4883_s1 + $0x2e8] sm:$0xff] }
  0x33   :  { %438 = vmatpush.msrb.mxu1 %v239_v36  ;;  %460 = vmatpush.msrb.mxu2 %v104_v37  ;;  %v266_v23 = vld [vmem:[%s4883_s1 + $0x6e8] sm:$0xff]  ;;  %v129_v24 = vld [vmem:[%s4883_s1 + $0x2a0] sm:$0xff] }
  0x34   :  { %481 = vmatpush.msrb.mxu3 %v232_v38  ;;  %342 = vmatmul.bf16.vlgmr.msra.gmra.mxu0 %v2522_v33  ;;  %v265_v25 = vld [vmem:[%s4883_s1 + $0x6e0] sm:$0xff]  ;;  %v130_v26 = vld [vmem:[%s4883_s1 + $0x2a8] sm:$0xff] }
  0x35   :  { %405 = vmatmul.bf16.vlgmr.msra.gmra.mxu3 %v2539_v39  ;;  %419 = vmatpush.msrb.mxu0 %v95_v40  ;;  %v258_v27 = vld [vmem:[%s4883_s1 + $0x6a8] sm:$0xff]  ;;  %v121_v28 = vld [vmem:[%s4883_s1 + $0x260] sm:$0xff] }
  0x36   :  { %439 = vmatpush.msrb.mxu1 %v231_v41  ;;  %461 = vmatpush.msrb.mxu2 %v96_v42  ;;  %v257_v29 = vld [vmem:[%s4883_s1 + $0x6a0] sm:$0xff]  ;;  %v122_v30 = vld [vmem:[%s4883_s1 + $0x268] sm:$0xff] }
  0x37   :  { %482 = vmatpush.msrb.mxu3 %v224_v43  ;;  %363 = vmatmul.bf16.vlgmr.msra.gmra.mxu1 %v2539_v39  ;;  %v250_v31 = vld [vmem:[%s4883_s1 + $0x668] sm:$0xff]  ;;  %v113_v32 = vld [vmem:[%s4883_s1 + $0x220] sm:$0xff] }
  0x38   :  { %420 = vmatpush.msrb.mxu0 %v87_v44  ;;  %440 = vmatpush.msrb.mxu1 %v223_v45  ;;  %v249_v34 = vld [vmem:[%s4883_s1 + $0x660] sm:$0xff]  ;;  %v114_v35 = vld [vmem:[%s4883_s1 + $0x228] sm:$0xff] }
  0x39   :  { %462 = vmatpush.msrb.mxu2 %v88_v46  ;;  %483 = vmatpush.msrb.mxu3 %v216_v47  ;;  %v242_v36 = vld [vmem:[%s4883_s1 + $0x628] sm:$0xff]  ;;  %v105_v37 = vld [vmem:[%s4883_s1 + $0x1e0] sm:$0xff] }
  0x3a   :  { %421 = vmatpush.msrb.mxu0 %v79_v48  ;;  %441 = vmatpush.msrb.mxu1 %v215_v49  ;;  %v241_v38 = vld [vmem:[%s4883_s1 + $0x620] sm:$0xff]  ;;  %v106_v40 = vld [vmem:[%s4883_s1 + $0x1e8] sm:$0xff] }
  0x3b   :  { %463 = vmatpush.msrb.mxu2 %v80_v50  ;;  %484 = vmatpush.msrb.mxu3 %v208_v51  ;;  %v234_v41 = vld [vmem:[%s4883_s1 + $0x5e8] sm:$0xff]  ;;  %v97_v42 = vld [vmem:[%s4883_s1 + $0x1a0] sm:$0xff] }
  0x3c   :  { %422 = vmatpush.msrb.mxu0 %v71_v52  ;;  %442 = vmatpush.msrb.mxu1 %v207_v53  ;;  %v233_v43 = vld [vmem:[%s4883_s1 + $0x5e0] sm:$0xff]  ;;  %v98_v44 = vld [vmem:[%s4883_s1 + $0x1a8] sm:$0xff] }
  0x3d   :  { %464 = vmatpush.msrb.mxu2 %v72_v54  ;;  %485 = vmatpush.msrb.mxu3 %v200_v55  ;;  %v226_v45 = vld [vmem:[%s4883_s1 + $0x5a8] sm:$0xff]  ;;  %v89_v46 = vld [vmem:[%s4883_s1 + $0x160] sm:$0xff] }
  0x3e   :  { %423 = vmatpush.msrb.mxu0 %v63_v56  ;;  %443 = vmatpush.msrb.mxu1 %v199_v57  ;;  %v225_v47 = vld [vmem:[%s4883_s1 + $0x5a0] sm:$0xff]  ;;  %v90_v48 = vld [vmem:[%s4883_s1 + $0x168] sm:$0xff] }
  0x3f   :  { %465 = vmatpush.msrb.mxu2 %v64_v58  ;;  %486 = vmatpush.msrb.mxu3 %v192_v59  ;;  %v218_v49 = vld [vmem:[%s4883_s1 + $0x568] sm:$0xff]  ;;  %v81_v50 = vld [vmem:[%s4883_s1 + $0x120] sm:$0xff] }
  0x40   :  { %424 = vmatpush.msrb.mxu0 %v55_v60  ;;  %444 = vmatpush.msrb.mxu1 %v191_v61  ;;  %v217_v51 = vld [vmem:[%s4883_s1 + $0x560] sm:$0xff]  ;;  %v82_v52 = vld [vmem:[%s4883_s1 + $0x128] sm:$0xff] }
  0x41   :  { %466 = vmatpush.msrb.mxu2 %v56_v62  ;;  %487 = vmatpush.msrb.mxu3 %v184_v63  ;;  %v210_v53 = vld [vmem:[%s4883_s1 + $0x528] sm:$0xff]  ;;  %v73_v54 = vld [vmem:[%s4883_s1 + $0xe0] sm:$0xff] }
  0x42   :  { %425 = vmatpush.msrb.mxu0 %v47_v0  ;;  %445 = vmatpush.msrb.mxu1 %v183_v1  ;;  %v209_v55 = vld [vmem:[%s4883_s1 + $0x520] sm:$0xff]  ;;  %v74_v56 = vld [vmem:[%s4883_s1 + $0xe8] sm:$0xff] }
  0x43   :  { %467 = vmatpush.msrb.mxu2 %v48_v2  ;;  %488 = vmatpush.msrb.mxu3 %v176_v3  ;;  %v202_v57 = vld [vmem:[%s4883_s1 + $0x4e8] sm:$0xff]  ;;  %v65_v58 = vld [vmem:[%s4883_s1 + $0xa0] sm:$0xff] }
  0x44   :  { %468 = vmatmul.bf16.vlgmr.msrb.gmra.mxu2 %v2522_v33  ;;  %494 = vmatpush.msra.mxu0 %v169_v4  ;;  %v201_v59 = vld [vmem:[%s4883_s1 + $0x4e0] sm:$0xff]  ;;  %v66_v60 = vld [vmem:[%s4883_s1 + $0xa8] sm:$0xff] }
  0x45   :  { %536 = vmatpush.msra.mxu2 %v170_v5  ;;  %557 = vmatpush.msra.mxu3 %v298_v6  ;;  %v194_v61 = vld [vmem:[%s4883_s1 + $0x4a8] sm:$0xff]  ;;  %v57_v62 = vld [vmem:[%s4883_s1 + $0x60] sm:$0xff]  ;;  %v171_v6 = vld [vmem:[%s4883_s1 + $0x3f0] sm:$0xff] }
  0x46   :  { %446 = vmatpush.msrb.mxu1 %v175_v7  ;;  %426 = vmatmul.bf16.vlgmr.msrb.gmra.mxu0 %v2522_v33  ;;  %v193_v63 = vld [vmem:[%s4883_s1 + $0x4a0] sm:$0xff]  ;;  %v58_v0 = vld [vmem:[%s4883_s1 + $0x68] sm:$0xff]  ;;  %v172_v7 = vld [vmem:[%s4883_s1 + $0x3f8] sm:$0xff] }
  0x47   :  { %489 = vmatmul.bf16.vlgmr.msrb.gmra.mxu3 %v2539_v39  ;;  %495 = vmatpush.msra.mxu0 %v161_v8  ;;  %v186_v1 = vld [vmem:[%s4883_s1 + $0x468] sm:$0xff]  ;;  %v49_v2 = vld [vmem:[%s4883_s1 + $0x20] sm:$0xff]  ;;  %v300_v8 = vld [vmem:[%s4883_s1 + $0x7f8] sm:$0xff] }
  0x48   :  { %515 = vmatpush.msra.mxu1 %v297_v9  ;;  %537 = vmatpush.msra.mxu2 %v162_v10  ;;  %v185_v3 = vld [vmem:[%s4883_s1 + $0x460] sm:$0xff]  ;;  %v50_v4 = vld [vmem:[%s4883_s1 + $0x28] sm:$0xff]  ;;  %v163_v10 = vld [vmem:[%s4883_s1 + $0x3b0] sm:$0xff] }
  0x49   :  { %558 = vmatpush.msra.mxu3 %v290_v11  ;;  %447 = vmatmul.bf16.vlgmr.msrb.gmra.mxu1 %v2539_v39  ;;  %v178_v5 = vld [vmem:[%s4883_s1 + $0x428] sm:$0xff]  ;;  %v177_v9 = vld [vmem:[%s4883_s1 + $0x420] sm:$0xff]  ;;  %v299_v11 = vld [vmem:[%s4883_s1 + $0x7f0] sm:$0xff] }
  0x4a   :  { %496 = vmatpush.msra.mxu0 %v153_v12  ;;  %516 = vmatpush.msra.mxu1 %v289_v13  ;;  %v164_v12 = vld [vmem:[%s4883_s1 + $0x3b8] sm:$0xff] }
  0x4b   :  { %538 = vmatpush.msra.mxu2 %v154_v14  ;;  %559 = vmatpush.msra.mxu3 %v282_v15  ;;  %v292_v13 = vld [vmem:[%s4883_s1 + $0x7b8] sm:$0xff]  ;;  %v155_v14 = vld [vmem:[%s4883_s1 + $0x370] sm:$0xff] }
  0x4c   :  { %497 = vmatpush.msra.mxu0 %v145_v16  ;;  %517 = vmatpush.msra.mxu1 %v281_v17  ;;  %v291_v15 = vld [vmem:[%s4883_s1 + $0x7b0] sm:$0xff]  ;;  %v156_v16 = vld [vmem:[%s4883_s1 + $0x378] sm:$0xff] }
  0x4d   :  { %539 = vmatpush.msra.mxu2 %v146_v18  ;;  %560 = vmatpush.msra.mxu3 %v274_v19  ;;  %v284_v17 = vld [vmem:[%s4883_s1 + $0x778] sm:$0xff]  ;;  %v147_v18 = vld [vmem:[%s4883_s1 + $0x330] sm:$0xff] }
  0x4e   :  { %498 = vmatpush.msra.mxu0 %v137_v20  ;;  %518 = vmatpush.msra.mxu1 %v273_v21  ;;  %v283_v19 = vld [vmem:[%s4883_s1 + $0x770] sm:$0xff]  ;;  %v148_v20 = vld [vmem:[%s4883_s1 + $0x338] sm:$0xff] }
  0x4f   :  { %540 = vmatpush.msra.mxu2 %v138_v22  ;;  %561 = vmatpush.msra.mxu3 %v266_v23  ;;  %v276_v21 = vld [vmem:[%s4883_s1 + $0x738] sm:$0xff]  ;;  %v139_v22 = vld [vmem:[%s4883_s1 + $0x2f0] sm:$0xff] }
  0x50   :  { %499 = vmatpush.msra.mxu0 %v129_v24  ;;  %519 = vmatpush.msra.mxu1 %v265_v25  ;;  %v275_v23 = vld [vmem:[%s4883_s1 + $0x730] sm:$0xff]  ;;  %v140_v24 = vld [vmem:[%s4883_s1 + $0x2f8] sm:$0xff] }
  0x51   :  { %541 = vmatpush.msra.mxu2 %v130_v26  ;;  %562 = vmatpush.msra.mxu3 %v258_v27  ;;  %v268_v25 = vld [vmem:[%s4883_s1 + $0x6f8] sm:$0xff]  ;;  %v131_v26 = vld [vmem:[%s4883_s1 + $0x2b0] sm:$0xff] }
  0x52   :  { %500 = vmatpush.msra.mxu0 %v121_v28  ;;  %520 = vmatpush.msra.mxu1 %v257_v29  ;;  %v267_v27 = vld [vmem:[%s4883_s1 + $0x6f0] sm:$0xff]  ;;  %v132_v28 = vld [vmem:[%s4883_s1 + $0x2b8] sm:$0xff] }
  0x53   :  { %542 = vmatpush.msra.mxu2 %v122_v30  ;;  %563 = vmatpush.msra.mxu3 %v250_v31  ;;  %v260_v29 = vld [vmem:[%s4883_s1 + $0x6b8] sm:$0xff]  ;;  %v123_v30 = vld [vmem:[%s4883_s1 + $0x270] sm:$0xff] }
  0x54   :  { %501 = vmatpush.msra.mxu0 %v113_v32  ;;  %521 = vmatpush.msra.mxu1 %v249_v34  ;;  %v259_v31 = vld [vmem:[%s4883_s1 + $0x6b0] sm:$0xff]  ;;  %v124_v32 = vld [vmem:[%s4883_s1 + $0x278] sm:$0xff] }
  0x55   :  { %543 = vmatpush.msra.mxu2 %v114_v35  ;;  %564 = vmatpush.msra.mxu3 %v242_v36  ;;  %v252_v34 = vld [vmem:[%s4883_s1 + $0x678] sm:$0xff]  ;;  %v115_v35 = vld [vmem:[%s4883_s1 + $0x230] sm:$0xff] }
  0x56   :  { %502 = vmatpush.msra.mxu0 %v105_v37  ;;  %522 = vmatpush.msra.mxu1 %v241_v38  ;;  %v251_v36 = vld [vmem:[%s4883_s1 + $0x670] sm:$0xff]  ;;  %v116_v37 = vld [vmem:[%s4883_s1 + $0x238] sm:$0xff] }
  0x57   :  { %544 = vmatpush.msra.mxu2 %v106_v40  ;;  %565 = vmatpush.msra.mxu3 %v234_v41  ;;  %v244_v38 = vld [vmem:[%s4883_s1 + $0x638] sm:$0xff]  ;;  %v107_v40 = vld [vmem:[%s4883_s1 + $0x1f0] sm:$0xff] }
  0x58   :  { %503 = vmatpush.msra.mxu0 %v97_v42  ;;  %523 = vmatpush.msra.mxu1 %v233_v43  ;;  %v243_v41 = vld [vmem:[%s4883_s1 + $0x630] sm:$0xff]  ;;  %v108_v42 = vld [vmem:[%s4883_s1 + $0x1f8] sm:$0xff] }
  0x59   :  { %545 = vmatpush.msra.mxu2 %v98_v44  ;;  %566 = vmatpush.msra.mxu3 %v226_v45  ;;  %v236_v43 = vld [vmem:[%s4883_s1 + $0x5f8] sm:$0xff]  ;;  %v99_v44 = vld [vmem:[%s4883_s1 + $0x1b0] sm:$0xff] }
  0x5a   :  { %504 = vmatpush.msra.mxu0 %v89_v46  ;;  %524 = vmatpush.msra.mxu1 %v225_v47  ;;  %v235_v45 = vld [vmem:[%s4883_s1 + $0x5f0] sm:$0xff]  ;;  %v100_v46 = vld [vmem:[%s4883_s1 + $0x1b8] sm:$0xff] }
  0x5b   :  { %546 = vmatpush.msra.mxu2 %v90_v48  ;;  %567 = vmatpush.msra.mxu3 %v218_v49  ;;  %v228_v47 = vld [vmem:[%s4883_s1 + $0x5b8] sm:$0xff]  ;;  %v91_v48 = vld [vmem:[%s4883_s1 + $0x170] sm:$0xff] }
  0x5c   :  { %505 = vmatpush.msra.mxu0 %v81_v50  ;;  %525 = vmatpush.msra.mxu1 %v217_v51  ;;  %v227_v49 = vld [vmem:[%s4883_s1 + $0x5b0] sm:$0xff]  ;;  %v92_v50 = vld [vmem:[%s4883_s1 + $0x178] sm:$0xff] }
  0x5d   :  { %547 = vmatpush.msra.mxu2 %v82_v52  ;;  %568 = vmatpush.msra.mxu3 %v210_v53  ;;  %v220_v51 = vld [vmem:[%s4883_s1 + $0x578] sm:$0xff]  ;;  %v83_v52 = vld [vmem:[%s4883_s1 + $0x130] sm:$0xff] }
  0x5e   :  { %506 = vmatpush.msra.mxu0 %v73_v54  ;;  %526 = vmatpush.msra.mxu1 %v209_v55  ;;  %v219_v53 = vld [vmem:[%s4883_s1 + $0x570] sm:$0xff]  ;;  %v84_v54 = vld [vmem:[%s4883_s1 + $0x138] sm:$0xff] }
  0x5f   :  { %548 = vmatpush.msra.mxu2 %v74_v56  ;;  %569 = vmatpush.msra.mxu3 %v202_v57  ;;  %v212_v55 = vld [vmem:[%s4883_s1 + $0x538] sm:$0xff]  ;;  %v75_v56 = vld [vmem:[%s4883_s1 + $0xf0] sm:$0xff] }
  0x60   :  { %507 = vmatpush.msra.mxu0 %v65_v58  ;;  %527 = vmatpush.msra.mxu1 %v201_v59  ;;  %v211_v57 = vld [vmem:[%s4883_s1 + $0x530] sm:$0xff]  ;;  %v76_v58 = vld [vmem:[%s4883_s1 + $0xf8] sm:$0xff] }
  0x61   :  { %549 = vmatpush.msra.mxu2 %v66_v60  ;;  %570 = vmatpush.msra.mxu3 %v194_v61  ;;  %v204_v59 = vld [vmem:[%s4883_s1 + $0x4f8] sm:$0xff]  ;;  %v67_v60 = vld [vmem:[%s4883_s1 + $0xb0] sm:$0xff] }
  0x62   :  { %508 = vmatpush.msra.mxu0 %v57_v62  ;;  %528 = vmatpush.msra.mxu1 %v193_v63  ;;  %v203_v61 = vld [vmem:[%s4883_s1 + $0x4f0] sm:$0xff]  ;;  %v68_v62 = vld [vmem:[%s4883_s1 + $0xb8] sm:$0xff] }
  0x63   :  { %550 = vmatpush.msra.mxu2 %v58_v0  ;;  %571 = vmatpush.msra.mxu3 %v186_v1  ;;  %v196_v63 = vld [vmem:[%s4883_s1 + $0x4b8] sm:$0xff]  ;;  %v59_v0 = vld [vmem:[%s4883_s1 + $0x70] sm:$0xff] }
  0x64   :  { %509 = vmatpush.msra.mxu0 %v49_v2  ;;  %529 = vmatpush.msra.mxu1 %v185_v3  ;;  %v195_v1 = vld [vmem:[%s4883_s1 + $0x4b0] sm:$0xff]  ;;  %v60_v2 = vld [vmem:[%s4883_s1 + $0x78] sm:$0xff] }
  0x65   :  { %551 = vmatpush.msra.mxu2 %v50_v4  ;;  %572 = vmatpush.msra.mxu3 %v178_v5  ;;  %v188_v3 = vld [vmem:[%s4883_s1 + $0x478] sm:$0xff]  ;;  %v51_v4 = vld [vmem:[%s4883_s1 + $0x30] sm:$0xff] }
  0x66   :  { %510 = vmatmul.bf16.vlgmr.msra.gmra.mxu0 %v2522_v33  ;;  %552 = vmatmul.bf16.vlgmr.msra.gmra.mxu2 %v2522_v33  ;;  %v187_v5 = vld [vmem:[%s4883_s1 + $0x470] sm:$0xff] }
  0x67   :  { %578 = vmatpush.msrb.mxu0 %v171_v6  ;;  %620 = vmatpush.msrb.mxu2 %v172_v7  ;;  %v52_v6 = vld [vmem:[%s4883_s1 + $0x38] sm:$0xff] }
  0x68   :  { %641 = vmatpush.msrb.mxu3 %v300_v8  ;;  %530 = vmatpush.msra.mxu1 %v177_v9  ;;  %v180_v7 = vld [vmem:[%s4883_s1 + $0x438] sm:$0xff]  ;;  %v179_v8 = vld [vmem:[%s4883_s1 + $0x430] sm:$0xff]  ;;  %v715_v9 = vld [vmem:[%s4885_s3 + $0x168] sm:$0xff] }
  0x69   :  { %573 = vmatmul.bf16.vlgmr.msra.gmra.mxu3 %v2539_v39  ;;  %531 = vmatmul.bf16.vlgmr.msra.gmra.mxu1 %v2539_v39 }
  0x6a   :  { %579 = vmatpush.msrb.mxu0 %v163_v10  ;;  %599 = vmatpush.msrb.mxu1 %v299_v11  ;;  %v811_v10 = vld [vmem:[%s4885_s3 + $0x468] sm:$0xff]  ;;  %v712_v11 = vld [vmem:[%s4885_s3 + $0x150] sm:$0xff] }
  0x6b   :  { %621 = vmatpush.msrb.mxu2 %v164_v12  ;;  %642 = vmatpush.msrb.mxu3 %v292_v13  ;;  %v763_v12 = vld [vmem:[%s4885_s3 + $0x2e8] sm:$0xff]  ;;  %v808_v13 = vld [vmem:[%s4885_s3 + $0x450] sm:$0xff] }
  0x6c   :  { %580 = vmatpush.msrb.mxu0 %v155_v14  ;;  %600 = vmatpush.msrb.mxu1 %v291_v15  ;;  %v760_v14 = vld [vmem:[%s4885_s3 + $0x2d0] sm:$0xff]  ;;  %v805_v15 = vld [vmem:[%s4885_s3 + $0x438] sm:$0xff] }
  0x6d   :  { %622 = vmatpush.msrb.mxu2 %v156_v16  ;;  %643 = vmatpush.msrb.mxu3 %v284_v17  ;;  %v706_v16 = vld [vmem:[%s4885_s3 + $0x120] sm:$0xff]  ;;  %v859_v17 = vld [vmem:[%s4885_s3 + $0x5e8] sm:$0xff] }
  0x6e   :  { %581 = vmatpush.msrb.mxu0 %v147_v18  ;;  %601 = vmatpush.msrb.mxu1 %v283_v19  ;;  %v802_v18 = vld [vmem:[%s4885_s3 + $0x420] sm:$0xff]  ;;  %v703_v19 = vld [vmem:[%s4885_s3 + $0x108] sm:$0xff] }
  0x6f   :  { %623 = vmatpush.msrb.mxu2 %v148_v20  ;;  %644 = vmatpush.msrb.mxu3 %v276_v21  ;;  %v754_v20 = vld [vmem:[%s4885_s3 + $0x2a0] sm:$0xff]  ;;  %v856_v21 = vld [vmem:[%s4885_s3 + $0x5d0] sm:$0xff] }
  0x70   :  { %582 = vmatpush.msrb.mxu0 %v139_v22  ;;  %602 = vmatpush.msrb.mxu1 %v275_v23  ;;  %v799_v22 = vld [vmem:[%s4885_s3 + $0x408] sm:$0xff]  ;;  %v700_v23 = vld [vmem:[%s4885_s3 + $0xf0] sm:$0xff] }
  0x71   :  { %624 = vmatpush.msrb.mxu2 %v140_v24  ;;  %645 = vmatpush.msrb.mxu3 %v268_v25  ;;  %v751_v24 = vld [vmem:[%s4885_s3 + $0x288] sm:$0xff]  ;;  %v697_v25 = vld [vmem:[%s4885_s3 + $0xd8] sm:$0xff] }
  0x72   :  { %583 = vmatpush.msrb.mxu0 %v131_v26  ;;  %603 = vmatpush.msrb.mxu1 %v267_v27  ;;  %v748_v26 = vld [vmem:[%s4885_s3 + $0x270] sm:$0xff] }
  0x73   :  { %625 = vmatpush.msrb.mxu2 %v132_v28  ;;  %646 = vmatpush.msrb.mxu3 %v260_v29  ;;  %v796_v27 = vld [vmem:[%s4885_s3 + $0x3f0] sm:$0xff]  ;;  %v853_v28 = vld [vmem:[%s4885_s3 + $0x5b8] sm:$0xff]  ;;  %v694_v29 = vld [vmem:[%s4885_s3 + $0xc0] sm:$0xff] }
  0x74   :  { %584 = vmatpush.msrb.mxu0 %v123_v30  ;;  %604 = vmatpush.msrb.mxu1 %v259_v31  ;;  %v745_v30 = vld [vmem:[%s4885_s3 + $0x258] sm:$0xff]  ;;  %v691_v31 = vld [vmem:[%s4885_s3 + $0xa8] sm:$0xff] }
  0x75   :  { %626 = vmatpush.msrb.mxu2 %v124_v32  ;;  %647 = vmatpush.msrb.mxu3 %v252_v34  ;;  %v742_v32 = vld [vmem:[%s4885_s3 + $0x240] sm:$0xff]  ;;  %v688_v34 = vld [vmem:[%s4885_s3 + $0x90] sm:$0xff] }
  0x76   :  { %585 = vmatpush.msrb.mxu0 %v115_v35  ;;  %605 = vmatpush.msrb.mxu1 %v251_v36  ;;  %v793_v35 = vld [vmem:[%s4885_s3 + $0x3d8] sm:$0xff]  ;;  %v850_v36 = vld [vmem:[%s4885_s3 + $0x5a0] sm:$0xff] }
  0x77   :  { %627 = vmatpush.msrb.mxu2 %v116_v37  ;;  %648 = vmatpush.msrb.mxu3 %v244_v38  ;;  %v739_v37 = vld [vmem:[%s4885_s3 + $0x228] sm:$0xff]  ;;  %v790_v38 = vld [vmem:[%s4885_s3 + $0x3c0] sm:$0xff] }
  0x78   :  { %586 = vmatpush.msrb.mxu0 %v107_v40  ;;  %606 = vmatpush.msrb.mxu1 %v243_v41  ;;  %v847_v40 = vld [vmem:[%s4885_s3 + $0x588] sm:$0xff]  ;;  %v685_v41 = vld [vmem:[%s4885_s3 + $0x78] sm:$0xff] }
  0x79   :  { %628 = vmatpush.msrb.mxu2 %v108_v42  ;;  %649 = vmatpush.msrb.mxu3 %v236_v43  ;;  %v736_v42 = vld [vmem:[%s4885_s3 + $0x210] sm:$0xff]  ;;  %v787_v43 = vld [vmem:[%s4885_s3 + $0x3a8] sm:$0xff] }
  0x7a   :  { %587 = vmatpush.msrb.mxu0 %v99_v44  ;;  %607 = vmatpush.msrb.mxu1 %v235_v45  ;;  %v844_v44 = vld [vmem:[%s4885_s3 + $0x570] sm:$0xff] }
  0x7b   :  { %629 = vmatpush.msrb.mxu2 %v100_v46  ;;  %650 = vmatpush.msrb.mxu3 %v228_v47  ;;  %v784_v45 = vld [vmem:[%s4885_s3 + $0x390] sm:$0xff]  ;;  %v841_v46 = vld [vmem:[%s4885_s3 + $0x558] sm:$0xff]  ;;  %v682_v47 = vld [vmem:[%s4885_s3 + $0x60] sm:$0xff] }
  0x7c   :  { %588 = vmatpush.msrb.mxu0 %v91_v48  ;;  %608 = vmatpush.msrb.mxu1 %v227_v49  ;;  %v733_v48 = vld [vmem:[%s4885_s3 + $0x1f8] sm:$0xff] }
  0x7d   :  { %630 = vmatpush.msrb.mxu2 %v92_v50  ;;  %651 = vmatpush.msrb.mxu3 %v220_v51  ;;  %v781_v49 = vld [vmem:[%s4885_s3 + $0x378] sm:$0xff]  ;;  %v838_v50 = vld [vmem:[%s4885_s3 + $0x540] sm:$0xff]  ;;  %v679_v51 = vld [vmem:[%s4885_s3 + $0x48] sm:$0xff] }
  0x7e   :  { %589 = vmatpush.msrb.mxu0 %v83_v52  ;;  %609 = vmatpush.msrb.mxu1 %v219_v53  ;;  %v730_v52 = vld [vmem:[%s4885_s3 + $0x1e0] sm:$0xff] }
  0x7f   :  { %631 = vmatpush.msrb.mxu2 %v84_v54  ;;  %652 = vmatpush.msrb.mxu3 %v212_v55  ;;  %v778_v53 = vld [vmem:[%s4885_s3 + $0x360] sm:$0xff]  ;;  %v835_v54 = vld [vmem:[%s4885_s3 + $0x528] sm:$0xff]  ;;  %v676_v55 = vld [vmem:[%s4885_s3 + $0x30] sm:$0xff] }
  0x80   :  { %590 = vmatpush.msrb.mxu0 %v75_v56  ;;  %610 = vmatpush.msrb.mxu1 %v211_v57  ;;  %v727_v56 = vld [vmem:[%s4885_s3 + $0x1c8] sm:$0xff] }
  0x81   :  { %632 = vmatpush.msrb.mxu2 %v76_v58  ;;  %653 = vmatpush.msrb.mxu3 %v204_v59  ;;  %v775_v57 = vld [vmem:[%s4885_s3 + $0x348] sm:$0xff]  ;;  %v832_v58 = vld [vmem:[%s4885_s3 + $0x510] sm:$0xff]  ;;  %v673_v59 = vld [vmem:[%s4885_s3 + $0x18] sm:$0xff] }
  0x82   :  { %591 = vmatpush.msrb.mxu0 %v67_v60  ;;  %611 = vmatpush.msrb.mxu1 %v203_v61  ;;  %v724_v60 = vld [vmem:[%s4885_s3 + $0x1b0] sm:$0xff]  ;;  %v670_v61 = vld [vmem:[%s4885_s3] sm:$0xff] }
  0x83   :  { %633 = vmatpush.msrb.mxu2 %v68_v62  ;;  %654 = vmatpush.msrb.mxu3 %v196_v63  ;;  %v721_v62 = vld [vmem:[%s4885_s3 + $0x198] sm:$0xff]  ;;  %v772_v63 = vld [vmem:[%s4885_s3 + $0x330] sm:$0xff] }
  0x84   :  { %592 = vmatpush.msrb.mxu0 %v59_v0  ;;  %612 = vmatpush.msrb.mxu1 %v195_v1  ;;  %v829_v0 = vld [vmem:[%s4885_s3 + $0x4f8] sm:$0xff]  ;;  %v907_v1 = vld [vmem:[%s4885_s3 + $0x768] sm:$0xff] }
  0x85   :  { %634 = vmatpush.msrb.mxu2 %v60_v2  ;;  %655 = vmatpush.msrb.mxu3 %v188_v3  ;;  %v718_v2 = vld [vmem:[%s4885_s3 + $0x180] sm:$0xff]  ;;  %v904_v3 = vld [vmem:[%s4885_s3 + $0x750] sm:$0xff] }
  0x86   :  { %593 = vmatpush.msrb.mxu0 %v51_v4  ;;  %613 = vmatpush.msrb.mxu1 %v187_v5  ;;  %v955_v4 = vld [vmem:[%s4885_s3 + $0x8e8] sm:$0xff]  ;;  %v901_v5 = vld [vmem:[%s4885_s3 + $0x738] sm:$0xff] }
  0x87   :  { %635 = vmatpush.msrb.mxu2 %v52_v6  ;;  %656 = vmatpush.msrb.mxu3 %v180_v7  ;;  %v952_v6 = vld [vmem:[%s4885_s3 + $0x8d0] sm:$0xff]  ;;  %v769_v7 = vld [vmem:[%s4885_s3 + $0x318] sm:$0xff] }
  0x88   :  { %594 = vmatmul.bf16.vlgmr.msrb.gmra.mxu0 %v2522_v33  ;;  %636 = vmatmul.bf16.vlgmr.msrb.gmra.mxu2 %v2522_v33  ;;  %v709_v33 = vld [vmem:[%s4885_s3 + $0x138] sm:$0xff] }
  0x89   :  { %657 = vmatmul.bf16.vlgmr.msrb.gmra.mxu3 %v2539_v39  ;;  %614 = vmatpush.msrb.mxu1 %v179_v8  ;;  %v826_v8 = vld [vmem:[%s4885_s3 + $0x4e0] sm:$0xff] }
  0x8a   :  { %1042 = vmatpush.msra.mxu0 %v715_v9  ;;  %615 = vmatmul.bf16.vlgmr.msrb.gmra.mxu1 %v2539_v39  ;;  %v757_v39 = vld [vmem:[%s4885_s3 + $0x2b8] sm:$0xff]  ;;  %v766_v9 = vld [vmem:[%s4885_s3 + $0x300] sm:$0xff] }
  0x8b   :  { %1082 = vmatpush.msra.mxu2 %v811_v10  ;;  %1062 = vmatpush.msra.mxu1 %v763_v12  ;;  %v823_v10 = vld [vmem:[%s4885_s3 + $0x4c8] sm:$0xff]  ;;  %v3232_v12 = vld [vmem:[%s4886_s2] sm:$0xff] }
  0x8c   :  { %1043 = vmatpush.msra.mxu0 %v712_v11  ;;  %1102 = vmatpush.msra.mxu3 %v859_v17  ;;  %v898_v11 = vld [vmem:[%s4885_s3 + $0x720] sm:$0xff]  ;;  %v1000_v17 = vld [vmem:[%s4885_s3 + $0xa50] sm:$0xff] }
  0x8d   :  { %1083 = vmatpush.msra.mxu2 %v808_v13  ;;  %1063 = vmatpush.msra.mxu1 %v760_v14  ;;  %v949_v13 = vld [vmem:[%s4885_s3 + $0x8b8] sm:$0xff]  ;;  %v820_v14 = vld [vmem:[%s4885_s3 + $0x4b0] sm:$0xff] }
  0x8e   :  { %1044 = vmatpush.msra.mxu0 %v709_v33  ;;  %1103 = vmatpush.msra.mxu3 %v856_v21  ;;  %v1003_v33 = vld [vmem:[%s4885_s3 + $0xa68] sm:$0xff]  ;;  %v997_v21 = vld [vmem:[%s4885_s3 + $0xa38] sm:$0xff] }
  0x8f   :  { %1084 = vmatpush.msra.mxu2 %v805_v15  ;;  %1064 = vmatpush.msra.mxu1 %v757_v39  ;;  %v895_v15 = vld [vmem:[%s4885_s3 + $0x708] sm:$0xff]  ;;  %v303_v39 = vperm.slane %v3232_v12, 0 }
  0x90   :  { %1045 = vmatpush.msra.mxu0 %v706_v16  ;;  %1104 = vmatpush.msra.mxu3 %v853_v28  ;;  %v946_v16 = vld [vmem:[%s4885_s3 + $0x8a0] sm:$0xff] }
  0x91   :  { %1085 = vmatpush.msra.mxu2 %v802_v18  ;;  %1065 = vmatpush.msra.mxu1 %v754_v20  ;;  %v817_v18 = vld [vmem:[%s4885_s3 + $0x498] sm:$0xff]  ;;  %v943_v20 = vld [vmem:[%s4885_s3 + $0x888] sm:$0xff]  ;;  %v994_v28 = vld [vmem:[%s4885_s3 + $0xa20] sm:$0xff] }
  0x92   :  { %1046 = vmatpush.msra.mxu0 %v703_v19  ;;  %1105 = vmatpush.msra.mxu3 %v850_v36  ;;  %v892_v19 = vld [vmem:[%s4885_s3 + $0x6f0] sm:$0xff] }
  0x93   :  { %1086 = vmatpush.msra.mxu2 %v799_v22  ;;  %1066 = vmatpush.msra.mxu1 %v751_v24  ;;  %v814_v22 = vld [vmem:[%s4885_s3 + $0x480] sm:$0xff]  ;;  %v889_v24 = vld [vmem:[%s4885_s3 + $0x6d8] sm:$0xff] }
  0x94   :  { %1047 = vmatpush.msra.mxu0 %v700_v23  ;;  %1106 = vmatpush.msra.mxu3 %v847_v40  ;;  %v988_v40 = vld [vmem:[%s4885_s3 + $0x9f0] sm:$0xff] }
  0x95   :  { %1087 = vmatpush.msra.mxu2 %v796_v27  ;;  %1067 = vmatpush.msra.mxu1 %v748_v26  ;;  %v940_v26 = vld [vmem:[%s4885_s3 + $0x870] sm:$0xff] }
  0x96   :  { %1048 = vmatpush.msra.mxu0 %v697_v25  ;;  %1107 = vmatpush.msra.mxu3 %v844_v44  ;;  %v304_v25 = vperm.slane %v3232_v12, 1  ;;  %v931_v44 = vld [vmem:[%s4885_s3 + $0x828] sm:$0xff] }
  0x97   :  { %1068 = vmatpush.msra.mxu1 %v745_v30  ;;  %1088 = vmatpush.msra.mxu2 %v793_v35  ;;  %v937_v30 = vld [vmem:[%s4885_s3 + $0x858] sm:$0xff] }
  0x98   :  { %1049 = vmatpush.msra.mxu0 %v694_v29  ;;  %1108 = vmatpush.msra.mxu3 %v841_v46  ;;  %v886_v29 = vld [vmem:[%s4885_s3 + $0x6c0] sm:$0xff]  ;;  %v985_v46 = vld [vmem:[%s4885_s3 + $0x9d8] sm:$0xff] }
  0x99   :  { %1069 = vmatpush.msra.mxu1 %v742_v32  ;;  %1089 = vmatpush.msra.mxu2 %v790_v38  ;;  %v934_v38 = vld [vmem:[%s4885_s3 + $0x840] sm:$0xff] }
  0x9a   :  { %1050 = vmatpush.msra.mxu0 %v691_v31  ;;  %1109 = vmatpush.msra.mxu3 %v838_v50 }
  0x9b   :  { %1070 = vmatpush.msra.mxu1 %v739_v37  ;;  %1090 = vmatpush.msra.mxu2 %v787_v43  ;;  %v883_v37 = vld [vmem:[%s4885_s3 + $0x6a8] sm:$0xff]  ;;  %v880_v43 = vld [vmem:[%s4885_s3 + $0x690] sm:$0xff] }
  0x9c   :  { %1051 = vmatpush.msra.mxu0 %v688_v34  ;;  %1110 = vmatpush.msra.mxu3 %v835_v54  ;;  %v991_v34 = vld [vmem:[%s4885_s3 + $0xa08] sm:$0xff] }
  0x9d   :  { %1071 = vmatpush.msra.mxu1 %v736_v42  ;;  %1091 = vmatpush.msra.mxu2 %v784_v45 }
  0x9e   :  { %1052 = vmatpush.msra.mxu0 %v685_v41  ;;  %1111 = vmatpush.msra.mxu3 %v832_v58  ;;  %v871_v58 = vld [vmem:[%s4885_s3 + $0x648] sm:$0xff] }
  0x9f   :  { %1072 = vmatpush.msra.mxu1 %v733_v48  ;;  %1092 = vmatpush.msra.mxu2 %v781_v49  ;;  %v877_v48 = vld [vmem:[%s4885_s3 + $0x678] sm:$0xff]  ;;  %v928_v49 = vld [vmem:[%s4885_s3 + $0x810] sm:$0xff] }
  0xa0   :  { %1053 = vmatpush.msra.mxu0 %v682_v47  ;;  %1112 = vmatpush.msra.mxu3 %v829_v0  ;;  %v305_v0 = vperm.slane %v3232_v12, 2 }
  0xa1   :  { %1073 = vmatpush.msra.mxu1 %v730_v52  ;;  %1093 = vmatpush.msra.mxu2 %v778_v53  ;;  %v874_v52 = vld [vmem:[%s4885_s3 + $0x660] sm:$0xff]  ;;  %v925_v53 = vld [vmem:[%s4885_s3 + $0x7f8] sm:$0xff] }
  0xa2   :  { %1054 = vmatpush.msra.mxu0 %v679_v51  ;;  %1113 = vmatpush.msra.mxu3 %v826_v8  ;;  %v982_v51 = vld [vmem:[%s4885_s3 + $0x9c0] sm:$0xff]  ;;  %v913_v8 = vld [vmem:[%s4885_s3 + $0x798] sm:$0xff] }
  0xa3   :  { %1074 = vmatpush.msra.mxu1 %v727_v56  ;;  %1094 = vmatpush.msra.mxu2 %v775_v57  ;;  %v979_v56 = vld [vmem:[%s4885_s3 + $0x9a8] sm:$0xff] }
  0xa4   :  { %1055 = vmatpush.msra.mxu0 %v676_v55  ;;  %1114 = vmatpush.msra.mxu3 %v823_v10  ;;  %v1027_v57 = vld [vmem:[%s4885_s3 + $0xb28] sm:$0xff] }
  0xa5   :  { %1075 = vmatpush.msra.mxu1 %v724_v60  ;;  %1095 = vmatpush.msra.mxu2 %v772_v63  ;;  %v976_v60 = vld [vmem:[%s4885_s3 + $0x990] sm:$0xff]  ;;  %v919_v63 = vld [vmem:[%s4885_s3 + $0x7c8] sm:$0xff] }
  0xa6   :  { %1056 = vmatpush.msra.mxu0 %v673_v59  ;;  %1115 = vmatpush.msra.mxu3 %v820_v14  ;;  %v922_v59 = vld [vmem:[%s4885_s3 + $0x7e0] sm:$0xff] }
  0xa7   :  { %1076 = vmatpush.msra.mxu1 %v721_v62  ;;  %1096 = vmatpush.msra.mxu2 %v769_v7  ;;  %v868_v62 = vld [vmem:[%s4885_s3 + $0x630] sm:$0xff]  ;;  %v862_v7 = vld [vmem:[%s4885_s3 + $0x600] sm:$0xff] }
  0xa8   :  { %1057 = vmatpush.msra.mxu0 %v670_v61  ;;  %1116 = vmatpush.msra.mxu3 %v817_v18 }
  0xa9   :  { %1077 = vmatpush.msra.mxu1 %v718_v2  ;;  %1097 = vmatpush.msra.mxu2 %v766_v9  ;;  %v865_v2 = vld [vmem:[%s4885_s3 + $0x618] sm:$0xff]  ;;  %v1024_v9 = vld [vmem:[%s4885_s3 + $0xb10] sm:$0xff] }
  0xaa   :  { %1122 = vmatpush.msrb.mxu0 %v907_v1  ;;  %1117 = vmatpush.msra.mxu3 %v814_v22  ;;  %v973_v1 = vld [vmem:[%s4885_s3 + $0x978] sm:$0xff] }
  0xab   :  { %1142 = vmatpush.msrb.mxu1 %v955_v4  ;;  %1162 = vmatpush.msrb.mxu2 %v1003_v33  ;;  %v970_v4 = vld [vmem:[%s4885_s3 + $0x960] sm:$0xff] }
  0xac   :  { %1123 = vmatpush.msrb.mxu0 %v904_v3  ;;  %1190 = vmatpush.msrb.mxu3 %v1027_v57  ;;  %v916_v3 = vld [vmem:[%s4885_s3 + $0x7b0] sm:$0xff]  ;;  %v910_v33 = vld [vmem:[%s4885_s3 + $0x780] sm:$0xff]  ;;  %v851_v57 = vld [vmem:[%s4885_s3 + $0x5a8] sm:$0xff] }
  0xad   :  { %1143 = vmatpush.msrb.mxu1 %v952_v6  ;;  %1163 = vmatpush.msrb.mxu2 %v1000_v17  ;;  %v306_v6 = vperm.slane %v3232_v12, 3 }
  0xae   :  { %1124 = vmatpush.msrb.mxu0 %v901_v5  ;;  %1191 = vmatpush.msrb.mxu3 %v1024_v9  ;;  %v839_v9 = vld [vmem:[%s4885_s3 + $0x548] sm:$0xff] }
  0xaf   :  { %1144 = vmatpush.msrb.mxu1 %v949_v13  ;;  %1164 = vmatpush.msrb.mxu2 %v997_v21  ;;  %v967_v13 = vld [vmem:[%s4885_s3 + $0x948] sm:$0xff]  ;;  %v758_v21 = vld [vmem:[%s4885_s3 + $0x2c0] sm:$0xff] }
  0xb0   :  { %1125 = vmatpush.msrb.mxu0 %v898_v11  ;;  %v764_v11 = vld [vmem:[%s4885_s3 + $0x2f0] sm:$0xff] }
  0xb1   :  { %1145 = vmatpush.msrb.mxu1 %v946_v16  ;;  %v343_v23 = vpop.f32.mrf.mxu0  ;;  %1165 = vmatpush.msrb.mxu2 %v994_v28  ;;  %v761_v16 = vld [vmem:[%s4885_s3 + $0x2d8] sm:$0xff]  ;;  %v755_v28 = vld [vmem:[%s4885_s3 + $0x2a8] sm:$0xff] }
  0xb2   :  { %1126 = vmatpush.msrb.mxu0 %v895_v15  ;;  %v344_v27 = vadd.f32 %v343_v23, %v303_v39  ;;  %v812_v39 = vld [vmem:[%s4885_s3 + $0x470] sm:$0xff] }
  0xb3   :  { %1146 = vmatpush.msrb.mxu1 %v943_v20  ;;  %1166 = vmatpush.msrb.mxu2 %v991_v34  ;;  %v1021_v20 = vld [vmem:[%s4885_s3 + $0xaf8] sm:$0xff]  ;;  %v752_v34 = vld [vmem:[%s4885_s3 + $0x290] sm:$0xff] }
  0xb4   :  { %1127 = vmatpush.msrb.mxu0 %v892_v19  ;;  %v364_v31 = vpop.f32.mrf.mxu1  ;;  %v964_v19 = vld [vmem:[%s4885_s3 + $0x930] sm:$0xff]  ;;  %1192 = vmatpush.msrb.mxu3 %v1021_v20 }
  0xb5   :  { %v385_v32 = vpop.f32.mrf.mxu2  ;;  %1147 = vmatpush.msrb.mxu1 %v940_v26  ;;  %v365_v35 = vadd.f32 %v364_v31, %v344_v27  ;;  %1167 = vmatpush.msrb.mxu2 %v988_v40  ;;  %v1018_v26 = vld [vmem:[%s4885_s3 + $0xae0] sm:$0xff] }
  0xb6   :  { %1128 = vmatpush.msrb.mxu0 %v889_v24  ;;  %v386_v36 = vadd.f32 %v385_v32, %v304_v25  ;;  %v809_v24 = vld [vmem:[%s4885_s3 + $0x458] sm:$0xff]  ;;  %1193 = vmatpush.msrb.mxu3 %v1018_v26  ;;  %v692_v26 = vld [vmem:[%s4885_s3 + $0xb0] sm:$0xff] }
  0xb7   :  { %1148 = vmatpush.msrb.mxu1 %v937_v30  ;;  %v3296_v41 = vmax.f32 %v365_v35, 0.0  ;;  %1168 = vmatpush.msrb.mxu2 %v985_v46  ;;  %v961_v25 = vld [vmem:[%s4885_s3 + $0x918] sm:$0xff]  ;;  %v806_v30 = vld [vmem:[%s4885_s3 + $0x440] sm:$0xff] }
  0xb8   :  { %1129 = vmatpush.msrb.mxu0 %v886_v29  ;;  %v406_v42 = vpop.f32.mrf.mxu3  ;;  %v1015_v29 = vld [vmem:[%s4885_s3 + $0xac8] sm:$0xff]  ;;  %v958_v35 = vld [vmem:[%s4885_s3 + $0x900] sm:$0xff] }
  0xb9   :  { %v407_v45 = vadd.f32 %v406_v42, %v386_v36  ;;  %1149 = vmatpush.msrb.mxu1 %v934_v38  ;;  %v345_v47 = vpop.f32.mrf.mxu0  ;;  %1058 = vmatmul.f32.vlgmr.msra.gmra.mxu0 %v3296_v41  ;;  %v803_v36 = vld [vmem:[%s4885_s3 + $0x428] sm:$0xff]  ;;  %v749_v38 = vld [vmem:[%s4885_s3 + $0x278] sm:$0xff]  ;;  %v746_v46 = vld [vmem:[%s4885_s3 + $0x260] sm:$0xff] }
  0xba   :  { %1130 = vmatpush.msrb.mxu0 %v883_v37  ;;  %1169 = vmatpush.msrb.mxu2 %v982_v51  ;;  %v860_v37 = vld [vmem:[%s4885_s3 + $0x5f0] sm:$0xff]  ;;  %v1009_v47 = vld [vmem:[%s4885_s3 + $0xa98] sm:$0xff]  ;;  %v854_v51 = vld [vmem:[%s4885_s3 + $0x5c0] sm:$0xff] }
  0xbb   :  { %v3314_v50 = vmax.f32 %v407_v45, 0.0  ;;  %1150 = vmatpush.msrb.mxu1 %v931_v44  ;;  %1194 = vmatpush.msrb.mxu3 %v1015_v29  ;;  %v800_v44 = vld [vmem:[%s4885_s3 + $0x410] sm:$0xff]  ;;  %v857_v45 = vld [vmem:[%s4885_s3 + $0x5d8] sm:$0xff] }
  0xbc   :  { %1131 = vmatpush.msrb.mxu0 %v880_v43  ;;  %v366_v54 = vpop.f32.mrf.mxu1  ;;  %1170 = vmatpush.msrb.mxu2 %v979_v56  ;;  %v1012_v43 = vld [vmem:[%s4885_s3 + $0xab0] sm:$0xff]  ;;  %v689_v29 = vld [vmem:[%s4885_s3 + $0x98] sm:$0xff] }
  0xbd   :  { %v387_v55 = vpop.f32.mrf.mxu2  ;;  %1151 = vmatpush.msrb.mxu1 %v928_v49  ;;  %1195 = vmatpush.msrb.mxu3 %v1012_v43  ;;  %v794_v54 = vld [vmem:[%s4885_s3 + $0x3e0] sm:$0xff]  ;;  %v740_v56 = vld [vmem:[%s4885_s3 + $0x230] sm:$0xff]  ;;  %v683_v43 = vld [vmem:[%s4885_s3 + $0x68] sm:$0xff] }
  0xbe   :  { %1132 = vmatpush.msrb.mxu0 %v877_v48  ;;  %1078 = vmatmul.f32.vlgmr.msra.gmra.mxu1 %v3314_v50  ;;  %v797_v48 = vld [vmem:[%s4885_s3 + $0x3f8] sm:$0xff]  ;;  %v716_v55 = vld [vmem:[%s4885_s3 + $0x170] sm:$0xff] }
  0xbf   :  { %1152 = vmatpush.msrb.mxu1 %v925_v53  ;;  %1171 = vmatpush.msrb.mxu2 %v976_v60  ;;  %v1006_v53 = vld [vmem:[%s4885_s3 + $0xa80] sm:$0xff]  ;;  %v737_v60 = vld [vmem:[%s4885_s3 + $0x218] sm:$0xff] }
  0xc0   :  { %1133 = vmatpush.msrb.mxu0 %v874_v52  ;;  %v408_v61 = vpop.f32.mrf.mxu3  ;;  %v743_v52 = vld [vmem:[%s4885_s3 + $0x248] sm:$0xff]  ;;  %1196 = vmatpush.msrb.mxu3 %v1009_v47 }
  0xc1   :  { %1153 = vmatpush.msrb.mxu1 %v922_v59  ;;  %1172 = vmatpush.msrb.mxu2 %v973_v1  ;;  %v713_v59 = vld [vmem:[%s4885_s3 + $0x158] sm:$0xff]  ;;  %v848_v61 = vld [vmem:[%s4885_s3 + $0x590] sm:$0xff] }
  0xc2   :  { %1134 = vmatpush.msrb.mxu0 %v871_v58  ;;  %v791_v58 = vld [vmem:[%s4885_s3 + $0x3c8] sm:$0xff]  ;;  %1197 = vmatpush.msrb.mxu3 %v1006_v53  ;;  %v845_v1 = vld [vmem:[%s4885_s3 + $0x578] sm:$0xff]  ;;  %v950_v53 = vld [vmem:[%s4885_s3 + $0x8c0] sm:$0xff] }
  0xc3   :  { %1154 = vmatpush.msrb.mxu1 %v919_v63  ;;  %v427_v5 = vpop.f32.mrf.mxu0  ;;  %1173 = vmatpush.msrb.mxu2 %v970_v4  ;;  %v710_v63 = vld [vmem:[%s4885_s3 + $0x140] sm:$0xff]  ;;  %v731_v4 = vld [vmem:[%s4885_s3 + $0x1e8] sm:$0xff] }
  0xc4   :  { %1135 = vmatpush.msrb.mxu0 %v868_v62  ;;  %v428_v10 = vadd.f32 %v427_v5, %v305_v0  ;;  %v788_v62 = vld [vmem:[%s4885_s3 + $0x3b0] sm:$0xff]  ;;  %v734_v0 = vld [vmem:[%s4885_s3 + $0x200] sm:$0xff] }
  0xc5   :  { %1155 = vmatpush.msrb.mxu1 %v916_v3  ;;  %1174 = vmatpush.msrb.mxu2 %v967_v13  ;;  %v707_v3 = vld [vmem:[%s4885_s3 + $0x128] sm:$0xff]  ;;  %v842_v5 = vld [vmem:[%s4885_s3 + $0x560] sm:$0xff]  ;;  %v725_v13 = vld [vmem:[%s4885_s3 + $0x1b8] sm:$0xff] }
  0xc6   :  { %1136 = vmatpush.msrb.mxu0 %v865_v2  ;;  %v448_v14 = vpop.f32.mrf.mxu1  ;;  %v785_v2 = vld [vmem:[%s4885_s3 + $0x398] sm:$0xff] }
  0xc7   :  { %v469_v15 = vpop.f32.mrf.mxu2  ;;  %1156 = vmatpush.msrb.mxu1 %v913_v8  ;;  %v449_v17 = vadd.f32 %v448_v14, %v428_v10  ;;  %1175 = vmatpush.msrb.mxu2 %v964_v19  ;;  %v728_v8 = vld [vmem:[%s4885_s3 + $0x1d0] sm:$0xff]  ;;  %v779_v10 = vld [vmem:[%s4885_s3 + $0x368] sm:$0xff]  ;;  %v307_v14 = vperm.slane %v3232_v12, 4 }
  0xc8   :  { %1137 = vmatpush.msrb.mxu0 %v862_v7  ;;  %v470_v18 = vadd.f32 %v469_v15, %v306_v6  ;;  %v782_v6 = vld [vmem:[%s4885_s3 + $0x380] sm:$0xff]  ;;  %v704_v7 = vld [vmem:[%s4885_s3 + $0x110] sm:$0xff]  ;;  %v695_v19 = vld [vmem:[%s4885_s3 + $0xc8] sm:$0xff] }
  0xc9   :  { %1157 = vmatpush.msrb.mxu1 %v910_v33  ;;  %v3394_v22 = vmax.f32 %v449_v17, 0.0  ;;  %1176 = vmatpush.msrb.mxu2 %v961_v25  ;;  %v836_v33 = vld [vmem:[%s4885_s3 + $0x530] sm:$0xff]  ;;  %v833_v17 = vld [vmem:[%s4885_s3 + $0x518] sm:$0xff]  ;;  %v770_v25 = vld [vmem:[%s4885_s3 + $0x320] sm:$0xff] }
  0xca   :  { %1222 = vmatpush.msra.mxu0 %v764_v11  ;;  %v490_v23 = vpop.f32.mrf.mxu3  ;;  %v701_v11 = vld [vmem:[%s4885_s3 + $0xf8] sm:$0xff]  ;;  %v776_v15 = vld [vmem:[%s4885_s3 + $0x350] sm:$0xff] }
  0xcb   :  { %1242 = vmatpush.msra.mxu1 %v812_v39  ;;  %v491_v27 = vadd.f32 %v490_v23, %v470_v18  ;;  %1098 = vmatmul.f32.vlgmr.msra.gmra.mxu2 %v3394_v22  ;;  %v429_v31 = vpop.f32.mrf.mxu0  ;;  %v722_v39 = vld [vmem:[%s4885_s3 + $0x1a0] sm:$0xff]  ;;  %v773_v18 = vld [vmem:[%s4885_s3 + $0x338] sm:$0xff] }
  0xcc   :  { %1223 = vmatpush.msra.mxu0 %v761_v16  ;;  %1177 = vmatpush.msrb.mxu2 %v958_v35  ;;  %v698_v16 = vld [vmem:[%s4885_s3 + $0xe0] sm:$0xff]  ;;  %v308_v31 = vperm.slane %v3232_v12, 5 }
  0xcd   :  { %v3415_v32 = vmax.f32 %v491_v27, 0.0  ;;  %1243 = vmatpush.msra.mxu1 %v809_v24  ;;  %v830_v23 = vld [vmem:[%s4885_s3 + $0x500] sm:$0xff]  ;;  %v827_v27 = vld [vmem:[%s4885_s3 + $0x4e8] sm:$0xff] }
  0xce   :  { %1224 = vmatpush.msra.mxu0 %v758_v21  ;;  %v450_v40 = vpop.f32.mrf.mxu1  ;;  %1262 = vmatpush.msra.mxu2 %v860_v37  ;;  %v719_v21 = vld [vmem:[%s4885_s3 + $0x188] sm:$0xff]  ;;  %v821_v37 = vld [vmem:[%s4885_s3 + $0x4b8] sm:$0xff] }
  0xcf   :  { %1118 = vmatmul.f32.vlgmr.msra.gmra.mxu3 %v3415_v32  ;;  %1244 = vmatpush.msra.mxu1 %v806_v30  ;;  %v471_v42 = vpop.f32.mrf.mxu2 }
  0xd0   :  { %1225 = vmatpush.msra.mxu0 %v755_v28  ;;  %1263 = vmatpush.msra.mxu2 %v857_v45  ;;  %v767_v28 = vld [vmem:[%s4885_s3 + $0x308] sm:$0xff]  ;;  %v956_v42 = vld [vmem:[%s4885_s3 + $0x8f0] sm:$0xff] }
  0xd1   :  { %1245 = vmatpush.msra.mxu1 %v803_v36  ;;  %1202 = vmatpush.msra.mxu3 %v716_v55  ;;  %v686_v36 = vld [vmem:[%s4885_s3 + $0x80] sm:$0xff]  ;;  %v1004_v55 = vld [vmem:[%s4885_s3 + $0xa70] sm:$0xff] }
  0xd2   :  { %1226 = vmatpush.msra.mxu0 %v752_v34  ;;  %v492_v49 = vpop.f32.mrf.mxu3  ;;  %1264 = vmatpush.msra.mxu2 %v854_v51  ;;  %v824_v34 = vld [vmem:[%s4885_s3 + $0x4d0] sm:$0xff] }
  0xd3   :  { %1246 = vmatpush.msra.mxu1 %v800_v44  ;;  %1203 = vmatpush.msra.mxu3 %v713_v59  ;;  %v680_v49 = vld [vmem:[%s4885_s3 + $0x50] sm:$0xff]  ;;  %v1001_v59 = vld [vmem:[%s4885_s3 + $0xa58] sm:$0xff] }
  0xd4   :  { %1227 = vmatpush.msra.mxu0 %v749_v38  ;;  %1265 = vmatpush.msra.mxu2 %v851_v57  ;;  %v677_v57 = vld [vmem:[%s4885_s3 + $0x38] sm:$0xff] }
  0xd5   :  { %1247 = vmatpush.msra.mxu1 %v797_v48  ;;  %1204 = vmatpush.msra.mxu3 %v710_v63  ;;  %v953_v48 = vld [vmem:[%s4885_s3 + $0x8d8] sm:$0xff]  ;;  %v998_v63 = vld [vmem:[%s4885_s3 + $0xa40] sm:$0xff] }
  0xd6   :  { %1228 = vmatpush.msra.mxu0 %v746_v46  ;;  %1266 = vmatpush.msra.mxu2 %v848_v61  ;;  %v818_v46 = vld [vmem:[%s4885_s3 + $0x4a0] sm:$0xff] }
  0xd7   :  { %1248 = vmatpush.msra.mxu1 %v794_v54  ;;  %1205 = vmatpush.msra.mxu3 %v707_v3  ;;  %v995_v3 = vld [vmem:[%s4885_s3 + $0xa28] sm:$0xff] }
  0xd8   :  { %1229 = vmatpush.msra.mxu0 %v743_v52  ;;  %1267 = vmatpush.msra.mxu2 %v845_v1  ;;  %v815_v52 = vld [vmem:[%s4885_s3 + $0x488] sm:$0xff] }
  0xd9   :  { %1249 = vmatpush.msra.mxu1 %v791_v58  ;;  %1206 = vmatpush.msra.mxu3 %v704_v7  ;;  %v947_v58 = vld [vmem:[%s4885_s3 + $0x8a8] sm:$0xff]  ;;  %v989_v7 = vld [vmem:[%s4885_s3 + $0x9f8] sm:$0xff] }
  0xda   :  { %1230 = vmatpush.msra.mxu0 %v740_v56  ;;  %1268 = vmatpush.msra.mxu2 %v842_v5  ;;  %v992_v5 = vld [vmem:[%s4885_s3 + $0xa10] sm:$0xff] }
  0xdb   :  { %1250 = vmatpush.msra.mxu1 %v788_v62  ;;  %1207 = vmatpush.msra.mxu3 %v701_v11  ;;  %v674_v62 = vld [vmem:[%s4885_s3 + $0x20] sm:$0xff]  ;;  %v983_v11 = vld [vmem:[%s4885_s3 + $0x9c8] sm:$0xff] }
  0xdc   :  { %1231 = vmatpush.msra.mxu0 %v737_v60  ;;  %1269 = vmatpush.msra.mxu2 %v839_v9  ;;  %v944_v60 = vld [vmem:[%s4885_s3 + $0x890] sm:$0xff]  ;;  %v986_v9 = vld [vmem:[%s4885_s3 + $0x9e0] sm:$0xff] }
  0xdd   :  { %1251 = vmatpush.msra.mxu1 %v785_v2  ;;  %1208 = vmatpush.msra.mxu3 %v698_v16  ;;  %v671_v2 = vld [vmem:[%s4885_s3 + $0x8] sm:$0xff]  ;;  %v309_v16 = vperm.slane %v3232_v12, 6 }
  0xde   :  { %1232 = vmatpush.msra.mxu0 %v734_v0  ;;  %1270 = vmatpush.msra.mxu2 %v836_v33  ;;  %v941_v0 = vld [vmem:[%s4885_s3 + $0x878] sm:$0xff]  ;;  %v980_v33 = vld [vmem:[%s4885_s3 + $0x9b0] sm:$0xff] }
  0xdf   :  { %1252 = vmatpush.msra.mxu1 %v782_v6  ;;  %1209 = vmatpush.msra.mxu3 %v695_v19  ;;  %v935_v6 = vld [vmem:[%s4885_s3 + $0x848] sm:$0xff] }
  0xe0   :  { %1233 = vmatpush.msra.mxu0 %v731_v4  ;;  %1271 = vmatpush.msra.mxu2 %v833_v17  ;;  %v938_v4 = vld [vmem:[%s4885_s3 + $0x860] sm:$0xff] }
  0xe1   :  { %1253 = vmatpush.msra.mxu1 %v779_v10  ;;  %1210 = vmatpush.msra.mxu3 %v692_v26  ;;  %v929_v10 = vld [vmem:[%s4885_s3 + $0x818] sm:$0xff]  ;;  %v974_v17 = vld [vmem:[%s4885_s3 + $0x980] sm:$0xff]  ;;  %v911_v26 = vld [vmem:[%s4885_s3 + $0x788] sm:$0xff] }
  0xe2   :  { %1234 = vmatpush.msra.mxu0 %v728_v8  ;;  %1272 = vmatpush.msra.mxu2 %v830_v23  ;;  %v932_v8 = vld [vmem:[%s4885_s3 + $0x830] sm:$0xff]  ;;  %v914_v23 = vld [vmem:[%s4885_s3 + $0x7a0] sm:$0xff] }
  0xe3   :  { %v511_v20 = vpop.f32.mrf.mxu0  ;;  %1254 = vmatpush.msra.mxu1 %v776_v15  ;;  %1211 = vmatpush.msra.mxu3 %v689_v29  ;;  %v977_v15 = vld [vmem:[%s4885_s3 + $0x998] sm:$0xff] }
  0xe4   :  { %1235 = vmatpush.msra.mxu0 %v725_v13  ;;  %v512_v24 = vadd.f32 %v511_v20, %v307_v14  ;;  %1273 = vmatpush.msra.mxu2 %v827_v27  ;;  %v926_v13 = vld [vmem:[%s4885_s3 + $0x800] sm:$0xff]  ;;  %v923_v14 = vld [vmem:[%s4885_s3 + $0x7e8] sm:$0xff]  ;;  %v965_v29 = vld [vmem:[%s4885_s3 + $0x938] sm:$0xff] }
  0xe5   :  { %1255 = vmatpush.msra.mxu1 %v773_v18  ;;  %1212 = vmatpush.msra.mxu3 %v686_v36  ;;  %v917_v18 = vld [vmem:[%s4885_s3 + $0x7b8] sm:$0xff]  ;;  %v971_v20 = vld [vmem:[%s4885_s3 + $0x968] sm:$0xff] }
  0xe6   :  { %1236 = vmatpush.msra.mxu0 %v722_v39  ;;  %v532_v30 = vpop.f32.mrf.mxu1  ;;  %1274 = vmatpush.msra.mxu2 %v824_v34  ;;  %v920_v39 = vld [vmem:[%s4885_s3 + $0x7d0] sm:$0xff] }
  0xe7   :  { %1256 = vmatpush.msra.mxu1 %v770_v25  ;;  %v533_v35 = vadd.f32 %v532_v30, %v512_v24  ;;  %1213 = vmatpush.msra.mxu3 %v683_v43  ;;  %v968_v24 = vld [vmem:[%s4885_s3 + $0x950] sm:$0xff]  ;;  %v813_v30 = vld [vmem:[%s4885_s3 + $0x478] sm:$0xff]  ;;  %v959_v43 = vld [vmem:[%s4885_s3 + $0x908] sm:$0xff] }
  0xe8   :  { %1237 = vmatpush.msra.mxu0 %v719_v21  ;;  %1275 = vmatpush.msra.mxu2 %v821_v37  ;;  %v1028_v34 = vld [vmem:[%s4885_s3 + $0xb30] sm:$0xff]  ;;  %v810_v37 = vld [vmem:[%s4885_s3 + $0x460] sm:$0xff] }
  0xe9   :  { %1257 = vmatpush.msra.mxu1 %v767_v28  ;;  %v3582_v38 = vmax.f32 %v533_v35, 0.0  ;;  %v553_v40 = vpop.f32.mrf.mxu2  ;;  %1214 = vmatpush.msra.mxu3 %v680_v49  ;;  %v310_v28 = vperm.slane %v3232_v12, 7  ;;  %v962_v12 = vld [vmem:[%s4885_s3 + $0x920] sm:$0xff]  ;;  %v804_v49 = vld [vmem:[%s4885_s3 + $0x430] sm:$0xff] }
  0xea   :  { %v554_v44 = vadd.f32 %v553_v40, %v308_v31  ;;  %1276 = vmatpush.msra.mxu2 %v818_v46  ;;  %v861_v46 = vld [vmem:[%s4885_s3 + $0x5f8] sm:$0xff] }
  0xeb   :  { %v513_v45 = vpop.f32.mrf.mxu0  ;;  %1138 = vmatmul.f32.vlgmr.msrb.gmra.mxu0 %v3582_v38  ;;  %1215 = vmatpush.msra.mxu3 %v677_v57  ;;  %v905_v57 = vld [vmem:[%s4885_s3 + $0x758] sm:$0xff] }
  0xec   :  { %v574_v47 = vpop.f32.mrf.mxu3  ;;  %1302 = vmatpush.msrb.mxu0 %v956_v42  ;;  %1277 = vmatpush.msra.mxu2 %v815_v52  ;;  %v1025_v42 = vld [vmem:[%s4885_s3 + $0xb18] sm:$0xff]  ;;  %v807_v45 = vld [vmem:[%s4885_s3 + $0x448] sm:$0xff] }
  0xed   :  { %v575_v51 = vadd.f32 %v574_v47, %v554_v44  ;;  %1216 = vmatpush.msra.mxu3 %v674_v62  ;;  %v798_v62 = vld [vmem:[%s4885_s3 + $0x400] sm:$0xff] }
  0xee   :  { %1303 = vmatpush.msrb.mxu0 %v953_v48  ;;  %v534_v56 = vpop.f32.mrf.mxu1  ;;  %v1022_v48 = vld [vmem:[%s4885_s3 + $0xb00] sm:$0xff] }
  0xef   :  { %v3606_v54 = vmax.f32 %v575_v51, 0.0  ;;  %1217 = vmatpush.msra.mxu3 %v671_v2  ;;  %v801_v56 = vld [vmem:[%s4885_s3 + $0x418] sm:$0xff]  ;;  %v795_v2 = vld [vmem:[%s4885_s3 + $0x3e8] sm:$0xff] }
  0xf0   :  { %1304 = vmatpush.msrb.mxu0 %v950_v53  ;;  %v908_v53 = vld [vmem:[%s4885_s3 + $0x770] sm:$0xff] }
  0xf1   :  { %1158 = vmatmul.f32.vlgmr.msrb.gmra.mxu1 %v3606_v54  ;;  %v555_v61 = vpop.f32.mrf.mxu2 }
  0xf2   :  { %1322 = vmatpush.msrb.mxu1 %v1004_v55  ;;  %1305 = vmatpush.msrb.mxu0 %v947_v58  ;;  %v1019_v55 = vld [vmem:[%s4885_s3 + $0xae8] sm:$0xff]  ;;  %v1016_v58 = vld [vmem:[%s4885_s3 + $0xad0] sm:$0xff]  ;;  %v858_v61 = vld [vmem:[%s4885_s3 + $0x5e0] sm:$0xff] }
  0xf3   :  { %1238 = vmatmul.f32.vlgmr.msra.gmra.mxu0 %v3314_v50 }
  0xf4   :  { %1323 = vmatpush.msrb.mxu1 %v1001_v59  ;;  %v576_v1 = vpop.f32.mrf.mxu3  ;;  %1306 = vmatpush.msrb.mxu0 %v944_v60 }
  0xf5   :  { %v855_v1 = vld [vmem:[%s4885_s3 + $0x5c8] sm:$0xff] }
  0xf6   :  { %1324 = vmatpush.msrb.mxu1 %v998_v63  ;;  %1307 = vmatpush.msrb.mxu0 %v941_v0  ;;  %v902_v63 = vld [vmem:[%s4885_s3 + $0x740] sm:$0xff]  ;;  %v1013_v0 = vld [vmem:[%s4885_s3 + $0xab8] sm:$0xff] }
  0xf8   :  { %1325 = vmatpush.msrb.mxu1 %v995_v3  ;;  %1308 = vmatpush.msrb.mxu0 %v938_v4  ;;  %v899_v3 = vld [vmem:[%s4885_s3 + $0x728] sm:$0xff]  ;;  %v1010_v4 = vld [vmem:[%s4885_s3 + $0xaa0] sm:$0xff] }
  0xf9   :  { %1258 = vmatmul.f32.vlgmr.msra.gmra.mxu1 %v3394_v22 }
  0xfa   :  { %1326 = vmatpush.msrb.mxu1 %v992_v5  ;;  %1309 = vmatpush.msrb.mxu0 %v935_v6  ;;  %v852_v5 = vld [vmem:[%s4885_s3 + $0x5b0] sm:$0xff] }
  0xfb   :  { %v896_v6 = vld [vmem:[%s4885_s3 + $0x710] sm:$0xff] }
  0xfc   :  { %1327 = vmatpush.msrb.mxu1 %v989_v7  ;;  %1310 = vmatpush.msrb.mxu0 %v932_v8  ;;  %v1007_v7 = vld [vmem:[%s4885_s3 + $0xa88] sm:$0xff]  ;;  %v792_v8 = vld [vmem:[%s4885_s3 + $0x3d0] sm:$0xff] }
  0xfe   :  { %1328 = vmatpush.msrb.mxu1 %v986_v9  ;;  %1311 = vmatpush.msrb.mxu0 %v929_v10  ;;  %v849_v9 = vld [vmem:[%s4885_s3 + $0x598] sm:$0xff] }
  0xff   :  { %v717_v10 = vld [vmem:[%s4885_s3 + $0x178] sm:$0xff] }
 0x100   :  { %1329 = vmatpush.msrb.mxu1 %v983_v11  ;;  %1312 = vmatpush.msrb.mxu0 %v926_v13  ;;  %v893_v11 = vld [vmem:[%s4885_s3 + $0x6f8] sm:$0xff] }
 0x101   :  { %v789_v13 = vld [vmem:[%s4885_s3 + $0x3b8] sm:$0xff] }
 0x102   :  { %1330 = vmatpush.msrb.mxu1 %v980_v33  ;;  %1313 = vmatpush.msrb.mxu0 %v923_v14  ;;  %v846_v33 = vld [vmem:[%s4885_s3 + $0x580] sm:$0xff] }
 0x103   :  { %v714_v14 = vld [vmem:[%s4885_s3 + $0x160] sm:$0xff] }
 0x104   :  { %1331 = vmatpush.msrb.mxu1 %v977_v15  ;;  %1314 = vmatpush.msrb.mxu0 %v920_v39  ;;  %v890_v15 = vld [vmem:[%s4885_s3 + $0x6e0] sm:$0xff]  ;;  %v843_v39 = vld [vmem:[%s4885_s3 + $0x568] sm:$0xff] }
 0x105   :  { %v595_v19 = vpop.f32.mrf.mxu0 }
 0x106   :  { %v596_v21 = vadd.f32 %v595_v19, %v309_v16  ;;  %1332 = vmatpush.msrb.mxu1 %v974_v17  ;;  %1315 = vmatpush.msrb.mxu0 %v917_v18  ;;  %v786_v16 = vld [vmem:[%s4885_s3 + $0x3a0] sm:$0xff]  ;;  %v711_v17 = vld [vmem:[%s4885_s3 + $0x148] sm:$0xff] }
 0x107   :  { %v616_v25 = vpop.f32.mrf.mxu1  ;;  %v887_v18 = vld [vmem:[%s4885_s3 + $0x6c8] sm:$0xff] }
 0x108   :  { %1333 = vmatpush.msrb.mxu1 %v971_v20  ;;  %v617_v27 = vadd.f32 %v616_v25, %v596_v21  ;;  %1316 = vmatpush.msrb.mxu0 %v914_v23  ;;  %v783_v19 = vld [vmem:[%s4885_s3 + $0x388] sm:$0xff]  ;;  %v840_v20 = vld [vmem:[%s4885_s3 + $0x550] sm:$0xff]  ;;  %v837_v25 = vld [vmem:[%s4885_s3 + $0x538] sm:$0xff] }
 0x109   :  { %v708_v21 = vld [vmem:[%s4885_s3 + $0x130] sm:$0xff] }
 0x10a   :  { %1334 = vmatpush.msrb.mxu1 %v968_v24  ;;  %v3706_v31 = vmax.f32 %v617_v27, 0.0  ;;  %1317 = vmatpush.msrb.mxu0 %v911_v26  ;;  %v884_v23 = vld [vmem:[%s4885_s3 + $0x6b0] sm:$0xff]  ;;  %v705_v26 = vld [vmem:[%s4885_s3 + $0x118] sm:$0xff] }
 0x10b   :  { %v637_v35 = vpop.f32.mrf.mxu2  ;;  %1318 = vmatmul.f32.vlgmr.msrb.gmra.mxu0 %v3606_v54  ;;  %v780_v24 = vld [vmem:[%s4885_s3 + $0x370] sm:$0xff]  ;;  %v881_v27 = vld [vmem:[%s4885_s3 + $0x698] sm:$0xff] }
 0x10c   :  { %v658_v36 = vpop.f32.mrf.mxu3  ;;  %1335 = vmatpush.msrb.mxu1 %v965_v29  ;;  %v638_v40 = vadd.f32 %v637_v35, %v310_v28  ;;  %1178 = vmatmul.f32.vlgmr.msrb.gmra.mxu2 %v3706_v31  ;;  %v777_v28 = vld [vmem:[%s4885_s3 + $0x358] sm:$0xff]  ;;  %v834_v29 = vld [vmem:[%s4885_s3 + $0x520] sm:$0xff]  ;;  %v831_v35 = vld [vmem:[%s4885_s3 + $0x508] sm:$0xff] }
 0x10d   :  { %1402 = vmatpush.msra.mxu0 %v813_v30  ;;  %v597_v44 = vpop.f32.mrf.mxu0  ;;  %1350 = vmatpush.msrb.mxu2 %v1028_v34  ;;  %v702_v30 = vld [vmem:[%s4885_s3 + $0x100] sm:$0xff] }
 0x10e   :  { %1336 = vmatpush.msrb.mxu1 %v962_v12  ;;  %v659_v47 = vadd.f32 %v658_v36, %v638_v40  ;;  %v878_v34 = vld [vmem:[%s4885_s3 + $0x680] sm:$0xff]  ;;  %v699_v36 = vld [vmem:[%s4885_s3 + $0xe8] sm:$0xff]  ;;  %v872_v44 = vld [vmem:[%s4885_s3 + $0x650] sm:$0xff] }
 0x10f   :  { %1403 = vmatpush.msra.mxu0 %v810_v37  ;;  %1351 = vmatpush.msrb.mxu2 %v1025_v42  ;;  %v618_v51 = vpop.f32.mrf.mxu1  ;;  %v774_v12 = vld [vmem:[%s4885_s3 + $0x340] sm:$0xff]  ;;  %v875_v37 = vld [vmem:[%s4885_s3 + $0x668] sm:$0xff]  ;;  %v828_v42 = vld [vmem:[%s4885_s3 + $0x4f0] sm:$0xff] }
 0x110   :  { %1337 = vmatpush.msrb.mxu1 %v959_v43  ;;  %v3737_v52 = vmax.f32 %v659_v47, 0.0  ;;  %v771_v40 = vld [vmem:[%s4885_s3 + $0x328] sm:$0xff]  ;;  %v696_v43 = vld [vmem:[%s4885_s3 + $0xd0] sm:$0xff]  ;;  %v693_v47 = vld [vmem:[%s4885_s3 + $0xb8] sm:$0xff] }
 0x111   :  { %1404 = vmatpush.msra.mxu0 %v807_v45  ;;  %1352 = vmatpush.msrb.mxu2 %v1022_v48  ;;  %v768_v45 = vld [vmem:[%s4885_s3 + $0x310] sm:$0xff]  ;;  %v869_v48 = vld [vmem:[%s4885_s3 + $0x638] sm:$0xff]  ;;  %v822_v51 = vld [vmem:[%s4885_s3 + $0x4c0] sm:$0xff] }
 0x112   :  { %1422 = vmatpush.msra.mxu1 %v861_v46  ;;  %2156 = vmatmul.msk.f32.vlgmr.msrb.gmra.mxu3 %vm1038_vm0, %v3737_v52  ;;  %v825_v46 = vld [vmem:[%s4885_s3 + $0x4d8] sm:$0xff] }
 0x113   :  { %1338 = vmatmul.f32.vlgmr.msrb.gmra.mxu1 %v3706_v31  ;;  %1405 = vmatpush.msra.mxu0 %v804_v49  ;;  %v639_v59 = vpop.f32.mrf.mxu2  ;;  %v1005_v49 = vld [vmem:[%s4885_s3 + $0xa78] sm:$0xff] }
 0x114   :  { %1282 = vmatpush.msrb.mxu3 %v908_v53  ;;  %1353 = vmatpush.msrb.mxu2 %v1019_v55  ;;  %v660_v60 = vpop.f32.mrf.mxu3  ;;  %v690_v53 = vld [vmem:[%s4885_s3 + $0xa0] sm:$0xff]  ;;  %v863_v59 = vld [vmem:[%s4885_s3 + $0x608] sm:$0xff] }
 0x115   :  { %1278 = vmatmul.f32.vlgmr.msra.gmra.mxu2 %v3415_v32  ;;  %1406 = vmatpush.msra.mxu0 %v801_v56  ;;  %v866_v55 = vld [vmem:[%s4885_s3 + $0x620] sm:$0xff]  ;;  %v816_v60 = vld [vmem:[%s4885_s3 + $0x490] sm:$0xff] }
 0x116   :  { %1283 = vmatpush.msrb.mxu3 %v905_v57  ;;  %1354 = vmatpush.msrb.mxu2 %v1016_v58  ;;  %v1002_v56 = vld [vmem:[%s4885_s3 + $0xa60] sm:$0xff]  ;;  %v819_v57 = vld [vmem:[%s4885_s3 + $0x4a8] sm:$0xff] }
 0x117   :  { %1423 = vmatpush.msra.mxu1 %v858_v61  ;;  %1407 = vmatpush.msra.mxu0 %v798_v62  ;;  %v687_v58 = vld [vmem:[%s4885_s3 + $0x88] sm:$0xff]  ;;  %v684_v61 = vld [vmem:[%s4885_s3 + $0x70] sm:$0xff]  ;;  %v765_v62 = vld [vmem:[%s4885_s3 + $0x2f8] sm:$0xff] }
 0x118   :  { %1284 = vmatpush.msrb.mxu3 %v902_v63  ;;  %1355 = vmatpush.msrb.mxu2 %v1013_v0  ;;  %v996_v63 = vld [vmem:[%s4885_s3 + $0xa30] sm:$0xff]  ;;  %v1029_v0 = vld [vmem:[%s4885_s3 + $0xb38] sm:$0xff] }
 0x119   :  { %1424 = vmatpush.msra.mxu1 %v855_v1  ;;  %1408 = vmatpush.msra.mxu0 %v795_v2  ;;  %v681_v1 = vld [vmem:[%s4885_s3 + $0x58] sm:$0xff]  ;;  %v762_v2 = vld [vmem:[%s4885_s3 + $0x2e0] sm:$0xff] }
 0x11a   :  { %1285 = vmatpush.msrb.mxu3 %v899_v3  ;;  %1356 = vmatpush.msrb.mxu2 %v1010_v4  ;;  %v993_v3 = vld [vmem:[%s4885_s3 + $0xa18] sm:$0xff]  ;;  %v1026_v4 = vld [vmem:[%s4885_s3 + $0xb20] sm:$0xff] }
 0x11b   :  { %1425 = vmatpush.msra.mxu1 %v852_v5  ;;  %1218 = vmatmul.f32.vlgmr.msra.gmra.mxu3 %v3296_v41  ;;  %v678_v5 = vld [vmem:[%s4885_s3 + $0x40] sm:$0xff] }
 0x11c   :  { %1286 = vmatpush.msrb.mxu3 %v896_v6  ;;  %1357 = vmatpush.msrb.mxu2 %v1007_v7  ;;  %v759_v6 = vld [vmem:[%s4885_s3 + $0x2c8] sm:$0xff] }
 0x11d   :  { %1409 = vmatpush.msra.mxu0 %v792_v8  ;;  %1426 = vmatpush.msra.mxu1 %v849_v9  ;;  %v1023_v7 = vld [vmem:[%s4885_s3 + $0xb08] sm:$0xff]  ;;  %v756_v9 = vld [vmem:[%s4885_s3 + $0x2b0] sm:$0xff] }
 0x11e   :  { %1362 = vmatpush.msra.mxu2 %v717_v10  ;;  %1287 = vmatpush.msrb.mxu3 %v893_v11  ;;  %v675_v8 = vld [vmem:[%s4885_s3 + $0x28] sm:$0xff]  ;;  %v1020_v11 = vld [vmem:[%s4885_s3 + $0xaf0] sm:$0xff] }
 0x11f   :  { %2157 = vmatmul.msk.f32.vlgmr.msrb.gmra.mxu2 %vm1038_vm0, %v3737_v52  ;;  %1410 = vmatpush.msra.mxu0 %v789_v13  ;;  %v987_v10 = vld [vmem:[%s4885_s3 + $0x9e8] sm:$0xff]  ;;  %v672_v13 = vld [vmem:[%s4885_s3 + $0x10] sm:$0xff] }
 0x120   :  { %1427 = vmatpush.msra.mxu1 %v846_v33  ;;  %1363 = vmatpush.msra.mxu2 %v714_v14  ;;  %v753_v33 = vld [vmem:[%s4885_s3 + $0x298] sm:$0xff]  ;;  %v984_v14 = vld [vmem:[%s4885_s3 + $0x9d0] sm:$0xff] }
 0x121   :  { %1288 = vmatpush.msrb.mxu3 %v890_v15  ;;  %1411 = vmatpush.msra.mxu0 %v786_v16  ;;  %v1017_v15 = vld [vmem:[%s4885_s3 + $0xad8] sm:$0xff]  ;;  %v750_v16 = vld [vmem:[%s4885_s3 + $0x280] sm:$0xff] }
 0x122   :  { %1428 = vmatpush.msra.mxu1 %v843_v39  ;;  %1364 = vmatpush.msra.mxu2 %v711_v17  ;;  %v909_v39 = vld [vmem:[%s4885_s3 + $0x778] sm:$0xff] }
 0x123   :  { %1289 = vmatpush.msrb.mxu3 %v887_v18  ;;  %1412 = vmatpush.msra.mxu0 %v783_v19  ;;  %v981_v17 = vld [vmem:[%s4885_s3 + $0x9b8] sm:$0xff]  ;;  %v1014_v18 = vld [vmem:[%s4885_s3 + $0xac0] sm:$0xff]  ;;  %v747_v19 = vld [vmem:[%s4885_s3 + $0x268] sm:$0xff] }
 0x124   :  { %1429 = vmatpush.msra.mxu1 %v840_v20  ;;  %1365 = vmatpush.msra.mxu2 %v708_v21  ;;  %v906_v20 = vld [vmem:[%s4885_s3 + $0x760] sm:$0xff] }
 0x125   :  { %1290 = vmatpush.msrb.mxu3 %v884_v23  ;;  %1413 = vmatpush.msra.mxu0 %v780_v24  ;;  %v978_v21 = vld [vmem:[%s4885_s3 + $0x9a0] sm:$0xff]  ;;  %v1011_v23 = vld [vmem:[%s4885_s3 + $0xaa8] sm:$0xff]  ;;  %v744_v24 = vld [vmem:[%s4885_s3 + $0x250] sm:$0xff] }
 0x126   :  { %1430 = vmatpush.msra.mxu1 %v837_v25  ;;  %1366 = vmatpush.msra.mxu2 %v705_v26  ;;  %v975_v25 = vld [vmem:[%s4885_s3 + $0x988] sm:$0xff]  ;;  %v1008_v26 = vld [vmem:[%s4885_s3 + $0xa90] sm:$0xff] }
 0x127   :  { %1291 = vmatpush.msrb.mxu3 %v881_v27  ;;  %1414 = vmatpush.msra.mxu0 %v777_v28  ;;  %v741_v27 = vld [vmem:[%s4885_s3 + $0x238] sm:$0xff]  ;;  %v900_v28 = vld [vmem:[%s4885_s3 + $0x730] sm:$0xff] }
 0x128   :  { %1431 = vmatpush.msra.mxu1 %v834_v29  ;;  %1367 = vmatpush.msra.mxu2 %v702_v30  ;;  %v972_v29 = vld [vmem:[%s4885_s3 + $0x970] sm:$0xff]  ;;  %v738_v30 = vld [vmem:[%s4885_s3 + $0x220] sm:$0xff] }
 0x129   :  { %1292 = vmatpush.msrb.mxu3 %v878_v34  ;;  %1415 = vmatpush.msra.mxu0 %v774_v12  ;;  %v897_v34 = vld [vmem:[%s4885_s3 + $0x718] sm:$0xff] }
 0x12a   :  { %1432 = vmatpush.msra.mxu1 %v831_v35  ;;  %1368 = vmatpush.msra.mxu2 %v699_v36  ;;  %v969_v12 = vld [vmem:[%s4885_s3 + $0x958] sm:$0xff]  ;;  %v735_v35 = vld [vmem:[%s4885_s3 + $0x208] sm:$0xff]  ;;  %v894_v36 = vld [vmem:[%s4885_s3 + $0x700] sm:$0xff] }
 0x12b   :  { %1293 = vmatpush.msrb.mxu3 %v875_v37  ;;  %1416 = vmatpush.msra.mxu0 %v771_v40  ;;  %v966_v37 = vld [vmem:[%s4885_s3 + $0x940] sm:$0xff]  ;;  %v891_v40 = vld [vmem:[%s4885_s3 + $0x6e8] sm:$0xff] }
 0x12c   :  { %1433 = vmatpush.msra.mxu1 %v828_v42  ;;  %1369 = vmatpush.msra.mxu2 %v696_v43  ;;  %v963_v42 = vld [vmem:[%s4885_s3 + $0x928] sm:$0xff]  ;;  %v729_v43 = vld [vmem:[%s4885_s3 + $0x1d8] sm:$0xff] }
 0x12d   :  { %1294 = vmatpush.msrb.mxu3 %v872_v44  ;;  %1417 = vmatpush.msra.mxu0 %v768_v45  ;;  %v888_v44 = vld [vmem:[%s4885_s3 + $0x6d0] sm:$0xff] }
 0x12e   :  { %1434 = vmatpush.msra.mxu1 %v825_v46  ;;  %1370 = vmatpush.msra.mxu2 %v693_v47  ;;  %v960_v45 = vld [vmem:[%s4885_s3 + $0x910] sm:$0xff]  ;;  %v726_v46 = vld [vmem:[%s4885_s3 + $0x1c0] sm:$0xff]  ;;  %v885_v47 = vld [vmem:[%s4885_s3 + $0x6b8] sm:$0xff] }
 0x12f   :  { %1418 = vmatmul.f32.vlgmr.msra.gmra.mxu0 %v3394_v22  ;;  %1295 = vmatpush.msrb.mxu3 %v869_v48  ;;  %v999_v22 = vld [vmem:[%s4885_s3 + $0xa48] sm:$0xff] }
 0x130   :  { %1482 = vmatpush.msrb.mxu0 %v1005_v49  ;;  %1435 = vmatpush.msra.mxu1 %v822_v51  ;;  %v723_v48 = vld [vmem:[%s4885_s3 + $0x1a8] sm:$0xff]  ;;  %v882_v49 = vld [vmem:[%s4885_s3 + $0x6a0] sm:$0xff]  ;;  %v720_v51 = vld [vmem:[%s4885_s3 + $0x190] sm:$0xff] }
 0x131   :  { %1371 = vmatpush.msra.mxu2 %v690_v53  ;;  %1296 = vmatpush.msrb.mxu3 %v866_v55  ;;  %v879_v53 = vld [vmem:[%s4885_s3 + $0x688] sm:$0xff]  ;;  %v957_v55 = vld [vmem:[%s4885_s3 + $0x8f8] sm:$0xff] }
 0x132   :  { %1483 = vmatpush.msrb.mxu0 %v1002_v56  ;;  %1436 = vmatpush.msra.mxu1 %v819_v57  ;;  %v876_v56 = vld [vmem:[%s4885_s3 + $0x670] sm:$0xff]  ;;  %v1570_v57 = vld [vmem:[%s4887_s5 + $0x168] sm:$0xff] }
 0x133   :  { %1372 = vmatpush.msra.mxu2 %v687_v58  ;;  %1297 = vmatpush.msrb.mxu3 %v863_v59  ;;  %v1571_v58 = vld [vmem:[%s4887_s5 + $0x170] sm:$0xff]  ;;  %v873_v59 = vld [vmem:[%s4885_s3 + $0x658] sm:$0xff] }
 0x134   :  { %1484 = vmatpush.msrb.mxu0 %v999_v22  ;;  %1437 = vmatpush.msra.mxu1 %v816_v60  ;;  %v1568_v22 = vld [vmem:[%s4887_s5 + $0x158] sm:$0xff]  ;;  %v951_v60 = vld [vmem:[%s4885_s3 + $0x8c8] sm:$0xff] }
 0x135   :  { %1298 = vmatmul.f32.vlgmr.msrb.gmra.mxu3 %v3582_v38  ;;  %1373 = vmatpush.msra.mxu2 %v684_v61  ;;  %v1564_v61 = vld [vmem:[%s4887_s5 + $0x138] sm:$0xff] }
 0x136   :  { %1382 = vmatpush.msra.mxu3 %v765_v62  ;;  %1438 = vmatmul.f32.vlgmr.msra.gmra.mxu1 %v3415_v32  ;;  %v990_v32 = vld [vmem:[%s4885_s3 + $0xa00] sm:$0xff] }
 0x137   :  { %1485 = vmatpush.msrb.mxu0 %v996_v63  ;;  %1510 = vmatpush.msrb.mxu1 %v1029_v0  ;;  %v870_v62 = vld [vmem:[%s4885_s3 + $0x640] sm:$0xff]  ;;  %v948_v0 = vld [vmem:[%s4885_s3 + $0x8b0] sm:$0xff] }
 0x138   :  { %1374 = vmatpush.msra.mxu2 %v681_v1  ;;  %1383 = vmatpush.msra.mxu3 %v762_v2  ;;  %v1565_v63 = vld [vmem:[%s4887_s5 + $0x140] sm:$0xff]  ;;  %v867_v2 = vld [vmem:[%s4885_s3 + $0x628] sm:$0xff] }
 0x139   :  { %1486 = vmatpush.msrb.mxu0 %v993_v3  ;;  %1511 = vmatpush.msrb.mxu1 %v1026_v4  ;;  %v1561_v1 = vld [vmem:[%s4887_s5 + $0x120] sm:$0xff]  ;;  %v1562_v3 = vld [vmem:[%s4887_s5 + $0x128] sm:$0xff]  ;;  %v945_v4 = vld [vmem:[%s4885_s3 + $0x898] sm:$0xff] }
 0x13a   :  { %1375 = vmatpush.msra.mxu2 %v678_v5  ;;  %1384 = vmatpush.msra.mxu3 %v759_v6  ;;  %v1558_v5 = vld [vmem:[%s4887_s5 + $0x108] sm:$0xff]  ;;  %v864_v6 = vld [vmem:[%s4885_s3 + $0x610] sm:$0xff] }
 0x13b   :  { %1487 = vmatpush.msrb.mxu0 %v990_v32  ;;  %1512 = vmatpush.msrb.mxu1 %v1023_v7  ;;  %v1559_v32 = vld [vmem:[%s4887_s5 + $0x110] sm:$0xff]  ;;  %v942_v7 = vld [vmem:[%s4885_s3 + $0x880] sm:$0xff] }
 0x13c   :  { %1376 = vmatpush.msra.mxu2 %v675_v8  ;;  %1385 = vmatpush.msra.mxu3 %v756_v9  ;;  %v1555_v8 = vld [vmem:[%s4887_s5 + $0xf0] sm:$0xff]  ;;  %v1556_v9 = vld [vmem:[%s4887_s5 + $0xf8] sm:$0xff] }
 0x13d   :  { %1488 = vmatpush.msrb.mxu0 %v987_v10  ;;  %1513 = vmatpush.msrb.mxu1 %v1020_v11  ;;  %v939_v10 = vld [vmem:[%s4885_s3 + $0x868] sm:$0xff]  ;;  %v1552_v11 = vld [vmem:[%s4887_s5 + $0xd8] sm:$0xff] }
 0x13e   :  { %1377 = vmatpush.msra.mxu2 %v672_v13  ;;  %1386 = vmatpush.msra.mxu3 %v753_v33  ;;  %v1553_v13 = vld [vmem:[%s4887_s5 + $0xe0] sm:$0xff]  ;;  %v936_v33 = vld [vmem:[%s4885_s3 + $0x850] sm:$0xff] }
 0x13f   :  { %1489 = vmatpush.msrb.mxu0 %v984_v14  ;;  %1514 = vmatpush.msrb.mxu1 %v1017_v15  ;;  %v930_v14 = vld [vmem:[%s4885_s3 + $0x820] sm:$0xff]  ;;  %v927_v15 = vld [vmem:[%s4885_s3 + $0x808] sm:$0xff] }
 0x140   :  { %1378 = vmatmul.f32.vlgmr.msra.gmra.mxu2 %v3296_v41  ;;  %1387 = vmatpush.msra.mxu3 %v750_v16  ;;  %v903_v41 = vld [vmem:[%s4885_s3 + $0x748] sm:$0xff]  ;;  %v924_v16 = vld [vmem:[%s4885_s3 + $0x7f0] sm:$0xff] }
 0x141   :  { %1442 = vmatpush.msrb.mxu2 %v909_v39  ;;  %1490 = vmatpush.msrb.mxu0 %v981_v17  ;;  %v1549_v39 = vld [vmem:[%s4887_s5 + $0xc0] sm:$0xff]  ;;  %v1618_v17 = vld [vmem:[%s4887_s5 + $0x2e8] sm:$0xff] }
 0x142   :  { %1515 = vmatpush.msrb.mxu1 %v1014_v18  ;;  %1388 = vmatpush.msra.mxu3 %v747_v19  ;;  %v1550_v18 = vld [vmem:[%s4887_s5 + $0xc8] sm:$0xff] }
 0x143   :  { %1443 = vmatpush.msrb.mxu2 %v906_v20  ;;  %1491 = vmatpush.msrb.mxu0 %v978_v21  ;;  %v1546_v19 = vld [vmem:[%s4887_s5 + $0xa8] sm:$0xff]  ;;  %v1615_v20 = vld [vmem:[%s4887_s5 + $0x2d0] sm:$0xff] }
 0x144   :  { %1516 = vmatpush.msrb.mxu1 %v1011_v23  ;;  %1389 = vmatpush.msra.mxu3 %v744_v24  ;;  %v1547_v21 = vld [vmem:[%s4887_s5 + $0xb0] sm:$0xff]  ;;  %v921_v23 = vld [vmem:[%s4885_s3 + $0x7d8] sm:$0xff] }
 0x145   :  { %1444 = vmatpush.msrb.mxu2 %v903_v41  ;;  %1492 = vmatpush.msrb.mxu0 %v975_v25  ;;  %v1543_v24 = vld [vmem:[%s4887_s5 + $0x90] sm:$0xff]  ;;  %v1612_v41 = vld [vmem:[%s4887_s5 + $0x2b8] sm:$0xff] }
 0x146   :  { %1517 = vmatpush.msrb.mxu1 %v1008_v26  ;;  %1390 = vmatpush.msra.mxu3 %v741_v27  ;;  %v1544_v25 = vld [vmem:[%s4887_s5 + $0x98] sm:$0xff]  ;;  %v918_v26 = vld [vmem:[%s4885_s3 + $0x7c0] sm:$0xff]  ;;  %v915_v27 = vld [vmem:[%s4885_s3 + $0x7a8] sm:$0xff] }
 0x147   :  { %1445 = vmatpush.msrb.mxu2 %v900_v28  ;;  %2158 = vmatmul.msk.f32.vlgmr.msrb.gmra.mxu1 %vm1038_vm0, %v3737_v52  ;;  %v732_v52 = vld [vmem:[%s4885_s3 + $0x1f0] sm:$0xff] }
 0x148   :  { %1493 = vmatpush.msrb.mxu0 %v972_v29  ;;  %1391 = vmatpush.msra.mxu3 %v738_v30  ;;  %v912_v28 = vld [vmem:[%s4885_s3 + $0x790] sm:$0xff]  ;;  %v1540_v29 = vld [vmem:[%s4887_s5 + $0x78] sm:$0xff]  ;;  %v1609_v30 = vld [vmem:[%s4887_s5 + $0x2a0] sm:$0xff] }
 0x149   :  { %1446 = vmatpush.msrb.mxu2 %v897_v34  ;;  %1656 = vmatpush.msra.mxu1 %v1570_v57  ;;  %v1541_v34 = vld [vmem:[%s4887_s5 + $0x80] sm:$0xff] }
 0x14a   :  { %1494 = vmatpush.msrb.mxu0 %v969_v12  ;;  %1392 = vmatpush.msra.mxu3 %v735_v35  ;;  %v1537_v12 = vld [vmem:[%s4887_s5 + $0x60] sm:$0xff]  ;;  %v1606_v35 = vld [vmem:[%s4887_s5 + $0x288] sm:$0xff] }
 0x14b   :  { %1447 = vmatpush.msrb.mxu2 %v894_v36  ;;  %v1538_v36 = vld [vmem:[%s4887_s5 + $0x68] sm:$0xff]  ;;  %v1585_v57 = vld [vmem:[%s4887_s5 + $0x1e0] sm:$0xff] }
 0x14c   :  { %1495 = vmatpush.msrb.mxu0 %v966_v37  ;;  %1393 = vmatpush.msra.mxu3 %v732_v52  ;;  %v1534_v37 = vld [vmem:[%s4887_s5 + $0x48] sm:$0xff]  ;;  %v1603_v52 = vld [vmem:[%s4887_s5 + $0x270] sm:$0xff] }
 0x14d   :  { %1448 = vmatpush.msrb.mxu2 %v891_v40  ;;  %v1535_v40 = vld [vmem:[%s4887_s5 + $0x50] sm:$0xff] }
 0x14e   :  { %1496 = vmatpush.msrb.mxu0 %v963_v42  ;;  %1394 = vmatpush.msra.mxu3 %v729_v43  ;;  %v1531_v42 = vld [vmem:[%s4887_s5 + $0x30] sm:$0xff]  ;;  %v1600_v43 = vld [vmem:[%s4887_s5 + $0x258] sm:$0xff] }
 0x14f   :  { %1449 = vmatpush.msrb.mxu2 %v888_v44  ;;  %v1528_v44 = vld [vmem:[%s4887_s5 + $0x18] sm:$0xff] }
 0x150   :  { %1497 = vmatpush.msrb.mxu0 %v960_v45  ;;  %1395 = vmatpush.msra.mxu3 %v726_v46  ;;  %v1597_v45 = vld [vmem:[%s4887_s5 + $0x240] sm:$0xff] }
 0x151   :  { %1450 = vmatpush.msrb.mxu2 %v885_v47  ;;  %1498 = vmatmul.f32.vlgmr.msrb.gmra.mxu0 %v3706_v31  ;;  %v954_v31 = vld [vmem:[%s4885_s3 + $0x8e0] sm:$0xff] }
 0x152   :  { %1396 = vmatpush.msra.mxu3 %v723_v48  ;;  %1716 = vmatpush.msra.mxu0 %v1571_v58  ;;  %v1529_v46 = vld [vmem:[%s4887_s5 + $0x20] sm:$0xff]  ;;  %v1594_v48 = vld [vmem:[%s4887_s5 + $0x228] sm:$0xff]  ;;  %v1620_v58 = vld [vmem:[%s4887_s5 + $0x2f8] sm:$0xff] }
 0x153   :  { %1451 = vmatpush.msrb.mxu2 %v882_v49  ;;  %v1525_v47 = vld [vmem:[%s4887_s5] sm:$0xff]  ;;  %v1526_v49 = vld [vmem:[%s4887_s5 + $0x8] sm:$0xff] }
 0x154   :  { %1397 = vmatpush.msra.mxu3 %v720_v51  ;;  %1717 = vmatpush.msra.mxu0 %v1568_v22  ;;  %v1591_v51 = vld [vmem:[%s4887_s5 + $0x210] sm:$0xff]  ;;  %v1614_v22 = vld [vmem:[%s4887_s5 + $0x2c8] sm:$0xff] }
 0x155   :  { %1452 = vmatpush.msrb.mxu2 %v879_v53  ;;  %1398 = vmatmul.f32.vlgmr.msra.gmra.mxu3 %v3314_v50  ;;  %v1567_v50 = vld [vmem:[%s4887_s5 + $0x150] sm:$0xff]  ;;  %v4293_v53 = vld [vmem:[%s4888_s4] sm:$0x7] }
 0x156   :  { %1462 = vmatpush.msrb.mxu3 %v957_v55  ;;  %1657 = vmatpush.msra.mxu1 %v1567_v50  ;;  %v1032_v55 = vperm.slane %v4293_v53, 0  ;;  %v1617_v50 = vld [vmem:[%s4887_s5 + $0x2e0] sm:$0xff] }
 0x157   :  { %1453 = vmatpush.msrb.mxu2 %v876_v56  ;;  %1718 = vmatpush.msra.mxu0 %v1565_v63  ;;  %v1588_v56 = vld [vmem:[%s4887_s5 + $0x1f8] sm:$0xff]  ;;  %v1611_v63 = vld [vmem:[%s4887_s5 + $0x2b0] sm:$0xff] }
 0x158   :  { %1463 = vmatpush.msrb.mxu3 %v954_v31  ;;  %1658 = vmatpush.msra.mxu1 %v1564_v61  ;;  %v1059_v31 = vpop.f32.mrf.mxu0  ;;  %v1579_v61 = vld [vmem:[%s4887_s5 + $0x1b0] sm:$0xff] }
 0x159   :  { %1454 = vmatpush.msrb.mxu2 %v873_v59  ;;  %1719 = vmatpush.msra.mxu0 %v1562_v3  ;;  %v1582_v59 = vld [vmem:[%s4887_s5 + $0x1c8] sm:$0xff]  ;;  %v1099_v3 = vpop.f32.mrf.mxu2 }
 0x15a   :  { %1464 = vmatpush.msrb.mxu3 %v951_v60  ;;  %1659 = vmatpush.msra.mxu1 %v1561_v1  ;;  %v1060_v60 = vadd.f32 %v1059_v31, %v1032_v55 }
 0x15b   :  { %1455 = vmatpush.msrb.mxu2 %v870_v62  ;;  %1720 = vmatpush.msra.mxu0 %v1559_v32  ;;  %v1079_v62 = vpop.f32.mrf.mxu1  ;;  %v1569_v32 = vld [vmem:[%s4887_s5 + $0x160] sm:$0xff] }
 0x15c   :  { %1465 = vmatpush.msrb.mxu3 %v948_v0  ;;  %1660 = vmatpush.msra.mxu1 %v1558_v5  ;;  %v1576_v0 = vld [vmem:[%s4887_s5 + $0x198] sm:$0xff]  ;;  %v1080_v1 = vadd.f32 %v1079_v62, %v1060_v60 }
 0x15d   :  { %1456 = vmatpush.msrb.mxu2 %v867_v2  ;;  %1721 = vmatpush.msra.mxu0 %v1556_v9  ;;  %v1573_v2 = vld [vmem:[%s4887_s5 + $0x180] sm:$0xff]  ;;  %v1572_v5 = vld [vmem:[%s4887_s5 + $0x178] sm:$0xff] }
 0x15e   :  { %1466 = vmatpush.msrb.mxu3 %v945_v4  ;;  %1661 = vmatpush.msra.mxu1 %v1555_v8  ;;  %v1119_v4 = vpop.f32.mrf.mxu3  ;;  %v1605_v8 = vld [vmem:[%s4887_s5 + $0x280] sm:$0xff]  ;;  %v1636_v62 = vld [vmem:[%s4887_s5 + $0x378] sm:$0xff] }
 0x15f   :  { %1457 = vmatpush.msrb.mxu2 %v864_v6  ;;  %1722 = vmatpush.msra.mxu0 %v1553_v13  ;;  %v1608_v6 = vld [vmem:[%s4887_s5 + $0x298] sm:$0xff] }
 0x160   :  { %1458 = vmatmul.f32.vlgmr.msrb.gmra.mxu2 %v3582_v38  ;;  %1467 = vmatpush.msrb.mxu3 %v942_v7  ;;  %v933_v38 = vld [vmem:[%s4885_s3 + $0x838] sm:$0xff]  ;;  %v1100_v7 = vadd.f32 %v1099_v3, %v1080_v1  ;;  %v1633_v1 = vld [vmem:[%s4887_s5 + $0x360] sm:$0xff]  ;;  %v1630_v3 = vld [vmem:[%s4887_s5 + $0x348] sm:$0xff] }
 0x161   :  { %1662 = vmatpush.msra.mxu1 %v1552_v11  ;;  %1676 = vmatpush.msra.mxu2 %v1618_v17  ;;  %v1602_v11 = vld [vmem:[%s4887_s5 + $0x268] sm:$0xff]  ;;  %v1560_v17 = vld [vmem:[%s4887_s5 + $0x118] sm:$0xff] }
 0x162   :  { %1468 = vmatpush.msrb.mxu3 %v939_v10  ;;  %1723 = vmatpush.msra.mxu0 %v1550_v18  ;;  %v1566_v10 = vld [vmem:[%s4887_s5 + $0x148] sm:$0xff]  ;;  %v1120_v13 = vadd.f32 %v1119_v4, %v1100_v7  ;;  %v1596_v18 = vld [vmem:[%s4887_s5 + $0x238] sm:$0xff]  ;;  %v1627_v4 = vld [vmem:[%s4887_s5 + $0x330] sm:$0xff] }
 0x163   :  { %1663 = vmatpush.msra.mxu1 %v1549_v39  ;;  %1677 = vmatpush.msra.mxu2 %v1615_v20  ;;  %v1599_v39 = vld [vmem:[%s4887_s5 + $0x250] sm:$0xff]  ;;  %v1557_v20 = vld [vmem:[%s4887_s5 + $0x100] sm:$0xff] }
 0x164   :  { %1469 = vmatpush.msrb.mxu3 %v936_v33  ;;  %1724 = vmatpush.msra.mxu0 %v1547_v21  ;;  %v1593_v21 = vld [vmem:[%s4887_s5 + $0x220] sm:$0xff] }
 0x165   :  { %1664 = vmatpush.msra.mxu1 %v1546_v19  ;;  %1678 = vmatpush.msra.mxu2 %v1612_v41  ;;  %v1621_v7 = vld [vmem:[%s4887_s5 + $0x300] sm:$0xff] }
 0x166   :  { %1470 = vmatpush.msrb.mxu3 %v933_v38  ;;  %1725 = vmatpush.msra.mxu0 %v1544_v25  ;;  %v1554_v25 = vld [vmem:[%s4887_s5 + $0xe8] sm:$0xff] }
 0x167   :  { %1665 = vmatpush.msra.mxu1 %v1543_v24  ;;  %1679 = vmatpush.msra.mxu2 %v1609_v30  ;;  %v1584_v30 = vld [vmem:[%s4887_s5 + $0x1d8] sm:$0xff] }
 0x168   :  { %1471 = vmatpush.msrb.mxu3 %v930_v14  ;;  %1726 = vmatpush.msra.mxu0 %v1541_v34  ;;  %v1139_v9 = vpop.f32.mrf.mxu0  ;;  %v1545_v34 = vld [vmem:[%s4887_s5 + $0xa0] sm:$0xff] }
 0x169   :  { %1666 = vmatpush.msra.mxu1 %v1540_v29  ;;  %1680 = vmatpush.msra.mxu2 %v1606_v35  ;;  %v1140_v38 = vadd.f32 %v1139_v9, %v1120_v13  ;;  %v1548_v29 = vld [vmem:[%s4887_s5 + $0xb8] sm:$0xff]  ;;  %v1542_v35 = vld [vmem:[%s4887_s5 + $0x88] sm:$0xff]  ;;  %v1619_v9 = vld [vmem:[%s4887_s5 + $0x2f0] sm:$0xff] }
 0x16a   :  { %1472 = vmatpush.msrb.mxu3 %v927_v15  ;;  %1727 = vmatpush.msra.mxu0 %v1538_v36  ;;  %v1578_v36 = vld [vmem:[%s4887_s5 + $0x1a8] sm:$0xff]  ;;  %v1631_v13 = vld [vmem:[%s4887_s5 + $0x350] sm:$0xff] }
 0x16b   :  { %1667 = vmatpush.msra.mxu1 %v1537_v12  ;;  %1681 = vmatpush.msra.mxu2 %v1603_v52  ;;  %v1581_v12 = vld [vmem:[%s4887_s5 + $0x1c0] sm:$0xff]  ;;  %v1575_v52 = vld [vmem:[%s4887_s5 + $0x190] sm:$0xff] }
 0x16c   :  { %1473 = vmatpush.msrb.mxu3 %v924_v16  ;;  %1728 = vmatpush.msra.mxu0 %v1535_v40  ;;  %v1563_v16 = vld [vmem:[%s4887_s5 + $0x130] sm:$0xff]  ;;  %v1536_v40 = vld [vmem:[%s4887_s5 + $0x58] sm:$0xff] }
 0x16d   :  { %1668 = vmatpush.msra.mxu1 %v1534_v37  ;;  %1682 = vmatpush.msra.mxu2 %v1600_v43  ;;  %v1539_v37 = vld [vmem:[%s4887_s5 + $0x70] sm:$0xff]  ;;  %v1533_v43 = vld [vmem:[%s4887_s5 + $0x40] sm:$0xff] }
 0x16e   :  { %1474 = vmatpush.msrb.mxu3 %v921_v23  ;;  %v1159_v33 = vpop.f32.mrf.mxu1 }
 0x16f   :  { %1669 = vmatpush.msra.mxu1 %v1531_v42  ;;  %1683 = vmatpush.msra.mxu2 %v1597_v45  ;;  %v1160_v15 = vadd.f32 %v1159_v33, %v1140_v38  ;;  %v1033_v42 = vperm.slane %v4293_v53, 1  ;;  %v1613_v33 = vld [vmem:[%s4887_s5 + $0x2c0] sm:$0xff]  ;;  %v1628_v38 = vld [vmem:[%s4887_s5 + $0x338] sm:$0xff] }
 0x170   :  { %1475 = vmatpush.msrb.mxu3 %v918_v26  ;;  %v1590_v26 = vld [vmem:[%s4887_s5 + $0x208] sm:$0xff] }
 0x171   :  { %1670 = vmatpush.msra.mxu1 %v1528_v44  ;;  %1684 = vmatpush.msra.mxu2 %v1594_v48  ;;  %v1530_v44 = vld [vmem:[%s4887_s5 + $0x28] sm:$0xff] }
 0x172   :  { %1476 = vmatpush.msrb.mxu3 %v915_v27  ;;  %v1551_v27 = vld [vmem:[%s4887_s5 + $0xd0] sm:$0xff] }
 0x173   :  { %1671 = vmatpush.msra.mxu1 %v1525_v47  ;;  %1685 = vmatpush.msra.mxu2 %v1591_v51  ;;  %v1239_v47 = vpop.f32.mrf.mxu0 }
 0x174   :  { %1477 = vmatpush.msrb.mxu3 %v912_v28  ;;  %v1587_v28 = vld [vmem:[%s4887_s5 + $0x1f0] sm:$0xff] }
 0x175   :  { %1478 = vmatmul.f32.vlgmr.msrb.gmra.mxu3 %v3606_v54  ;;  %v1532_v54 = vld [vmem:[%s4887_s5 + $0x38] sm:$0xff]  ;;  %1686 = vmatpush.msra.mxu2 %v1588_v56 }
 0x176   :  { %1729 = vmatpush.msra.mxu0 %v1532_v54 }
 0x177   :  { %1687 = vmatpush.msra.mxu2 %v1585_v57 }
 0x178   :  { %1730 = vmatpush.msra.mxu0 %v1529_v46  ;;  %v1527_v46 = vld [vmem:[%s4887_s5 + $0x10] sm:$0xff] }
 0x179   :  { %1688 = vmatpush.msra.mxu2 %v1582_v59 }
 0x17a   :  { %1731 = vmatpush.msra.mxu0 %v1526_v49  ;;  %v1259_v49 = vpop.f32.mrf.mxu1 }
 0x17b   :  { %1689 = vmatpush.msra.mxu2 %v1579_v61 }
 0x17c   :  { %1796 = vmatpush.msrb.mxu0 %v1620_v58 }
 0x17d   :  { %1690 = vmatpush.msra.mxu2 %v1576_v0 }
 0x17e   :  { %1797 = vmatpush.msrb.mxu0 %v1617_v50  ;;  %v1642_v50 = vld [vmem:[%s4887_s5 + $0x3a8] sm:$0xff] }
 0x17f   :  { %1691 = vmatpush.msra.mxu2 %v1573_v2  ;;  %1704 = vmatpush.msra.mxu3 %v1642_v50  ;;  %v1867_v50 = vld [vmem:[%s4889_s7 + $0xe0] sm:$0xff] }
 0x180   :  { %1798 = vmatpush.msrb.mxu0 %v1614_v22  ;;  %v1639_v22 = vld [vmem:[%s4887_s5 + $0x390] sm:$0xff] }
 0x181   :  { %1776 = vmatpush.msrb.mxu2 %v1572_v5  ;;  %1705 = vmatpush.msra.mxu3 %v1639_v22  ;;  %v1624_v5 = vld [vmem:[%s4887_s5 + $0x318] sm:$0xff]  ;;  %v1909_v22 = vld [vmem:[%s4889_s7 + $0x230] sm:$0xff] }
 0x182   :  { %1799 = vmatpush.msrb.mxu0 %v1611_v63 }
 0x183   :  { %1777 = vmatpush.msrb.mxu2 %v1569_v32  ;;  %1706 = vmatpush.msra.mxu3 %v1636_v62  ;;  %v1640_v32 = vld [vmem:[%s4887_s5 + $0x398] sm:$0xff]  ;;  %v1905_v62 = vld [vmem:[%s4889_s7 + $0x210] sm:$0xff] }
 0x184   :  { %1800 = vmatpush.msrb.mxu0 %v1608_v6  ;;  %v1643_v6 = vld [vmem:[%s4887_s5 + $0x3b0] sm:$0xff] }
 0x185   :  { %1778 = vmatpush.msrb.mxu2 %v1566_v10  ;;  %1707 = vmatpush.msra.mxu3 %v1633_v1  ;;  %v1634_v10 = vld [vmem:[%s4887_s5 + $0x368] sm:$0xff]  ;;  %v1903_v1 = vld [vmem:[%s4889_s7 + $0x200] sm:$0xff] }
 0x186   :  { %1801 = vmatpush.msrb.mxu0 %v1605_v8  ;;  %1764 = vmatpush.msrb.mxu1 %v1643_v6  ;;  %v1637_v8 = vld [vmem:[%s4887_s5 + $0x380] sm:$0xff]  ;;  %v1861_v6 = vld [vmem:[%s4889_s7 + $0xb0] sm:$0xff] }
 0x187   :  { %1779 = vmatpush.msrb.mxu2 %v1563_v16  ;;  %1708 = vmatpush.msra.mxu3 %v1630_v3  ;;  %v1607_v16 = vld [vmem:[%s4887_s5 + $0x290] sm:$0xff]  ;;  %v1899_v3 = vld [vmem:[%s4889_s7 + $0x1e0] sm:$0xff] }
 0x188   :  { %1802 = vmatpush.msrb.mxu0 %v1602_v11  ;;  %v1319_v58 = vpop.f32.mrf.mxu0  ;;  %1765 = vmatpush.msrb.mxu1 %v1640_v32  ;;  %v1616_v11 = vld [vmem:[%s4887_s5 + $0x2d8] sm:$0xff]  ;;  %v1897_v32 = vld [vmem:[%s4889_s7 + $0x1d0] sm:$0xff] }
 0x189   :  { %1780 = vmatpush.msrb.mxu2 %v1560_v17  ;;  %1709 = vmatpush.msra.mxu3 %v1627_v4  ;;  %v1601_v17 = vld [vmem:[%s4887_s5 + $0x260] sm:$0xff]  ;;  %v1870_v4 = vld [vmem:[%s4889_s7 + $0xf8] sm:$0xff] }
 0x18a   :  { %1803 = vmatpush.msrb.mxu0 %v1599_v39  ;;  %1766 = vmatpush.msrb.mxu1 %v1637_v8  ;;  %v1604_v39 = vld [vmem:[%s4887_s5 + $0x278] sm:$0xff] }
 0x18b   :  { %1781 = vmatpush.msrb.mxu2 %v1557_v20  ;;  %1710 = vmatpush.msra.mxu3 %v1624_v5  ;;  %v1595_v20 = vld [vmem:[%s4887_s5 + $0x230] sm:$0xff]  ;;  %v1900_v5 = vld [vmem:[%s4889_s7 + $0x1e8] sm:$0xff]  ;;  %v1898_v8 = vld [vmem:[%s4889_s7 + $0x1d8] sm:$0xff] }
 0x18c   :  { %1804 = vmatpush.msrb.mxu0 %v1596_v18  ;;  %1767 = vmatpush.msrb.mxu1 %v1634_v10  ;;  %v1598_v18 = vld [vmem:[%s4887_s5 + $0x248] sm:$0xff]  ;;  %v1895_v10 = vld [vmem:[%s4889_s7 + $0x1c0] sm:$0xff] }
 0x18d   :  { %1782 = vmatpush.msrb.mxu2 %v1554_v25  ;;  %1711 = vmatpush.msra.mxu3 %v1621_v7  ;;  %v1638_v25 = vld [vmem:[%s4887_s5 + $0x388] sm:$0xff] }
 0x18e   :  { %1805 = vmatpush.msrb.mxu0 %v1593_v21  ;;  %1768 = vmatpush.msrb.mxu1 %v1631_v13  ;;  %v1644_v21 = vld [vmem:[%s4887_s5 + $0x3b8] sm:$0xff]  ;;  %v1868_v7 = vld [vmem:[%s4889_s7 + $0xe8] sm:$0xff] }
 0x18f   :  { %v1179_v14 = vpop.f32.mrf.mxu2  ;;  %1783 = vmatpush.msrb.mxu2 %v1551_v27  ;;  %1736 = vmatpush.msrb.mxu3 %v1619_v9  ;;  %v1635_v27 = vld [vmem:[%s4887_s5 + $0x370] sm:$0xff]  ;;  %v1859_v9 = vld [vmem:[%s4889_s7 + $0xa0] sm:$0xff]  ;;  %v1896_v13 = vld [vmem:[%s4889_s7 + $0x1c8] sm:$0xff] }
 0x190   :  { %v1180_v19 = vadd.f32 %v1179_v14, %v1160_v15  ;;  %1806 = vmatpush.msrb.mxu0 %v1590_v26  ;;  %v1339_v60 = vpop.f32.mrf.mxu1  ;;  %v1610_v14 = vld [vmem:[%s4887_s5 + $0x2a8] sm:$0xff]  ;;  %v1625_v15 = vld [vmem:[%s4887_s5 + $0x320] sm:$0xff]  ;;  %1769 = vmatpush.msrb.mxu1 %v1628_v38  ;;  %v1893_v38 = vld [vmem:[%s4889_s7 + $0x1b0] sm:$0xff] }
 0x191   :  { %1784 = vmatpush.msrb.mxu2 %v1548_v29  ;;  %1737 = vmatpush.msrb.mxu3 %v1616_v11  ;;  %v1586_v26 = vld [vmem:[%s4887_s5 + $0x1e8] sm:$0xff]  ;;  %v1632_v29 = vld [vmem:[%s4887_s5 + $0x358] sm:$0xff] }
 0x192   :  { %1807 = vmatpush.msrb.mxu0 %v1587_v28  ;;  %1770 = vmatpush.msrb.mxu1 %v1625_v15  ;;  %v1583_v28 = vld [vmem:[%s4887_s5 + $0x1d0] sm:$0xff]  ;;  %v1866_v11 = vld [vmem:[%s4889_s7 + $0xd8] sm:$0xff] }
 0x193   :  { %1785 = vmatpush.msrb.mxu2 %v1545_v34  ;;  %1738 = vmatpush.msrb.mxu3 %v1613_v33  ;;  %v1629_v34 = vld [vmem:[%s4887_s5 + $0x340] sm:$0xff]  ;;  %v1857_v33 = vld [vmem:[%s4889_s7 + $0x90] sm:$0xff]  ;;  %v1894_v15 = vld [vmem:[%s4889_s7 + $0x1b8] sm:$0xff] }
 0x194   :  { %1808 = vmatpush.msrb.mxu0 %v1584_v30  ;;  %v1580_v30 = vld [vmem:[%s4887_s5 + $0x1b8] sm:$0xff] }
 0x195   :  { %v1199_v23 = vpop.f32.mrf.mxu3  ;;  %1786 = vmatpush.msrb.mxu2 %v1542_v35  ;;  %1739 = vmatpush.msrb.mxu3 %v1610_v14  ;;  %v1626_v35 = vld [vmem:[%s4887_s5 + $0x328] sm:$0xff] }
 0x196   :  { %v1200_v24 = vadd.f32 %v1199_v23, %v1180_v19  ;;  %1809 = vmatpush.msrb.mxu0 %v1581_v12  ;;  %v1622_v19 = vld [vmem:[%s4887_s5 + $0x308] sm:$0xff]  ;;  %v1592_v23 = vld [vmem:[%s4887_s5 + $0x218] sm:$0xff]  ;;  %v1577_v12 = vld [vmem:[%s4887_s5 + $0x1a0] sm:$0xff] }
 0x197   :  { %1787 = vmatpush.msrb.mxu2 %v1539_v37  ;;  %1740 = vmatpush.msrb.mxu3 %v1607_v16  ;;  %v1623_v37 = vld [vmem:[%s4887_s5 + $0x310] sm:$0xff]  ;;  %v1864_v14 = vld [vmem:[%s4889_s7 + $0xc8] sm:$0xff]  ;;  %v1855_v16 = vld [vmem:[%s4889_s7 + $0x80] sm:$0xff] }
 0x198   :  { %v4362_v41 = vmax.f32 %v1200_v24, 0.0  ;;  %1810 = vmatpush.msrb.mxu0 %v1578_v36  ;;  %v1279_v55 = vpop.f32.mrf.mxu2  ;;  %1771 = vmatpush.msrb.mxu1 %v1622_v19  ;;  %v1641_v24 = vld [vmem:[%s4887_s5 + $0x3a0] sm:$0xff]  ;;  %v1574_v36 = vld [vmem:[%s4887_s5 + $0x188] sm:$0xff]  ;;  %v1849_v19 = vld [vmem:[%s4889_s7 + $0x50] sm:$0xff] }
 0x199   :  { %1788 = vmatpush.msrb.mxu2 %v1536_v40  ;;  %1741 = vmatpush.msrb.mxu3 %v1604_v39  ;;  %v1862_v39 = vld [vmem:[%s4889_s7 + $0xb8] sm:$0xff] }
 0x19a   :  { %1672 = vmatmul.f32.vlgmr.msra.gmra.mxu1 %v4362_v41  ;;  %1732 = vmatmul.f32.vlgmr.msra.gmra.mxu0 %v4362_v41 }
 0x19b   :  { %1811 = vmatpush.msrb.mxu0 %v1575_v52  ;;  %1789 = vmatpush.msrb.mxu2 %v1533_v43  ;;  %v1034_v52 = vperm.slane %v4293_v53, 2 }
 0x19c   :  { %1742 = vmatpush.msrb.mxu3 %v1601_v17  ;;  %1824 = vmatpush.msra.mxu1 %v1644_v21  ;;  %v1853_v17 = vld [vmem:[%s4889_s7 + $0x70] sm:$0xff]  ;;  %v1860_v21 = vld [vmem:[%s4889_s7 + $0xa8] sm:$0xff] }
 0x19d   :  { %1790 = vmatpush.msrb.mxu2 %v1530_v44 }
 0x19e   :  { %v1219_v54 = vpop.f32.mrf.mxu3  ;;  %1743 = vmatpush.msrb.mxu3 %v1598_v18  ;;  %1825 = vmatpush.msra.mxu1 %v1641_v24  ;;  %v1851_v18 = vld [vmem:[%s4889_s7 + $0x60] sm:$0xff] }
 0x19f   :  { %v1220_v45 = vadd.f32 %v1219_v54, %v1033_v42  ;;  %1791 = vmatpush.msrb.mxu2 %v1527_v46  ;;  %v1847_v24 = vld [vmem:[%s4889_s7 + $0x40] sm:$0xff] }
 0x1a0   :  { %1744 = vmatpush.msrb.mxu3 %v1595_v20  ;;  %1826 = vmatpush.msra.mxu1 %v1638_v25  ;;  %v1891_v20 = vld [vmem:[%s4889_s7 + $0x1a0] sm:$0xff]  ;;  %v1858_v25 = vld [vmem:[%s4889_s7 + $0x98] sm:$0xff] }
 0x1a1   :  { %v1240_v48 = vadd.f32 %v1239_v47, %v1220_v45 }
 0x1a2   :  { %v1359_v63 = vpop.f32.mrf.mxu2  ;;  %1745 = vmatpush.msrb.mxu3 %v1592_v23  ;;  %1827 = vmatpush.msra.mxu1 %v1635_v27  ;;  %v1892_v23 = vld [vmem:[%s4889_s7 + $0x1a8] sm:$0xff]  ;;  %v1845_v27 = vld [vmem:[%s4889_s7 + $0x30] sm:$0xff] }
 0x1a3   :  { %v1260_v51 = vadd.f32 %v1259_v49, %v1240_v48 }
 0x1a4   :  { %1828 = vmatpush.msra.mxu1 %v1632_v29  ;;  %v1856_v29 = vld [vmem:[%s4889_s7 + $0x88] sm:$0xff] }
 0x1a5   :  { %v1280_v56 = vadd.f32 %v1279_v55, %v1260_v51 }
 0x1a6   :  { %1829 = vmatpush.msra.mxu1 %v1629_v34  ;;  %v1843_v34 = vld [vmem:[%s4889_s7 + $0x20] sm:$0xff] }
 0x1a8   :  { %1830 = vmatpush.msra.mxu1 %v1626_v35  ;;  %v1854_v35 = vld [vmem:[%s4889_s7 + $0x78] sm:$0xff] }
 0x1aa   :  { %1831 = vmatpush.msra.mxu1 %v1623_v37  ;;  %v1841_v37 = vld [vmem:[%s4889_s7 + $0x10] sm:$0xff] }
 0x1ac   :  { %v1419_v44 = vpop.f32.mrf.mxu0 }
 0x1b3   :  { %v1439_v46 = vpop.f32.mrf.mxu1 }
 0x1b8   :  { %v1299_v31 = vpop.f32.mrf.mxu3 }
 0x1b9   :  { %v1300_v57 = vadd.f32 %v1299_v31, %v1280_v56 }
 0x1bb   :  { %v1320_v59 = vadd.f32 %v1319_v58, %v1300_v57 }
 0x1bd   :  { %v1340_v61 = vadd.f32 %v1339_v60, %v1320_v59  ;;  %v1869_v59 = vld [vmem:[%s4889_s7 + $0xf0] sm:$0xff]  ;;  %v1907_v60 = vld [vmem:[%s4889_s7 + $0x220] sm:$0xff] }
 0x1bf   :  { %v1360_v0 = vadd.f32 %v1359_v63, %v1340_v61  ;;  %v1865_v61 = vld [vmem:[%s4889_s7 + $0xd0] sm:$0xff]  ;;  %v1863_v63 = vld [vmem:[%s4889_s7 + $0xc0] sm:$0xff] }
 0x1c1   :  { %v4427_v2 = vmax.f32 %v1360_v0, 0.0  ;;  %v1901_v0 = vld [vmem:[%s4889_s7 + $0x1f0] sm:$0xff] }
 0x1c3   :  { %1692 = vmatmul.f32.vlgmr.msra.gmra.mxu2 %v4427_v2  ;;  %1812 = vmatmul.f32.vlgmr.msrb.gmra.mxu0 %v4427_v2  ;;  %v1379_v40 = vpop.f32.mrf.mxu2 }
 0x1c4   :  { %v1380_v43 = vadd.f32 %v1379_v40, %v1034_v52  ;;  %v1519_v57 = vpop.f32.mrf.mxu1  ;;  %1973 = vmatpush.msra.mxu2 %v1909_v22  ;;  %v1883_v52 = vld [vmem:[%s4889_s7 + $0x160] sm:$0xff]  ;;  %v1852_v40 = vld [vmem:[%s4889_s7 + $0x68] sm:$0xff]  ;;  %v1842_v22 = vld [vmem:[%s4889_s7 + $0x18] sm:$0xff] }
 0x1c6   :  { %1974 = vmatpush.msra.mxu2 %v1907_v60  ;;  %v1874_v60 = vld [vmem:[%s4889_s7 + $0x118] sm:$0xff] }
 0x1c8   :  { %1975 = vmatpush.msra.mxu2 %v1905_v62  ;;  %v1871_v62 = vld [vmem:[%s4889_s7 + $0x100] sm:$0xff] }
 0x1ca   :  { %1976 = vmatpush.msra.mxu2 %v1903_v1 }
 0x1cb   :  { %1792 = vmatmul.f32.vlgmr.msrb.gmra.mxu2 %v4362_v41  ;;  %v1589_v41 = vld [vmem:[%s4887_s5 + $0x200] sm:$0xff] }
 0x1cc   :  { %1746 = vmatpush.msrb.mxu3 %v1589_v41  ;;  %1981 = vmatpush.msrb.mxu2 %v1870_v4  ;;  %v1889_v41 = vld [vmem:[%s4889_s7 + $0x190] sm:$0xff] }
 0x1cd   :  { %v2073_v4 = vld [vmem:[%s4890_s9 + $0xf0] sm:$0xff] }
 0x1ce   :  { %1747 = vmatpush.msrb.mxu3 %v1586_v26  ;;  %v1499_v56 = vpop.f32.mrf.mxu0  ;;  %1982 = vmatpush.msrb.mxu2 %v1868_v7  ;;  %v1890_v26 = vld [vmem:[%s4889_s7 + $0x198] sm:$0xff] }
 0x1cf   :  { %v2070_v7 = vld [vmem:[%s4890_s9 + $0xd8] sm:$0xff] }
 0x1d0   :  { %1748 = vmatpush.msrb.mxu3 %v1583_v28  ;;  %1983 = vmatpush.msrb.mxu2 %v1866_v11  ;;  %v1887_v28 = vld [vmem:[%s4889_s7 + $0x180] sm:$0xff]  ;;  %v2069_v11 = vld [vmem:[%s4890_s9 + $0xd0] sm:$0xff] }
 0x1d2   :  { %1749 = vmatpush.msrb.mxu3 %v1580_v30  ;;  %1984 = vmatpush.msrb.mxu2 %v1864_v14  ;;  %v1888_v30 = vld [vmem:[%s4889_s7 + $0x188] sm:$0xff] }
 0x1d4   :  { %1750 = vmatpush.msrb.mxu3 %v1577_v12  ;;  %1985 = vmatpush.msrb.mxu2 %v1862_v39  ;;  %v1885_v12 = vld [vmem:[%s4889_s7 + $0x170] sm:$0xff] }
 0x1d6   :  { %1751 = vmatpush.msrb.mxu3 %v1574_v36  ;;  %1986 = vmatpush.msrb.mxu2 %v1860_v21  ;;  %v1886_v36 = vld [vmem:[%s4889_s7 + $0x178] sm:$0xff] }
 0x1d8   :  { %v1399_v42 = vpop.f32.mrf.mxu3  ;;  %1987 = vmatpush.msrb.mxu2 %v1858_v25  ;;  %v2057_v25 = vld [vmem:[%s4890_s9 + $0x70] sm:$0xff] }
 0x1d9   :  { %v1400_v54 = vadd.f32 %v1399_v42, %v1380_v43  ;;  %v1884_v42 = vld [vmem:[%s4889_s7 + $0x168] sm:$0xff]  ;;  %v1839_v43 = vld [vmem:[%s4889_s7] sm:$0xff] }
 0x1da   :  { %1988 = vmatpush.msrb.mxu2 %v1856_v29 }
 0x1db   :  { %v1420_v45 = vadd.f32 %v1419_v44, %v1400_v54  ;;  %v1881_v54 = vld [vmem:[%s4889_s7 + $0x150] sm:$0xff]  ;;  %v1850_v44 = vld [vmem:[%s4889_s7 + $0x58] sm:$0xff] }
 0x1dc   :  { %1989 = vmatpush.msrb.mxu2 %v1854_v35 }
 0x1dd   :  { %v1440_v48 = vadd.f32 %v1439_v46, %v1420_v45  ;;  %v1882_v45 = vld [vmem:[%s4889_s7 + $0x158] sm:$0xff]  ;;  %v1879_v46 = vld [vmem:[%s4889_s7 + $0x140] sm:$0xff] }
 0x1de   :  { %1990 = vmatpush.msrb.mxu2 %v1852_v40  ;;  %v2050_v40 = vld [vmem:[%s4890_s9 + $0x38] sm:$0xff] }
 0x1e0   :  { %1991 = vmatpush.msrb.mxu2 %v1850_v44  ;;  %v2047_v44 = vld [vmem:[%s4890_s9 + $0x20] sm:$0xff] }
 0x1e3   :  { %v1459_v47 = vpop.f32.mrf.mxu2 }
 0x1e4   :  { %v1460_v49 = vadd.f32 %v1459_v47, %v1440_v48  ;;  %v1848_v47 = vld [vmem:[%s4889_s7 + $0x48] sm:$0xff] }
 0x1e5   :  { %v1880_v48 = vld [vmem:[%s4889_s7 + $0x148] sm:$0xff]  ;;  %1992 = vmatpush.msrb.mxu2 %v1848_v47  ;;  %v2066_v47 = vld [vmem:[%s4890_s9 + $0xb8] sm:$0xff] }
 0x1f8   :  { %v1479_v51 = vpop.f32.mrf.mxu3 }
 0x1f9   :  { %v1480_v55 = vadd.f32 %v1479_v51, %v1460_v49  ;;  %v1910_v49 = vld [vmem:[%s4889_s7 + $0x238] sm:$0xff]  ;;  %v1877_v51 = vld [vmem:[%s4889_s7 + $0x130] sm:$0xff] }
 0x1fb   :  { %v1500_v31 = vadd.f32 %v1499_v56, %v1480_v55  ;;  %v1846_v55 = vld [vmem:[%s4889_s7 + $0x38] sm:$0xff] }
 0x1fc   :  { %v1878_v56 = vld [vmem:[%s4889_s7 + $0x138] sm:$0xff]  ;;  %1993 = vmatpush.msrb.mxu2 %v1846_v55  ;;  %v2064_v55 = vld [vmem:[%s4890_s9 + $0xa8] sm:$0xff] }
 0x1fd   :  { %v1520_v53 = vadd.f32 %v1519_v57, %v1500_v31  ;;  %v1908_v31 = vld [vmem:[%s4889_s7 + $0x228] sm:$0xff]  ;;  %v1875_v57 = vld [vmem:[%s4889_s7 + $0x120] sm:$0xff] }
 0x1ff   :  { %v1524_v58 = vmax.f32 %v1520_v53, 0.0  ;;  %v1844_v53 = vld [vmem:[%s4889_s7 + $0x28] sm:$0xff] }
 0x200   :  { %1994 = vmatpush.msrb.mxu2 %v1844_v53  ;;  %v2061_v53 = vld [vmem:[%s4890_s9 + $0x90] sm:$0xff] }
 0x201   :  { %2159 = vmatmul.msk.f32.vlgmr.msra.gmra.mxu3 %vm1038_vm0, %v1524_v58  ;;  %2160 = vmatmul.msk.f32.vlgmr.msrb.gmra.mxu1 %vm1038_vm0, %v1524_v58 }
 0x202   :  { %1921 = vmatpush.msra.mxu3 %v1869_v59  ;;  %1941 = vmatpush.msrb.mxu1 %v1901_v0  ;;  %v1906_v59 = vld [vmem:[%s4889_s7 + $0x218] sm:$0xff]  ;;  %v1872_v0 = vld [vmem:[%s4889_s7 + $0x108] sm:$0xff] }
 0x203   :  { %1995 = vmatpush.msrb.mxu2 %v1842_v22  ;;  %v1911_v22 = vld [vmem:[%s4894_s8] sm:$0x3] }
 0x204   :  { %1922 = vmatpush.msra.mxu3 %v1867_v50  ;;  %1942 = vmatpush.msrb.mxu1 %v1899_v3  ;;  %v1873_v50 = vld [vmem:[%s4889_s7 + $0x110] sm:$0xff] }
 0x206   :  { %1923 = vmatpush.msra.mxu3 %v1865_v61  ;;  %1943 = vmatpush.msrb.mxu1 %v1897_v32  ;;  %v1904_v61 = vld [vmem:[%s4889_s7 + $0x208] sm:$0xff]  ;;  %v1645_v32 = vld [vmem:[%s4891_s6] sm:$0x7] }
 0x208   :  { %1924 = vmatpush.msra.mxu3 %v1863_v63  ;;  %1944 = vmatpush.msrb.mxu1 %v1895_v10  ;;  %v1840_v63 = vld [vmem:[%s4889_s7 + $0x8] sm:$0xff]  ;;  %v1649_v10 = vperm.slane %v1645_v32, 2 }
 0x209   :  { %1752 = vmatmul.f32.vlgmr.msrb.gmra.mxu3 %v4427_v2  ;;  %2161 = vmatmul.msk.f32.vlgmr.msra.gmra.mxu1 %vm1038_vm0, %v1524_v58  ;;  %v1902_v2 = vld [vmem:[%s4889_s7 + $0x1f8] sm:$0xff]  ;;  %v1876_v58 = vld [vmem:[%s4889_s7 + $0x128] sm:$0xff] }
 0x20a   :  { %2001 = vmatpush.msra.mxu0 %v1902_v2  ;;  %1925 = vmatpush.msra.mxu3 %v1861_v6  ;;  %v2074_v2 = vld [vmem:[%s4890_s9 + $0xf8] sm:$0xff]  ;;  %v2071_v6 = vld [vmem:[%s4890_s9 + $0xe0] sm:$0xff] }
 0x20b   :  { %1945 = vmatpush.msrb.mxu1 %v1893_v38  ;;  %1996 = vmatpush.msrb.mxu2 %v1840_v63 }
 0x20c   :  { %2002 = vmatpush.msra.mxu0 %v1900_v5  ;;  %1926 = vmatpush.msra.mxu3 %v1859_v9  ;;  %v2072_v5 = vld [vmem:[%s4890_s9 + $0xe8] sm:$0xff]  ;;  %v1647_v9 = vperm.slane %v1645_v32, 0 }
 0x20d   :  { %1946 = vmatpush.msrb.mxu1 %v1891_v20  ;;  %v1648_v20 = vperm.slane %v1645_v32, 1 }
 0x20e   :  { %2003 = vmatpush.msra.mxu0 %v1898_v8  ;;  %1927 = vmatpush.msra.mxu3 %v1857_v33 }
 0x20f   :  { %1947 = vmatpush.msrb.mxu1 %v1889_v41 }
 0x210   :  { %2004 = vmatpush.msra.mxu0 %v1896_v13  ;;  %1928 = vmatpush.msra.mxu3 %v1855_v16 }
 0x211   :  { %1948 = vmatpush.msrb.mxu1 %v1887_v28 }
 0x212   :  { %2005 = vmatpush.msra.mxu0 %v1894_v15  ;;  %1929 = vmatpush.msra.mxu3 %v1853_v17 }
 0x213   :  { %1949 = vmatpush.msrb.mxu1 %v1885_v12  ;;  %v2054_v12 = vld [vmem:[%s4890_s9 + $0x58] sm:$0xff] }
 0x214   :  { %1930 = vmatpush.msra.mxu3 %v1851_v18  ;;  %2006 = vmatpush.msra.mxu0 %v1892_v23 }
 0x215   :  { %1950 = vmatpush.msrb.mxu1 %v1883_v52  ;;  %v2051_v52 = vld [vmem:[%s4890_s9 + $0x40] sm:$0xff] }
 0x216   :  { %1931 = vmatpush.msra.mxu3 %v1849_v19  ;;  %2007 = vmatpush.msra.mxu0 %v1890_v26 }
 0x217   :  { %1951 = vmatpush.msrb.mxu1 %v1881_v54  ;;  %v1673_v3 = vpop.f32.mrf.mxu1  ;;  %v1733_v8 = vpop.f32.mrf.mxu0  ;;  %v2068_v54 = vld [vmem:[%s4890_s9 + $0xc8] sm:$0xff] }
 0x218   :  { %1932 = vmatpush.msra.mxu3 %v1847_v24  ;;  %2008 = vmatpush.msra.mxu0 %v1888_v30  ;;  %v1674_v38 = vadd.f32 %v1673_v3, %v1647_v9  ;;  %v2058_v24 = vld [vmem:[%s4890_s9 + $0x78] sm:$0xff]  ;;  %v1734_v26 = vadd.f32 %v1733_v8, %v1648_v20  ;;  %v2055_v30 = vld [vmem:[%s4890_s9 + $0x60] sm:$0xff]  ;;  %v1914_v3 = vperm.slane %v1911_v22, 1 }
 0x219   :  { %1952 = vmatpush.msrb.mxu1 %v1879_v46  ;;  %v2046_v46 = vld [vmem:[%s4890_s9 + $0x18] sm:$0xff] }
 0x21a   :  { %1933 = vmatpush.msra.mxu3 %v1845_v27  ;;  %2009 = vmatpush.msra.mxu0 %v1886_v36  ;;  %v2056_v27 = vld [vmem:[%s4890_s9 + $0x68] sm:$0xff]  ;;  %v2053_v36 = vld [vmem:[%s4890_s9 + $0x50] sm:$0xff] }
 0x21b   :  { %1953 = vmatpush.msrb.mxu1 %v1877_v51  ;;  %v2044_v51 = vld [vmem:[%s4890_s9 + $0x8] sm:$0xff] }
 0x21c   :  { %1934 = vmatpush.msra.mxu3 %v1843_v34  ;;  %2010 = vmatpush.msra.mxu0 %v1884_v42  ;;  %v2049_v42 = vld [vmem:[%s4890_s9 + $0x30] sm:$0xff] }
 0x21d   :  { %1954 = vmatpush.msrb.mxu1 %v1875_v57  ;;  %v2062_v57 = vld [vmem:[%s4890_s9 + $0x98] sm:$0xff] }
 0x21e   :  { %1935 = vmatpush.msra.mxu3 %v1841_v37  ;;  %2011 = vmatpush.msra.mxu0 %v1882_v45  ;;  %v2052_v37 = vld [vmem:[%s4890_s9 + $0x48] sm:$0xff]  ;;  %v2067_v45 = vld [vmem:[%s4890_s9 + $0xc0] sm:$0xff] }
 0x21f   :  { %1955 = vmatpush.msrb.mxu1 %v1873_v50  ;;  %v2122_v50 = vld [vmem:[%s4893_s11 + $0x10] sm:$0xff] }
 0x220   :  { %1936 = vmatpush.msra.mxu3 %v1839_v43  ;;  %2012 = vmatpush.msra.mxu0 %v1880_v48  ;;  %v2048_v43 = vld [vmem:[%s4890_s9 + $0x28] sm:$0xff]  ;;  %v2045_v48 = vld [vmem:[%s4890_s9 + $0x10] sm:$0xff] }
 0x221   :  { %1956 = vmatpush.msrb.mxu1 %v1871_v62 }
 0x222   :  { %2033 = vmatpush.msrb.mxu3 %v1910_v49  ;;  %2013 = vmatpush.msra.mxu0 %v1878_v56  ;;  %v2065_v49 = vld [vmem:[%s4890_s9 + $0xb0] sm:$0xff]  ;;  %v2043_v56 = vld [vmem:[%s4890_s9] sm:$0xff] }
 0x223   :  { %2099 = vmatpush.msra.mxu1 %v2074_v2 }
 0x224   :  { %2034 = vmatpush.msrb.mxu3 %v1908_v31  ;;  %2014 = vmatpush.msra.mxu0 %v1876_v58  ;;  %v2063_v31 = vld [vmem:[%s4890_s9 + $0xa0] sm:$0xff]  ;;  %v2060_v58 = vld [vmem:[%s4890_s9 + $0x88] sm:$0xff] }
 0x225   :  { %2100 = vmatpush.msra.mxu1 %v2073_v4 }
 0x226   :  { %2035 = vmatpush.msrb.mxu3 %v1906_v59  ;;  %2015 = vmatpush.msra.mxu0 %v1874_v60  ;;  %v2059_v59 = vld [vmem:[%s4890_s9 + $0x80] sm:$0xff]  ;;  %v1913_v60 = vperm.slane %v1911_v22, 0 }
 0x227   :  { %2101 = vmatpush.msra.mxu1 %v2072_v5 }
 0x228   :  { %2036 = vmatpush.msrb.mxu3 %v1904_v61  ;;  %2016 = vmatpush.msra.mxu0 %v1872_v0 }
 0x229   :  { %2102 = vmatpush.msra.mxu1 %v2071_v6 }
 0x22b   :  { %2103 = vmatpush.msra.mxu1 %v2070_v7 }
 0x22d   :  { %2104 = vmatpush.msra.mxu1 %v2069_v11  ;;  %v2121_v11 = vld [vmem:[%s4893_s11 + $0x8] sm:$0xff] }
 0x22f   :  { %2105 = vmatpush.msra.mxu1 %v2068_v54 }
 0x231   :  { %2106 = vmatpush.msra.mxu1 %v2067_v45 }
 0x233   :  { %2107 = vmatpush.msra.mxu1 %v2066_v47 }
 0x235   :  { %2108 = vmatpush.msra.mxu1 %v2065_v49 }
 0x237   :  { %2109 = vmatpush.msra.mxu1 %v2064_v55 }
 0x239   :  { %2110 = vmatpush.msra.mxu1 %v2063_v31 }
 0x23b   :  { %2111 = vmatpush.msra.mxu1 %v2062_v57 }
 0x23d   :  { %2112 = vmatpush.msra.mxu1 %v2061_v53 }
 0x23f   :  { %2113 = vmatpush.msra.mxu1 %v2060_v58 }
 0x240   :  { %v1813_v16 = vpop.f32.mrf.mxu0 }
 0x241   :  { %2114 = vmatpush.msra.mxu1 %v2059_v59 }
 0x246   :  { %v1693_v1 = vpop.f32.mrf.mxu2 }
 0x247   :  { %v1694_v15 = vadd.f32 %v1693_v1, %v1674_v38 }
 0x24e   :  { %v1793_v13 = vpop.f32.mrf.mxu2 }
 0x24f   :  { %v1794_v14 = vadd.f32 %v1793_v13, %v1649_v10  ;;  %v2120_v13 = vld [vmem:[%s4893_s11] sm:$0xff] }
 0x251   :  { %v1814_v18 = vadd.f32 %v1813_v16, %v1794_v14 }
 0x27e   :  { %v1773_v33 = vpop.f32.mrf.mxu1 }
 0x284   :  { %v1713_v39 = vpop.f32.mrf.mxu3 }
 0x285   :  { %v1714_v17 = vadd.f32 %v1713_v39, %v1694_v15 }
 0x286   :  { %v1833_v19 = vpop.f32.mrf.mxu1 }
 0x287   :  { %v1836_v21 = vmax.f32 %v1714_v17, 0.0  ;;  %v1834_v23 = vadd.f32 %v1833_v19, %v1814_v18  ;;  %v2166_v17 = vld [vmem:[%s4895_s12] ss:$0 sm:$0xff] }
 0x289   :  { %v1838_v41 = vmax.f32 %v1834_v23, 0.0  ;;  %1937 = vmatmul.f32.vlgmr.msra.gmra.mxu3 %v1836_v21 }
 0x28a   :  { %2079 = vmatpush.msra.mxu3 %v2058_v24 }
 0x28b   :  { %2162 = vmatmul.msk.f32.vlgmr.msra.gmra.mxu2 %vm1917_vm1, %v1838_v41 }
 0x28c   :  { %v1753_v28 = vpop.f32.mrf.mxu3  ;;  %2080 = vmatpush.msra.mxu3 %v2057_v25  ;;  %2144 = vmatpush.msra.mxu2 %v2122_v50 }
 0x28d   :  { %v1754_v29 = vadd.f32 %v1753_v28, %v1734_v26 }
 0x28e   :  { %2081 = vmatpush.msra.mxu3 %v2056_v27  ;;  %2145 = vmatpush.msra.mxu2 %v2121_v11 }
 0x28f   :  { %v1774_v34 = vadd.f32 %v1773_v33, %v1754_v29  ;;  %v2165_v33 = vld [vmem:[%s4892_s10] ss:$0 sm:$0xff] }
 0x290   :  { %2082 = vmatpush.msra.mxu3 %v2055_v30  ;;  %2146 = vmatpush.msra.mxu2 %v2120_v13 }
 0x291   :  { %v1837_v35 = vmax.f32 %v1774_v34, 0.0  ;;  %2163 = vmatmul.msk.f32.vlgmr.msrb.gmra.mxu3 %vm1917_vm1, %v1838_v41 }
 0x292   :  { %2083 = vmatpush.msra.mxu3 %v2054_v12 }
 0x293   :  { %1957 = vmatmul.f32.vlgmr.msrb.gmra.mxu1 %v1837_v35  ;;  %1997 = vmatmul.f32.vlgmr.msrb.gmra.mxu2 %v1836_v21 }
 0x294   :  { %2017 = vmatmul.f32.vlgmr.msra.gmra.mxu0 %v1837_v35  ;;  %2084 = vmatpush.msra.mxu3 %v2053_v36 }
 0x296   :  { %2085 = vmatpush.msra.mxu3 %v2052_v37 }
 0x298   :  { %2086 = vmatpush.msra.mxu3 %v2051_v52 }
 0x29a   :  { %2087 = vmatpush.msra.mxu3 %v2050_v40 }
 0x29c   :  { %2088 = vmatpush.msra.mxu3 %v2049_v42 }
 0x29e   :  { %2089 = vmatpush.msra.mxu3 %v2048_v43 }
 0x2a0   :  { %2090 = vmatpush.msra.mxu3 %v2047_v44 }
 0x2a2   :  { %2091 = vmatpush.msra.mxu3 %v2046_v46 }
 0x2a4   :  { %2092 = vmatpush.msra.mxu3 %v2045_v48 }
 0x2a6   :  { %2093 = vmatpush.msra.mxu3 %v2044_v51 }
 0x2a8   :  { %2094 = vmatpush.msra.mxu3 %v2043_v56 }
 0x30c   :  { %v1938_v61 = vpop.f32.mrf.mxu3 }
 0x30d   :  { %v1939_v63 = vadd.f32 %v1938_v61, %v1913_v60 }
 0x30e   :  { %v1978_v62 = vpop.f32.mrf.mxu2 }
 0x310   :  { %v1958_v0 = vpop.f32.mrf.mxu1 }
 0x311   :  { %v1959_v1 = vadd.f32 %v1958_v0, %v1939_v63  ;;  %v2018_v32 = vpop.f32.mrf.mxu0 }
 0x313   :  { %v1979_v2 = vadd.f32 %v1978_v62, %v1959_v1 }
 0x314   :  { %v2038_v8 = vpop.f32.mrf.mxu3 }
 0x315   :  { %v2041_v4 = vmax.f32 %v1979_v2, 0.0 }
 0x316   :  { %v1998_v5 = vpop.f32.mrf.mxu2 }
 0x317   :  { %v1999_v6 = vadd.f32 %v1998_v5, %v1914_v3  ;;  %2095 = vmatmul.f32.vlgmr.msra.gmra.mxu3 %v2041_v4 }
 0x319   :  { %v2019_v7 = vadd.f32 %v2018_v32, %v1999_v6 }
 0x31b   :  { %v2039_v9 = vadd.f32 %v2038_v8, %v2019_v7 }
 0x31d   :  { %v2042_v10 = vmax.f32 %v2039_v9, 0.0 }
 0x31f   :  { %2115 = vmatmul.f32.vlgmr.msra.gmra.mxu1 %v2042_v10 }
 0x39a   :  { %v2096_v38 = vpop.f32.mrf.mxu3 }
 0x39b   :  { %v2097_v14 = vadd.f32 %v2165_v33, %v2096_v38 }
 0x39c   :  { %v2116_v15 = vpop.f32.mrf.mxu1 }
 0x39d   :  { %v2117_v16 = vadd.f32 %v2116_v15, %v2097_v14 }
 0x39f   :  { %v2119_v39 = vmax.f32 %v2117_v16, 0.0 }
 0x3a1   :  { %2164 = vmatmul.msk.f32.vlgmr.msra.gmra.mxu2 %vm2127_vm2, %v2119_v39 }
 0x424   :  { %v2148_v18 = vpop.f32.mrf.mxu2 }
 0x425   :  { %v2149_v19 = vadd.f32 %v2166_v17, %v2148_v18 }
 0x427   :  { %2151 = vst [vmem:[%s4896_s13] sm:$0xff] %v2149_v19 }

</bundles_post_ra>
